<compile_context>
chip_gen: v7x
topology: tpu7x:2x2x1
jax: 0.10.0
libtpu: 0.0.40
codegen_flags: <defaults>
</compile_context>

<pallas_src>
import jax
import jax.numpy as jnp
from jax import lax
from jax.experimental import pallas as pl
from jax.experimental.pallas import tpu as pltpu

LRELU_SLOPE = 0.1


# ----------------------------------------------------------------------------
# helpers
# ----------------------------------------------------------------------------
def get_2d_padding(ks, dil=(1, 1)):
    return ((ks[0] - 1) * dil[0] // 2, (ks[1] - 1) * dil[1] // 2)


def _layer_spec(win, hin, w_shape, stride, dil, pad, act):
    """Static geometry of one conv layer; (freq, chan, time) in-kernel layout."""
    kh, kw, cin, cout = w_shape          # kh taps over time, kw taps over freq
    st_t, st_f = stride                  # (time, freq) strides
    d_t, d_f = dil                       # (time, freq) dilations
    pt, pf = pad                         # (time, freq) padding
    assert st_t == 1 and d_f == 1        # the module only uses these
    hout = (hin + 2 * pt - d_t * (kh - 1) - 1) // st_t + 1
    wout = (win + 2 * pf - (kw - 1) - 1) // st_f + 1
    return dict(kh=kh, kw=kw, dh=d_t, sw=st_f, pt=pt, pf=pf,
                cin=cin, cout=cout, win=win, hin=hin,
                wout=wout, hout=hout, act=act)


# ----------------------------------------------------------------------------
# in-kernel building blocks (traced inside the fused kernel body)
# ----------------------------------------------------------------------------
def _zero_halo(pad_ref, spec):
    """Zero only the halo of a (freq, chan, time) padded buffer (interior is
    always fully overwritten by the producer)."""
    C = spec["cin"]
    Fp = spec["win"] + 2 * spec["pf"]
    Tp = spec["hin"] + 2 * spec["pt"]
    pf, pt = spec["pf"], spec["pt"]
    if pf > 0:
        strip = jnp.zeros((pf, C, Tp), jnp.bfloat16)
        pad_ref[0:pf, 0:C, 0:Tp] = strip
        pad_ref[pf + spec["win"]:Fp, 0:C, 0:Tp] = strip
    if pt > 0:
        col = jnp.zeros((spec["win"], C, pt), jnp.bfloat16)
        pad_ref[pf:pf + spec["win"], 0:C, 0:pt] = col
        pad_ref[pf:pf + spec["win"], 0:C, pt + spec["hin"]:Tp] = col


def _conv_layer(pad_ref, row_ref, w_val, b_val, spec, emit):
    """One conv layer, streamed one output-frequency row at a time.

    pad_ref : (>=Fpad, >=cin, >=Tpad) bf16 scratch holding the padded input.
    row_ref : (>=kw*cin, >=Tpad) bf16 scratch: im2col row for one output freq.
    w_val   : (kh, cout, kw*cin) bf16 value (pre-flattened; K ordered (j, ci)).
    b_val   : (cout, 1) f32 value.
    emit(f, y_bf16): stores the (cout, hout) result for output frequency f.

    Per f: kw tap-slab copies into the row + kh lane-dense 2D MXU matmuls
    (cout, K) @ (K, hout) accumulated in f32 — no big im2col matrix, outputs
    and all operands keep time on the lane axis.
    """
    kh, kw, dh, sw = spec["kh"], spec["kw"], spec["dh"], spec["sw"]
    cin, cout = spec["cin"], spec["cout"]
    hin, hout, wout = spec["hin"], spec["hout"], spec["wout"]
    Tp = hin + 2 * spec["pt"]
    K = kw * cin
    w_taps = [w_val[i] for i in range(kh)]       # (cout, K), loop-invariant

    def body(f, carry):
        # im2col row for output frequency f: row[j*cin+ci, tau] = pad[f*sw+j, ci, tau]
        for j in range(kw):
            row_ref[j * cin:(j + 1) * cin, 0:Tp] = pad_ref[f * sw + j, 0:cin, 0:Tp]
        acc = jnp.dot(w_taps[0], row_ref[0:K, pl.ds(0, hout)],
                      preferred_element_type=jnp.float32)
        for i in range(1, kh):
            acc = acc + jnp.dot(w_taps[i], row_ref[0:K, pl.ds(i * dh, hout)],
                                preferred_element_type=jnp.float32)
        acc = acc + b_val                                    # f32 bias
        if spec["act"]:
            acc = jnp.where(acc > 0, acc, LRELU_SLOPE * acc)  # f32 LeakyReLU
        emit(f, acc.astype(jnp.bfloat16))
        return carry

    lax.fori_loop(0, wout, body, 0)


def _make_fused_kernel(pre_spec, conv_specs, n_oct, bpo):
    n_conv = len(conv_specs)
    spec0 = conv_specs[0]
    cpre = pre_spec["cin"]

    def kernel(*refs):
        pos = 0
        z_ref = refs[pos]; pos += 1                 # (n_bins, 2, T) bf16
        wpre_ref = refs[pos]; pos += 1              # (n_oct, kh, 2, 9*2) bf16
        bpre_ref = refs[pos]; pos += 1              # (n_oct, 2, 1) f32
        conv_wb = []
        for _ in range(n_conv):
            conv_wb.append((refs[pos], refs[pos + 1])); pos += 2
        out_refs = refs[pos:pos + n_conv]; pos += n_conv
        pad_a, pad_b, row_ref = refs[pos], refs[pos + 1], refs[pos + 2]
        pads = [pad_a, pad_b]

        # ---- octave pre-convs: results stream straight into conv1's padded
        #      input (pad_a); pad_b doubles as the per-octave staging buffer.
        _zero_halo(pad_b, pre_spec)                 # once; interiors rewritten
        _zero_halo(pad_a, spec0)
        pf0, pt0, hin0 = spec0["pf"], spec0["pt"], spec0["hin"]
        p_pf, p_pt, p_hin = pre_spec["pf"], pre_spec["pt"], pre_spec["hin"]
        for o in range(n_oct):
            pad_b[p_pf:p_pf + bpo, 0:cpre, p_pt:p_pt + p_hin] = \
                z_ref[pl.ds(o * bpo, bpo), 0:cpre, 0:p_hin]

            def emit_pre(f, y, base=pf0 + o * bpo):
                pad_a[base + f, 0:cpre, pt0:pt0 + hin0] = y

            _conv_layer(pad_b, row_ref, wpre_ref[o], bpre_ref[o],
                        pre_spec, emit_pre)

        # ---- main stack: convs (fused LeakyReLU -> fmap outputs) + conv_post.
        for li in range(n_conv):
            spec = conv_specs[li]
            w_ref, b_ref = conv_wb[li]
            out_ref = out_refs[li]
            if li + 1 < n_conv:
                nxt = conv_specs[li + 1]
                dst = pads[(li + 1) % 2]
                _zero_halo(dst, nxt)

                def emit(f, y, out_ref=out_ref, dst=dst, pf=nxt["pf"],
                         pt=nxt["pt"], cout=spec["cout"], hout=spec["hout"]):
                    out_ref[f] = y                       # bf16 fmap (lane-dense)
                    dst[pf + f, 0:cout, pt:pt + hout] = y  # next layer's input
            else:
                def emit(f, y, out_ref=out_ref):
                    out_ref[f] = y

            _conv_layer(pads[li % 2], row_ref, w_ref[...], b_ref[...],
                        spec, emit)

    return kernel


# ----------------------------------------------------------------------------
# forward pass (post-CQT part of DiscriminatorCQT.forward)
# ----------------------------------------------------------------------------
def discriminator_cqt_forward(z, params, cfg):
    """z: (B, n_bins, T, 2) float32 -- CQT 'Complex' output.

    Returns (latent_z, fmap) in NCHW (B, C, T, freq) bf16, matching the
    reference layer ordering.
    """
    B, n_bins, T, two = z.shape
    assert two == 2
    bpo = cfg["bins_per_octave"]
    n_oct = cfg["n_octaves"]
    assert n_bins == bpo * n_oct
    cpre = cfg["in_channels"] * 2
    ks = (3, 9)

    # ---- static per-layer geometry ----------------------------------------
    w_pre0 = params["conv_pres"][0][0]
    pre_spec = _layer_spec(bpo, T, w_pre0.shape, (1, 1), (1, 1),
                           get_2d_padding(ks), act=False)

    layer_list = list(params["convs"]) + [params["conv_post"]]
    acts = [True] * len(params["convs"]) + [False]
    conv_specs, w_ops, b_ops = [], [], []
    win, hin = n_bins, T                         # pre-convs keep spatial dims
    for (w, b, stride, dil, pad), act in zip(layer_list, acts):
        spec = _layer_spec(win, hin, w.shape, stride, dil, pad, act)
        conv_specs.append(spec)
        kh, kw, cin, cout = w.shape
        # (kh, kw, cin, cout) -> (kh, cout, kw*cin): one (cout, K) panel per
        # time tap; K ordered (freq tap j, ci) to match the in-kernel im2col row
        w_ops.append(jnp.transpose(w, (0, 3, 1, 2))
                     .reshape(kh, cout, kw * cin).astype(jnp.bfloat16))
        b_ops.append(b.reshape(cout, 1).astype(jnp.float32))
        win, hin = spec["wout"], spec["hout"]
    n_conv = len(conv_specs)

    # all octave pre-conv weights stacked into a single operand
    wpre = jnp.stack(
        [jnp.transpose(w, (0, 3, 1, 2)).reshape(w.shape[0], w.shape[3], -1)
         for w, _ in params["conv_pres"]], axis=0).astype(jnp.bfloat16)
    bpre = jnp.stack([b.reshape(-1, 1) for _, b in params["conv_pres"]],
                     axis=0).astype(jnp.float32)

    # (B, n_bins, T, 2) -> (B, n_bins, 2, T): time on lanes, no 2-wide lane dim
    zk = jnp.transpose(z, (0, 1, 3, 2)).astype(jnp.bfloat16)

    # ---- pallas_call plumbing ----------------------------------------------
    inputs = [zk, wpre, bpre]
    # NOTE: constant-index weight/bias operands could be single-buffered with
    # pipeline_mode=pl.Buffered(1); omitted here (negligible at these sizes).
    in_specs = [
        pl.BlockSpec((None, n_bins, cpre, T), lambda b: (b, 0, 0, 0)),
        pl.BlockSpec(wpre.shape, lambda b: (0, 0, 0, 0)),
        pl.BlockSpec(bpre.shape, lambda b: (0, 0, 0)),
    ]
    for wm, bm in zip(w_ops, b_ops):
        inputs += [wm, bm]
        in_specs += [pl.BlockSpec(wm.shape, lambda b: (0, 0, 0)),
                     pl.BlockSpec(bm.shape, lambda b: (0, 0))]

    out_shape, out_specs = [], []
    for spec in conv_specs:
        shp = (B, spec["wout"], spec["cout"], spec["hout"])   # (B, F, C, T)
        out_shape.append(jax.ShapeDtypeStruct(shp, jnp.bfloat16))
        out_specs.append(pl.BlockSpec((None,) + shp[1:], lambda b: (b, 0, 0, 0)))

    # shared scratch sized to the max layer (ping-pong pads + one im2col row)
    all_specs = [pre_spec] + conv_specs
    max_f = max(s["win"] + 2 * s["pf"] for s in all_specs)
    max_c = max(s["cin"] for s in all_specs)
    max_t = max(s["hin"] + 2 * s["pt"] for s in all_specs)
    max_k = max(s["kw"] * s["cin"] for s in all_specs)
    scratch_shapes = [
        pltpu.VMEM((max_f, max_c, max_t), jnp.bfloat16),   # pad ping
        pltpu.VMEM((max_f, max_c, max_t), jnp.bfloat16),   # pad pong / pre stage
        pltpu.VMEM((max_k, max_t), jnp.bfloat16),          # im2col row
    ]

    outs = pl.pallas_call(
        _make_fused_kernel(pre_spec, conv_specs, n_oct, bpo),
        grid=(B,),
        in_specs=in_specs,
        out_specs=tuple(out_specs),
        out_shape=tuple(out_shape),
        scratch_shapes=scratch_shapes,
        compiler_params=pltpu.CompilerParams(
            dimension_semantics=("parallel",),       # batch across TCs on v7x
            vmem_limit_bytes=64 * 1024 * 1024),      # > v5e's 16 MiB default
    )(*inputs)

    # kernel layout (B, freq, C, time) -> reference NCHW (B, C, time, freq)
    outs = [jnp.transpose(o, (0, 2, 3, 1)) for o in outs]
    return outs[-1], outs[:-1]


# ----------------------------------------------------------------------------
# deterministic synthetic parameters (weight_norm not modeled; see TODO above)
# ----------------------------------------------------------------------------
def build_params(key, cfg):
    f = cfg["filters"]
    mf = cfg["max_filters"]
    fs = cfg["filters_scale"]
    dils = cfg["dilations"]
    in_ch = cfg["in_channels"]
    out_ch = cfg["out_channels"]
    n_oct = cfg["n_octaves"]
    ks = (3, 9)

    n_layers = n_oct + 1 + len(dils) + 1 + 1
    keys = iter(jax.random.split(key, n_layers))

    def init_conv(k, kh, kw, cin, cout):
        k1, k2 = jax.random.split(k)
        w = jax.random.normal(k1, (kh, kw, cin, cout), jnp.float32) * 0.1
        b = jax.random.normal(k2, (cout,), jnp.float32) * 0.01
        return w, b

    conv_pres = [init_conv(next(keys), ks[0], ks[1], in_ch * 2, in_ch * 2)
                 for _ in range(n_oct)]

    convs = []
    w, b = init_conv(next(keys), ks[0], ks[1], in_ch * 2, f)
    convs.append((w, b, (1, 1), (1, 1), get_2d_padding(ks)))
    in_chs = min(fs * f, mf)
    for i, d in enumerate(dils):
        out_chs = min(fs ** (i + 1) * f, mf)
        w, b = init_conv(next(keys), ks[0], ks[1], in_chs, out_chs)
        convs.append((w, b, (1, 2), (d, 1), get_2d_padding(ks, (d, 1))))
        in_chs = out_chs
    out_chs = min(fs ** (len(dils) + 1) * f, mf)
    w, b = init_conv(next(keys), ks[0], ks[0], in_chs, out_chs)
    convs.append((w, b, (1, 1), (1, 1), get_2d_padding((ks[0], ks[0]))))

    w, b = init_conv(next(keys), ks[0], ks[0], out_chs, out_ch)
    conv_post = (w, b, (1, 1), (1, 1), get_2d_padding((ks[0], ks[0])))

    return dict(conv_pres=conv_pres, convs=convs, conv_post=conv_post)


# ----------------------------------------------------------------------------
# pure-XLA f32 reference of the same forward (for numerical validation)
# ----------------------------------------------------------------------------
def _ref_forward(z, params, cfg):
    bpo = cfg["bins_per_octave"]
    n_oct = cfg["n_octaves"]
    x = jnp.transpose(z, (0, 2, 1, 3))            # (B, T, n_bins, 2) NHWC

    def conv(x, w, b, stride, dil, pad):
        y = lax.conv_general_dilated(
            x, w, window_strides=stride,
            padding=[(pad[0], pad[0]), (pad[1], pad[1])],
            rhs_dilation=dil,
            dimension_numbers=("NHWC", "HWIO", "NHWC"))
        return y + b.reshape(1, 1, 1, -1)

    parts = []
    for i in range(n_oct):
        w, b = params["conv_pres"][i]
        parts.append(conv(x[:, :, i * bpo:(i + 1) * bpo, :], w, b,
                          (1, 1), (1, 1), get_2d_padding((3, 9))))
    h = jnp.concatenate(parts, axis=2)

    fmap = []
    for (w, b, stride, dil, pad) in params["convs"]:
        h = conv(h, w, b, stride, dil, pad)
        h = jnp.where(h > 0, h, LRELU_SLOPE * h)
        fmap.append(jnp.transpose(h, (0, 3, 1, 2)))
    w, b, stride, dil, pad = params["conv_post"]
    h = conv(h, w, b, stride, dil, pad)
    return jnp.transpose(h, (0, 3, 1, 2)), fmap


# ----------------------------------------------------------------------------
if __name__ == "__main__":
    cfg = dict(
        filters=8,
        max_filters=32,
        filters_scale=1,
        dilations=(1, 2),
        in_channels=1,
        out_channels=1,
        n_octaves=3,
        bins_per_octave=8,
    )
    B, T = 2, 16
    n_bins = cfg["n_octaves"] * cfg["bins_per_octave"]

    key = jax.random.PRNGKey(0)
    kz, kp = jax.random.split(key)
    # synthetic CQT 'Complex' output (amplitude / phase in the last dim)
    z = jax.random.normal(kz, (B, n_bins, T, 2), jnp.float32)
    params = build_params(kp, cfg)

    latent, fmap = discriminator_cqt_forward(z, params, cfg)
    latent = jax.block_until_ready(latent)
    fmap = [jax.block_until_ready(f) for f in fmap]

    # shape parity with the PyTorch reference module
    assert latent.shape == (B, cfg["out_channels"], T, 6), latent.shape
    assert fmap[0].shape == (B, cfg["filters"], T, n_bins), fmap[0].shape
    assert len(fmap) == 1 + len(cfg["dilations"]) + 1
    assert bool(jnp.all(jnp.isfinite(latent.astype(jnp.float32))))

    # numerical parity against a pure-XLA f32 reference (kernel uses bf16
    # activations/matmuls with f32 accumulation, hence the loose tolerances)
    latent_ref, fmap_ref = _ref_forward(z, params, cfg)
    lat32 = latent.astype(jnp.float32)
    assert bool(jnp.allclose(lat32, latent_ref, rtol=2e-1, atol=1e-1)), \
        float(jnp.max(jnp.abs(lat32 - latent_ref)))
    for f_out, f_ref in zip(fmap, fmap_ref):
        f32 = f_out.astype(jnp.float32)
        assert bool(jnp.allclose(f32, f_ref, rtol=2e-1, atol=1e-1)), \
            float(jnp.max(jnp.abs(f32 - f_ref)))

    print("KERNEL_OK")
</pallas_src>

<mosaic_0001>
module attributes {stable_mosaic.version = 11 : i64} {
  func.func @kernel(%arg0: i32, %arg1: memref<1x24x2x16xbf16, #tpu.memory_space<vmem>>, %arg2: memref<3x3x2x18xbf16, #tpu.memory_space<vmem>>, %arg3: memref<3x2x1xf32, #tpu.memory_space<vmem>>, %arg4: memref<3x8x18xbf16, #tpu.memory_space<vmem>>, %arg5: memref<8x1xf32, #tpu.memory_space<vmem>>, %arg6: memref<3x8x72xbf16, #tpu.memory_space<vmem>>, %arg7: memref<8x1xf32, #tpu.memory_space<vmem>>, %arg8: memref<3x8x72xbf16, #tpu.memory_space<vmem>>, %arg9: memref<8x1xf32, #tpu.memory_space<vmem>>, %arg10: memref<3x8x24xbf16, #tpu.memory_space<vmem>>, %arg11: memref<8x1xf32, #tpu.memory_space<vmem>>, %arg12: memref<3x1x24xbf16, #tpu.memory_space<vmem>>, %arg13: memref<1x1xf32, #tpu.memory_space<vmem>>, %arg14: memref<1x24x8x16xbf16, #tpu.memory_space<vmem>>, %arg15: memref<1x12x8x16xbf16, #tpu.memory_space<vmem>>, %arg16: memref<1x6x8x16xbf16, #tpu.memory_space<vmem>>, %arg17: memref<1x6x8x16xbf16, #tpu.memory_space<vmem>>, %arg18: memref<1x6x1x16xbf16, #tpu.memory_space<vmem>>, %arg19: memref<32x8x20xbf16, #tpu.memory_space<vmem>>, %arg20: memref<32x8x20xbf16, #tpu.memory_space<vmem>>, %arg21: memref<72x20xbf16, #tpu.memory_space<vmem>>) attributes {dimension_semantics = [#tpu.dimension_semantics<parallel>], iteration_bounds = array<i64: 2>, scalar_prefetch = 0 : i64, scratch_operands = 3 : i64, tpu.core_type = #tpu.core_type<tc>, window_params = [{transform_indices = @transform_0, window_bounds = array<i64: 1, 24, 2, 16>}, {pipeline_mode = #tpu.pipeline_mode<synchronous>, transform_indices = @transform_1, window_bounds = array<i64: 3, 3, 2, 18>}, {pipeline_mode = #tpu.pipeline_mode<synchronous>, transform_indices = @transform_2, window_bounds = array<i64: 3, 2, 1>}, {pipeline_mode = #tpu.pipeline_mode<synchronous>, transform_indices = @transform_3, window_bounds = array<i64: 3, 8, 18>}, {pipeline_mode = #tpu.pipeline_mode<synchronous>, transform_indices = @transform_4, window_bounds = array<i64: 8, 1>}, {pipeline_mode = #tpu.pipeline_mode<synchronous>, transform_indices = @transform_5, window_bounds = array<i64: 3, 8, 72>}, {pipeline_mode = #tpu.pipeline_mode<synchronous>, transform_indices = @transform_6, window_bounds = array<i64: 8, 1>}, {pipeline_mode = #tpu.pipeline_mode<synchronous>, transform_indices = @transform_7, window_bounds = array<i64: 3, 8, 72>}, {pipeline_mode = #tpu.pipeline_mode<synchronous>, transform_indices = @transform_8, window_bounds = array<i64: 8, 1>}, {pipeline_mode = #tpu.pipeline_mode<synchronous>, transform_indices = @transform_9, window_bounds = array<i64: 3, 8, 24>}, {pipeline_mode = #tpu.pipeline_mode<synchronous>, transform_indices = @transform_10, window_bounds = array<i64: 8, 1>}, {pipeline_mode = #tpu.pipeline_mode<synchronous>, transform_indices = @transform_11, window_bounds = array<i64: 3, 1, 24>}, {pipeline_mode = #tpu.pipeline_mode<synchronous>, transform_indices = @transform_12, window_bounds = array<i64: 1, 1>}, {transform_indices = @transform_13, window_bounds = array<i64: 1, 24, 8, 16>}, {transform_indices = @transform_14, window_bounds = array<i64: 1, 12, 8, 16>}, {transform_indices = @transform_15, window_bounds = array<i64: 1, 6, 8, 16>}, {transform_indices = @transform_16, window_bounds = array<i64: 1, 6, 8, 16>}, {transform_indices = @transform_17, window_bounds = array<i64: 1, 6, 1, 16>}]} {
    %cst = arith.constant 0.000000e+00 : bf16
    %0 = vector.broadcast %cst : bf16 to vector<4x2x18xbf16>
    %c0 = arith.constant 0 : index
    %c0_0 = arith.constant 0 : index
    %c0_1 = arith.constant 0 : index
    %1 = vector.load %arg20[%c0, %c0_0, %c0_1] : memref<32x8x20xbf16, #tpu.memory_space<vmem>>, vector<4x2x18xbf16>
    tpu.vector_store %arg20[%c0, %c0_0, %c0_1], %0 {strides = array<i32>} : memref<32x8x20xbf16, #tpu.memory_space<vmem>>, vector<4x2x18xbf16>,
    %c12 = arith.constant 12 : index
    %c0_2 = arith.constant 0 : index
    %c0_3 = arith.constant 0 : index
    %2 = vector.load %arg20[%c12, %c0_2, %c0_3] : memref<32x8x20xbf16, #tpu.memory_space<vmem>>, vector<4x2x18xbf16>
    tpu.vector_store %arg20[%c12, %c0_2, %c0_3], %0 {strides = array<i32>} : memref<32x8x20xbf16, #tpu.memory_space<vmem>>, vector<4x2x18xbf16>,
    %cst_4 = arith.constant 0.000000e+00 : bf16
    %3 = vector.broadcast %cst_4 : bf16 to vector<8x2x1xbf16>
    %c4 = arith.constant 4 : index
    %c0_5 = arith.constant 0 : index
    %c0_6 = arith.constant 0 : index
    %4 = vector.load %arg20[%c4, %c0_5, %c0_6] : memref<32x8x20xbf16, #tpu.memory_space<vmem>>, vector<8x2x1xbf16>
    tpu.vector_store %arg20[%c4, %c0_5, %c0_6], %3 {strides = array<i32>} : memref<32x8x20xbf16, #tpu.memory_space<vmem>>, vector<8x2x1xbf16>,
    %c4_7 = arith.constant 4 : index
    %c0_8 = arith.constant 0 : index
    %c17 = arith.constant 17 : index
    %5 = vector.load %arg20[%c4_7, %c0_8, %c17] : memref<32x8x20xbf16, #tpu.memory_space<vmem>>, vector<8x2x1xbf16>
    tpu.vector_store %arg20[%c4_7, %c0_8, %c17], %3 {strides = array<i32>} : memref<32x8x20xbf16, #tpu.memory_space<vmem>>, vector<8x2x1xbf16>,
    %cst_9 = arith.constant 0.000000e+00 : bf16
    %6 = vector.broadcast %cst_9 : bf16 to vector<4x2x18xbf16>
    %c0_10 = arith.constant 0 : index
    %c0_11 = arith.constant 0 : index
    %c0_12 = arith.constant 0 : index
    %7 = vector.load %arg19[%c0_10, %c0_11, %c0_12] : memref<32x8x20xbf16, #tpu.memory_space<vmem>>, vector<4x2x18xbf16>
    tpu.vector_store %arg19[%c0_10, %c0_11, %c0_12], %6 {strides = array<i32>} : memref<32x8x20xbf16, #tpu.memory_space<vmem>>, vector<4x2x18xbf16>,
    %c28 = arith.constant 28 : index
    %c0_13 = arith.constant 0 : index
    %c0_14 = arith.constant 0 : index
    %8 = vector.load %arg19[%c28, %c0_13, %c0_14] : memref<32x8x20xbf16, #tpu.memory_space<vmem>>, vector<4x2x18xbf16>
    tpu.vector_store %arg19[%c28, %c0_13, %c0_14], %6 {strides = array<i32>} : memref<32x8x20xbf16, #tpu.memory_space<vmem>>, vector<4x2x18xbf16>,
    %cst_15 = arith.constant 0.000000e+00 : bf16
    %9 = vector.broadcast %cst_15 : bf16 to vector<24x2x1xbf16>
    %c4_16 = arith.constant 4 : index
    %c0_17 = arith.constant 0 : index
    %c0_18 = arith.constant 0 : index
    %10 = vector.load %arg19[%c4_16, %c0_17, %c0_18] : memref<32x8x20xbf16, #tpu.memory_space<vmem>>, vector<24x2x1xbf16>
    tpu.vector_store %arg19[%c4_16, %c0_17, %c0_18], %9 {strides = array<i32>} : memref<32x8x20xbf16, #tpu.memory_space<vmem>>, vector<24x2x1xbf16>,
    %c4_19 = arith.constant 4 : index
    %c0_20 = arith.constant 0 : index
    %c17_21 = arith.constant 17 : index
    %11 = vector.load %arg19[%c4_19, %c0_20, %c17_21] : memref<32x8x20xbf16, #tpu.memory_space<vmem>>, vector<24x2x1xbf16>
    tpu.vector_store %arg19[%c4_19, %c0_20, %c17_21], %9 {strides = array<i32>} : memref<32x8x20xbf16, #tpu.memory_space<vmem>>, vector<24x2x1xbf16>,
    %c0_22 = arith.constant 0 : index
    %c0_23 = arith.constant 0 : index
    %c0_24 = arith.constant 0 : index
    %c0_25 = arith.constant 0 : index
    %12 = vector.load %arg1[%c0_22, %c0_23, %c0_24, %c0_25] : memref<1x24x2x16xbf16, #tpu.memory_space<vmem>>, vector<1x8x2x16xbf16>
    %13 = vector.shape_cast %12 : vector<1x8x2x16xbf16> to vector<8x2x16xbf16>
    %c4_26 = arith.constant 4 : index
    %c0_27 = arith.constant 0 : index
    %c1 = arith.constant 1 : index
    %14 = vector.load %arg20[%c4_26, %c0_27, %c1] : memref<32x8x20xbf16, #tpu.memory_space<vmem>>, vector<8x2x16xbf16>
    tpu.vector_store %arg20[%c4_26, %c0_27, %c1], %13 {strides = array<i32>} : memref<32x8x20xbf16, #tpu.memory_space<vmem>>, vector<8x2x16xbf16>,
    %c0_28 = arith.constant 0 : index
    %c0_29 = arith.constant 0 : index
    %c0_30 = arith.constant 0 : index
    %c0_31 = arith.constant 0 : index
    %15 = vector.load %arg2[%c0_28, %c0_29, %c0_30, %c0_31] : memref<3x3x2x18xbf16, #tpu.memory_space<vmem>>, vector<1x3x2x18xbf16>
    %16 = vector.shape_cast %15 : vector<1x3x2x18xbf16> to vector<3x2x18xbf16>
    %c0_32 = arith.constant 0 : index
    %c0_33 = arith.constant 0 : index
    %c0_34 = arith.constant 0 : index
    %17 = vector.load %arg3[%c0_32, %c0_33, %c0_34] : memref<3x2x1xf32, #tpu.memory_space<vmem>>, vector<1x2x1xf32>
    %18 = vector.shape_cast %17 : vector<1x2x1xf32> to vector<2x1xf32>
    %19 = vector.extract_strided_slice %16 {offsets = [0, 0, 0], sizes = [1, 2, 18], strides = [1, 1, 1]} : vector<3x2x18xbf16> to vector<1x2x18xbf16>
    %20 = vector.shape_cast %19 : vector<1x2x18xbf16> to vector<2x18xbf16>
    %21 = vector.extract_strided_slice %16 {offsets = [1, 0, 0], sizes = [1, 2, 18], strides = [1, 1, 1]} : vector<3x2x18xbf16> to vector<1x2x18xbf16>
    %22 = vector.shape_cast %21 : vector<1x2x18xbf16> to vector<2x18xbf16>
    %23 = vector.extract_strided_slice %16 {offsets = [2, 0, 0], sizes = [1, 2, 18], strides = [1, 1, 1]} : vector<3x2x18xbf16> to vector<1x2x18xbf16>
    %24 = vector.shape_cast %23 : vector<1x2x18xbf16> to vector<2x18xbf16>
    %c0_i32 = arith.constant 0 : i32
    %c8_i32 = arith.constant 8 : i32
    %25 = arith.addi %c0_i32, %c8_i32 : i32
    %c1_i32 = arith.constant 1 : i32
    scf.for %arg22 = %c0_i32 to %25 step %c1_i32  : i32 {
      %c1_i32_165 = arith.constant 1 : i32
      %123 = arith.muli %arg22, %c1_i32_165 : i32
      %c0_i32_166 = arith.constant 0 : i32
      %124 = arith.addi %123, %c0_i32_166 : i32
      %125 = arith.index_cast %124 : i32 to index
      %c0_167 = arith.constant 0 : index
      %c0_168 = arith.constant 0 : index
      %126 = vector.load %arg20[%125, %c0_167, %c0_168] : memref<32x8x20xbf16, #tpu.memory_space<vmem>>, vector<1x2x18xbf16>
      %127 = vector.shape_cast %126 : vector<1x2x18xbf16> to vector<2x18xbf16>
      %c0_169 = arith.constant 0 : index
      %c0_170 = arith.constant 0 : index
      %128 = vector.load %arg21[%c0_169, %c0_170] : memref<72x20xbf16, #tpu.memory_space<vmem>>, vector<2x18xbf16>
      tpu.vector_store %arg21[%c0_169, %c0_170], %127 {strides = array<i32>} : memref<72x20xbf16, #tpu.memory_space<vmem>>, vector<2x18xbf16>,
      %c1_i32_171 = arith.constant 1 : i32
      %129 = arith.muli %arg22, %c1_i32_171 : i32
      %c1_i32_172 = arith.constant 1 : i32
      %130 = arith.addi %129, %c1_i32_172 : i32
      %131 = arith.index_cast %130 : i32 to index
      %c0_173 = arith.constant 0 : index
      %c0_174 = arith.constant 0 : index
      %132 = vector.load %arg20[%131, %c0_173, %c0_174] : memref<32x8x20xbf16, #tpu.memory_space<vmem>>, vector<1x2x18xbf16>
      %133 = vector.shape_cast %132 : vector<1x2x18xbf16> to vector<2x18xbf16>
      %c2_175 = arith.constant 2 : index
      %c0_176 = arith.constant 0 : index
      %134 = vector.load %arg21[%c2_175, %c0_176] : memref<72x20xbf16, #tpu.memory_space<vmem>>, vector<2x18xbf16>
      tpu.vector_store %arg21[%c2_175, %c0_176], %133 {strides = array<i32>} : memref<72x20xbf16, #tpu.memory_space<vmem>>, vector<2x18xbf16>,
      %c1_i32_177 = arith.constant 1 : i32
      %135 = arith.muli %arg22, %c1_i32_177 : i32
      %c2_i32 = arith.constant 2 : i32
      %136 = arith.addi %135, %c2_i32 : i32
      %137 = arith.index_cast %136 : i32 to index
      %c0_178 = arith.constant 0 : index
      %c0_179 = arith.constant 0 : index
      %138 = vector.load %arg20[%137, %c0_178, %c0_179] : memref<32x8x20xbf16, #tpu.memory_space<vmem>>, vector<1x2x18xbf16>
      %139 = vector.shape_cast %138 : vector<1x2x18xbf16> to vector<2x18xbf16>
      %c4_180 = arith.constant 4 : index
      %c0_181 = arith.constant 0 : index
      %140 = vector.load %arg21[%c4_180, %c0_181] : memref<72x20xbf16, #tpu.memory_space<vmem>>, vector<2x18xbf16>
      tpu.vector_store %arg21[%c4_180, %c0_181], %139 {strides = array<i32>} : memref<72x20xbf16, #tpu.memory_space<vmem>>, vector<2x18xbf16>,
      %c1_i32_182 = arith.constant 1 : i32
      %141 = arith.muli %arg22, %c1_i32_182 : i32
      %c3_i32 = arith.constant 3 : i32
      %142 = arith.addi %141, %c3_i32 : i32
      %143 = arith.index_cast %142 : i32 to index
      %c0_183 = arith.constant 0 : index
      %c0_184 = arith.constant 0 : index
      %144 = vector.load %arg20[%143, %c0_183, %c0_184] : memref<32x8x20xbf16, #tpu.memory_space<vmem>>, vector<1x2x18xbf16>
      %145 = vector.shape_cast %144 : vector<1x2x18xbf16> to vector<2x18xbf16>
      %c6 = arith.constant 6 : index
      %c0_185 = arith.constant 0 : index
      %146 = vector.load %arg21[%c6, %c0_185] : memref<72x20xbf16, #tpu.memory_space<vmem>>, vector<2x18xbf16>
      tpu.vector_store %arg21[%c6, %c0_185], %145 {strides = array<i32>} : memref<72x20xbf16, #tpu.memory_space<vmem>>, vector<2x18xbf16>,
      %c1_i32_186 = arith.constant 1 : i32
      %147 = arith.muli %arg22, %c1_i32_186 : i32
      %c4_i32 = arith.constant 4 : i32
      %148 = arith.addi %147, %c4_i32 : i32
      %149 = arith.index_cast %148 : i32 to index
      %c0_187 = arith.constant 0 : index
      %c0_188 = arith.constant 0 : index
      %150 = vector.load %arg20[%149, %c0_187, %c0_188] : memref<32x8x20xbf16, #tpu.memory_space<vmem>>, vector<1x2x18xbf16>
      %151 = vector.shape_cast %150 : vector<1x2x18xbf16> to vector<2x18xbf16>
      %c8_189 = arith.constant 8 : index
      %c0_190 = arith.constant 0 : index
      %152 = vector.load %arg21[%c8_189, %c0_190] : memref<72x20xbf16, #tpu.memory_space<vmem>>, vector<2x18xbf16>
      tpu.vector_store %arg21[%c8_189, %c0_190], %151 {strides = array<i32>} : memref<72x20xbf16, #tpu.memory_space<vmem>>, vector<2x18xbf16>,
      %c1_i32_191 = arith.constant 1 : i32
      %153 = arith.muli %arg22, %c1_i32_191 : i32
      %c5_i32 = arith.constant 5 : i32
      %154 = arith.addi %153, %c5_i32 : i32
      %155 = arith.index_cast %154 : i32 to index
      %c0_192 = arith.constant 0 : index
      %c0_193 = arith.constant 0 : index
      %156 = vector.load %arg20[%155, %c0_192, %c0_193] : memref<32x8x20xbf16, #tpu.memory_space<vmem>>, vector<1x2x18xbf16>
      %157 = vector.shape_cast %156 : vector<1x2x18xbf16> to vector<2x18xbf16>
      %c10 = arith.constant 10 : index
      %c0_194 = arith.constant 0 : index
      %158 = vector.load %arg21[%c10, %c0_194] : memref<72x20xbf16, #tpu.memory_space<vmem>>, vector<2x18xbf16>
      tpu.vector_store %arg21[%c10, %c0_194], %157 {strides = array<i32>} : memref<72x20xbf16, #tpu.memory_space<vmem>>, vector<2x18xbf16>,
      %c1_i32_195 = arith.constant 1 : i32
      %159 = arith.muli %arg22, %c1_i32_195 : i32
      %c6_i32_196 = arith.constant 6 : i32
      %160 = arith.addi %159, %c6_i32_196 : i32
      %161 = arith.index_cast %160 : i32 to index
      %c0_197 = arith.constant 0 : index
      %c0_198 = arith.constant 0 : index
      %162 = vector.load %arg20[%161, %c0_197, %c0_198] : memref<32x8x20xbf16, #tpu.memory_space<vmem>>, vector<1x2x18xbf16>
      %163 = vector.shape_cast %162 : vector<1x2x18xbf16> to vector<2x18xbf16>
      %c12_199 = arith.constant 12 : index
      %c0_200 = arith.constant 0 : index
      %164 = vector.load %arg21[%c12_199, %c0_200] : memref<72x20xbf16, #tpu.memory_space<vmem>>, vector<2x18xbf16>
      tpu.vector_store %arg21[%c12_199, %c0_200], %163 {strides = array<i32>} : memref<72x20xbf16, #tpu.memory_space<vmem>>, vector<2x18xbf16>,
      %c1_i32_201 = arith.constant 1 : i32
      %165 = arith.muli %arg22, %c1_i32_201 : i32
      %c7_i32 = arith.constant 7 : i32
      %166 = arith.addi %165, %c7_i32 : i32
      %167 = arith.index_cast %166 : i32 to index
      %c0_202 = arith.constant 0 : index
      %c0_203 = arith.constant 0 : index
      %168 = vector.load %arg20[%167, %c0_202, %c0_203] : memref<32x8x20xbf16, #tpu.memory_space<vmem>>, vector<1x2x18xbf16>
      %169 = vector.shape_cast %168 : vector<1x2x18xbf16> to vector<2x18xbf16>
      %c14 = arith.constant 14 : index
      %c0_204 = arith.constant 0 : index
      %170 = vector.load %arg21[%c14, %c0_204] : memref<72x20xbf16, #tpu.memory_space<vmem>>, vector<2x18xbf16>
      tpu.vector_store %arg21[%c14, %c0_204], %169 {strides = array<i32>} : memref<72x20xbf16, #tpu.memory_space<vmem>>, vector<2x18xbf16>,
      %c1_i32_205 = arith.constant 1 : i32
      %171 = arith.muli %arg22, %c1_i32_205 : i32
      %c8_i32_206 = arith.constant 8 : i32
      %172 = arith.addi %171, %c8_i32_206 : i32
      %173 = arith.index_cast %172 : i32 to index
      %c0_207 = arith.constant 0 : index
      %c0_208 = arith.constant 0 : index
      %174 = vector.load %arg20[%173, %c0_207, %c0_208] : memref<32x8x20xbf16, #tpu.memory_space<vmem>>, vector<1x2x18xbf16>
      %175 = vector.shape_cast %174 : vector<1x2x18xbf16> to vector<2x18xbf16>
      %c16_209 = arith.constant 16 : index
      %c0_210 = arith.constant 0 : index
      %176 = vector.load %arg21[%c16_209, %c0_210] : memref<72x20xbf16, #tpu.memory_space<vmem>>, vector<2x18xbf16>
      tpu.vector_store %arg21[%c16_209, %c0_210], %175 {strides = array<i32>} : memref<72x20xbf16, #tpu.memory_space<vmem>>, vector<2x18xbf16>,
      %c0_211 = arith.constant 0 : index
      %c0_212 = arith.constant 0 : index
      %177 = vector.load %arg21[%c0_211, %c0_212] : memref<72x20xbf16, #tpu.memory_space<vmem>>, vector<18x16xbf16>
      %cst_213 = arith.constant dense<0.000000e+00> : vector<2x16xf32>
      %178 = tpu.matmul %20, %177, %cst_213 {dimension_numbers = #tpu.dot_dimension_numbers<[1], [0], [0], [1], [0, 0, 1, 1], [], []>} : vector<2x18xbf16>, vector<18x16xbf16>, vector<2x16xf32> -> vector<2x16xf32>
      %c0_214 = arith.constant 0 : index
      %c1_215 = arith.constant 1 : index
      %179 = vector.load %arg21[%c0_214, %c1_215] : memref<72x20xbf16, #tpu.memory_space<vmem>>, vector<18x16xbf16>
      %cst_216 = arith.constant dense<0.000000e+00> : vector<2x16xf32>
      %180 = tpu.matmul %22, %179, %cst_216 {dimension_numbers = #tpu.dot_dimension_numbers<[1], [0], [0], [1], [0, 0, 1, 1], [], []>} : vector<2x18xbf16>, vector<18x16xbf16>, vector<2x16xf32> -> vector<2x16xf32>
      %181 = arith.addf %178, %180 : vector<2x16xf32>
      %c0_217 = arith.constant 0 : index
      %c2_218 = arith.constant 2 : index
      %182 = vector.load %arg21[%c0_217, %c2_218] : memref<72x20xbf16, #tpu.memory_space<vmem>>, vector<18x16xbf16>
      %cst_219 = arith.constant dense<0.000000e+00> : vector<2x16xf32>
      %183 = tpu.matmul %24, %182, %cst_219 {dimension_numbers = #tpu.dot_dimension_numbers<[1], [0], [0], [1], [0, 0, 1, 1], [], []>} : vector<2x18xbf16>, vector<18x16xbf16>, vector<2x16xf32> -> vector<2x16xf32>
      %184 = arith.addf %181, %183 : vector<2x16xf32>
      %185 = vector.broadcast %18 : vector<2x1xf32> to vector<2x16xf32>
      %186 = arith.addf %184, %185 : vector<2x16xf32>
      %187 = arith.truncf %186 : vector<2x16xf32> to vector<2x16xbf16>
      %c4_i32_220 = arith.constant 4 : i32
      %188 = arith.addi %c4_i32_220, %arg22 : i32
      %189 = arith.index_cast %188 : i32 to index
      %c0_221 = arith.constant 0 : index
      %c1_222 = arith.constant 1 : index
      %190 = vector.load %arg19[%189, %c0_221, %c1_222] : memref<32x8x20xbf16, #tpu.memory_space<vmem>>, vector<1x2x16xbf16>
      %191 = vector.shape_cast %190 : vector<1x2x16xbf16> to vector<2x16xbf16>
      %192 = vector.shape_cast %187 : vector<2x16xbf16> to vector<1x2x16xbf16>
      tpu.vector_store %arg19[%189, %c0_221, %c1_222], %192 {strides = array<i32>} : memref<32x8x20xbf16, #tpu.memory_space<vmem>>, vector<1x2x16xbf16>,
    }
    %c8_i32_35 = arith.constant 8 : i32
    %c0_36 = arith.constant 0 : index
    %c8 = arith.constant 8 : index
    %c0_37 = arith.constant 0 : index
    %c0_38 = arith.constant 0 : index
    %26 = vector.load %arg1[%c0_36, %c8, %c0_37, %c0_38] : memref<1x24x2x16xbf16, #tpu.memory_space<vmem>>, vector<1x8x2x16xbf16>
    %27 = vector.shape_cast %26 : vector<1x8x2x16xbf16> to vector<8x2x16xbf16>
    %c4_39 = arith.constant 4 : index
    %c0_40 = arith.constant 0 : index
    %c1_41 = arith.constant 1 : index
    %28 = vector.load %arg20[%c4_39, %c0_40, %c1_41] : memref<32x8x20xbf16, #tpu.memory_space<vmem>>, vector<8x2x16xbf16>
    tpu.vector_store %arg20[%c4_39, %c0_40, %c1_41], %27 {strides = array<i32>} : memref<32x8x20xbf16, #tpu.memory_space<vmem>>, vector<8x2x16xbf16>,
    %c1_42 = arith.constant 1 : index
    %c0_43 = arith.constant 0 : index
    %c0_44 = arith.constant 0 : index
    %c0_45 = arith.constant 0 : index
    %29 = vector.load %arg2[%c1_42, %c0_43, %c0_44, %c0_45] : memref<3x3x2x18xbf16, #tpu.memory_space<vmem>>, vector<1x3x2x18xbf16>
    %30 = vector.shape_cast %29 : vector<1x3x2x18xbf16> to vector<3x2x18xbf16>
    %c1_46 = arith.constant 1 : index
    %c0_47 = arith.constant 0 : index
    %c0_48 = arith.constant 0 : index
    %31 = vector.load %arg3[%c1_46, %c0_47, %c0_48] : memref<3x2x1xf32, #tpu.memory_space<vmem>>, vector<1x2x1xf32>
    %32 = vector.shape_cast %31 : vector<1x2x1xf32> to vector<2x1xf32>
    %33 = vector.extract_strided_slice %30 {offsets = [0, 0, 0], sizes = [1, 2, 18], strides = [1, 1, 1]} : vector<3x2x18xbf16> to vector<1x2x18xbf16>
    %34 = vector.shape_cast %33 : vector<1x2x18xbf16> to vector<2x18xbf16>
    %35 = vector.extract_strided_slice %30 {offsets = [1, 0, 0], sizes = [1, 2, 18], strides = [1, 1, 1]} : vector<3x2x18xbf16> to vector<1x2x18xbf16>
    %36 = vector.shape_cast %35 : vector<1x2x18xbf16> to vector<2x18xbf16>
    %37 = vector.extract_strided_slice %30 {offsets = [2, 0, 0], sizes = [1, 2, 18], strides = [1, 1, 1]} : vector<3x2x18xbf16> to vector<1x2x18xbf16>
    %38 = vector.shape_cast %37 : vector<1x2x18xbf16> to vector<2x18xbf16>
    %c0_i32_49 = arith.constant 0 : i32
    %c8_i32_50 = arith.constant 8 : i32
    %39 = arith.addi %c0_i32_49, %c8_i32_50 : i32
    %c1_i32_51 = arith.constant 1 : i32
    scf.for %arg22 = %c0_i32_49 to %39 step %c1_i32_51  : i32 {
      %c1_i32_165 = arith.constant 1 : i32
      %123 = arith.muli %arg22, %c1_i32_165 : i32
      %c0_i32_166 = arith.constant 0 : i32
      %124 = arith.addi %123, %c0_i32_166 : i32
      %125 = arith.index_cast %124 : i32 to index
      %c0_167 = arith.constant 0 : index
      %c0_168 = arith.constant 0 : index
      %126 = vector.load %arg20[%125, %c0_167, %c0_168] : memref<32x8x20xbf16, #tpu.memory_space<vmem>>, vector<1x2x18xbf16>
      %127 = vector.shape_cast %126 : vector<1x2x18xbf16> to vector<2x18xbf16>
      %c0_169 = arith.constant 0 : index
      %c0_170 = arith.constant 0 : index
      %128 = vector.load %arg21[%c0_169, %c0_170] : memref<72x20xbf16, #tpu.memory_space<vmem>>, vector<2x18xbf16>
      tpu.vector_store %arg21[%c0_169, %c0_170], %127 {strides = array<i32>} : memref<72x20xbf16, #tpu.memory_space<vmem>>, vector<2x18xbf16>,
      %c1_i32_171 = arith.constant 1 : i32
      %129 = arith.muli %arg22, %c1_i32_171 : i32
      %c1_i32_172 = arith.constant 1 : i32
      %130 = arith.addi %129, %c1_i32_172 : i32
      %131 = arith.index_cast %130 : i32 to index
      %c0_173 = arith.constant 0 : index
      %c0_174 = arith.constant 0 : index
      %132 = vector.load %arg20[%131, %c0_173, %c0_174] : memref<32x8x20xbf16, #tpu.memory_space<vmem>>, vector<1x2x18xbf16>
      %133 = vector.shape_cast %132 : vector<1x2x18xbf16> to vector<2x18xbf16>
      %c2_175 = arith.constant 2 : index
      %c0_176 = arith.constant 0 : index
      %134 = vector.load %arg21[%c2_175, %c0_176] : memref<72x20xbf16, #tpu.memory_space<vmem>>, vector<2x18xbf16>
      tpu.vector_store %arg21[%c2_175, %c0_176], %133 {strides = array<i32>} : memref<72x20xbf16, #tpu.memory_space<vmem>>, vector<2x18xbf16>,
      %c1_i32_177 = arith.constant 1 : i32
      %135 = arith.muli %arg22, %c1_i32_177 : i32
      %c2_i32 = arith.constant 2 : i32
      %136 = arith.addi %135, %c2_i32 : i32
      %137 = arith.index_cast %136 : i32 to index
      %c0_178 = arith.constant 0 : index
      %c0_179 = arith.constant 0 : index
      %138 = vector.load %arg20[%137, %c0_178, %c0_179] : memref<32x8x20xbf16, #tpu.memory_space<vmem>>, vector<1x2x18xbf16>
      %139 = vector.shape_cast %138 : vector<1x2x18xbf16> to vector<2x18xbf16>
      %c4_180 = arith.constant 4 : index
      %c0_181 = arith.constant 0 : index
      %140 = vector.load %arg21[%c4_180, %c0_181] : memref<72x20xbf16, #tpu.memory_space<vmem>>, vector<2x18xbf16>
      tpu.vector_store %arg21[%c4_180, %c0_181], %139 {strides = array<i32>} : memref<72x20xbf16, #tpu.memory_space<vmem>>, vector<2x18xbf16>,
      %c1_i32_182 = arith.constant 1 : i32
      %141 = arith.muli %arg22, %c1_i32_182 : i32
      %c3_i32 = arith.constant 3 : i32
      %142 = arith.addi %141, %c3_i32 : i32
      %143 = arith.index_cast %142 : i32 to index
      %c0_183 = arith.constant 0 : index
      %c0_184 = arith.constant 0 : index
      %144 = vector.load %arg20[%143, %c0_183, %c0_184] : memref<32x8x20xbf16, #tpu.memory_space<vmem>>, vector<1x2x18xbf16>
      %145 = vector.shape_cast %144 : vector<1x2x18xbf16> to vector<2x18xbf16>
      %c6 = arith.constant 6 : index
      %c0_185 = arith.constant 0 : index
      %146 = vector.load %arg21[%c6, %c0_185] : memref<72x20xbf16, #tpu.memory_space<vmem>>, vector<2x18xbf16>
      tpu.vector_store %arg21[%c6, %c0_185], %145 {strides = array<i32>} : memref<72x20xbf16, #tpu.memory_space<vmem>>, vector<2x18xbf16>,
      %c1_i32_186 = arith.constant 1 : i32
      %147 = arith.muli %arg22, %c1_i32_186 : i32
      %c4_i32 = arith.constant 4 : i32
      %148 = arith.addi %147, %c4_i32 : i32
      %149 = arith.index_cast %148 : i32 to index
      %c0_187 = arith.constant 0 : index
      %c0_188 = arith.constant 0 : index
      %150 = vector.load %arg20[%149, %c0_187, %c0_188] : memref<32x8x20xbf16, #tpu.memory_space<vmem>>, vector<1x2x18xbf16>
      %151 = vector.shape_cast %150 : vector<1x2x18xbf16> to vector<2x18xbf16>
      %c8_189 = arith.constant 8 : index
      %c0_190 = arith.constant 0 : index
      %152 = vector.load %arg21[%c8_189, %c0_190] : memref<72x20xbf16, #tpu.memory_space<vmem>>, vector<2x18xbf16>
      tpu.vector_store %arg21[%c8_189, %c0_190], %151 {strides = array<i32>} : memref<72x20xbf16, #tpu.memory_space<vmem>>, vector<2x18xbf16>,
      %c1_i32_191 = arith.constant 1 : i32
      %153 = arith.muli %arg22, %c1_i32_191 : i32
      %c5_i32 = arith.constant 5 : i32
      %154 = arith.addi %153, %c5_i32 : i32
      %155 = arith.index_cast %154 : i32 to index
      %c0_192 = arith.constant 0 : index
      %c0_193 = arith.constant 0 : index
      %156 = vector.load %arg20[%155, %c0_192, %c0_193] : memref<32x8x20xbf16, #tpu.memory_space<vmem>>, vector<1x2x18xbf16>
      %157 = vector.shape_cast %156 : vector<1x2x18xbf16> to vector<2x18xbf16>
      %c10 = arith.constant 10 : index
      %c0_194 = arith.constant 0 : index
      %158 = vector.load %arg21[%c10, %c0_194] : memref<72x20xbf16, #tpu.memory_space<vmem>>, vector<2x18xbf16>
      tpu.vector_store %arg21[%c10, %c0_194], %157 {strides = array<i32>} : memref<72x20xbf16, #tpu.memory_space<vmem>>, vector<2x18xbf16>,
      %c1_i32_195 = arith.constant 1 : i32
      %159 = arith.muli %arg22, %c1_i32_195 : i32
      %c6_i32_196 = arith.constant 6 : i32
      %160 = arith.addi %159, %c6_i32_196 : i32
      %161 = arith.index_cast %160 : i32 to index
      %c0_197 = arith.constant 0 : index
      %c0_198 = arith.constant 0 : index
      %162 = vector.load %arg20[%161, %c0_197, %c0_198] : memref<32x8x20xbf16, #tpu.memory_space<vmem>>, vector<1x2x18xbf16>
      %163 = vector.shape_cast %162 : vector<1x2x18xbf16> to vector<2x18xbf16>
      %c12_199 = arith.constant 12 : index
      %c0_200 = arith.constant 0 : index
      %164 = vector.load %arg21[%c12_199, %c0_200] : memref<72x20xbf16, #tpu.memory_space<vmem>>, vector<2x18xbf16>
      tpu.vector_store %arg21[%c12_199, %c0_200], %163 {strides = array<i32>} : memref<72x20xbf16, #tpu.memory_space<vmem>>, vector<2x18xbf16>,
      %c1_i32_201 = arith.constant 1 : i32
      %165 = arith.muli %arg22, %c1_i32_201 : i32
      %c7_i32 = arith.constant 7 : i32
      %166 = arith.addi %165, %c7_i32 : i32
      %167 = arith.index_cast %166 : i32 to index
      %c0_202 = arith.constant 0 : index
      %c0_203 = arith.constant 0 : index
      %168 = vector.load %arg20[%167, %c0_202, %c0_203] : memref<32x8x20xbf16, #tpu.memory_space<vmem>>, vector<1x2x18xbf16>
      %169 = vector.shape_cast %168 : vector<1x2x18xbf16> to vector<2x18xbf16>
      %c14 = arith.constant 14 : index
      %c0_204 = arith.constant 0 : index
      %170 = vector.load %arg21[%c14, %c0_204] : memref<72x20xbf16, #tpu.memory_space<vmem>>, vector<2x18xbf16>
      tpu.vector_store %arg21[%c14, %c0_204], %169 {strides = array<i32>} : memref<72x20xbf16, #tpu.memory_space<vmem>>, vector<2x18xbf16>,
      %c1_i32_205 = arith.constant 1 : i32
      %171 = arith.muli %arg22, %c1_i32_205 : i32
      %c8_i32_206 = arith.constant 8 : i32
      %172 = arith.addi %171, %c8_i32_206 : i32
      %173 = arith.index_cast %172 : i32 to index
      %c0_207 = arith.constant 0 : index
      %c0_208 = arith.constant 0 : index
      %174 = vector.load %arg20[%173, %c0_207, %c0_208] : memref<32x8x20xbf16, #tpu.memory_space<vmem>>, vector<1x2x18xbf16>
      %175 = vector.shape_cast %174 : vector<1x2x18xbf16> to vector<2x18xbf16>
      %c16_209 = arith.constant 16 : index
      %c0_210 = arith.constant 0 : index
      %176 = vector.load %arg21[%c16_209, %c0_210] : memref<72x20xbf16, #tpu.memory_space<vmem>>, vector<2x18xbf16>
      tpu.vector_store %arg21[%c16_209, %c0_210], %175 {strides = array<i32>} : memref<72x20xbf16, #tpu.memory_space<vmem>>, vector<2x18xbf16>,
      %c0_211 = arith.constant 0 : index
      %c0_212 = arith.constant 0 : index
      %177 = vector.load %arg21[%c0_211, %c0_212] : memref<72x20xbf16, #tpu.memory_space<vmem>>, vector<18x16xbf16>
      %cst_213 = arith.constant dense<0.000000e+00> : vector<2x16xf32>
      %178 = tpu.matmul %34, %177, %cst_213 {dimension_numbers = #tpu.dot_dimension_numbers<[1], [0], [0], [1], [0, 0, 1, 1], [], []>} : vector<2x18xbf16>, vector<18x16xbf16>, vector<2x16xf32> -> vector<2x16xf32>
      %c0_214 = arith.constant 0 : index
      %c1_215 = arith.constant 1 : index
      %179 = vector.load %arg21[%c0_214, %c1_215] : memref<72x20xbf16, #tpu.memory_space<vmem>>, vector<18x16xbf16>
      %cst_216 = arith.constant dense<0.000000e+00> : vector<2x16xf32>
      %180 = tpu.matmul %36, %179, %cst_216 {dimension_numbers = #tpu.dot_dimension_numbers<[1], [0], [0], [1], [0, 0, 1, 1], [], []>} : vector<2x18xbf16>, vector<18x16xbf16>, vector<2x16xf32> -> vector<2x16xf32>
      %181 = arith.addf %178, %180 : vector<2x16xf32>
      %c0_217 = arith.constant 0 : index
      %c2_218 = arith.constant 2 : index
      %182 = vector.load %arg21[%c0_217, %c2_218] : memref<72x20xbf16, #tpu.memory_space<vmem>>, vector<18x16xbf16>
      %cst_219 = arith.constant dense<0.000000e+00> : vector<2x16xf32>
      %183 = tpu.matmul %38, %182, %cst_219 {dimension_numbers = #tpu.dot_dimension_numbers<[1], [0], [0], [1], [0, 0, 1, 1], [], []>} : vector<2x18xbf16>, vector<18x16xbf16>, vector<2x16xf32> -> vector<2x16xf32>
      %184 = arith.addf %181, %183 : vector<2x16xf32>
      %185 = vector.broadcast %32 : vector<2x1xf32> to vector<2x16xf32>
      %186 = arith.addf %184, %185 : vector<2x16xf32>
      %187 = arith.truncf %186 : vector<2x16xf32> to vector<2x16xbf16>
      %c12_i32_220 = arith.constant 12 : i32
      %188 = arith.addi %c12_i32_220, %arg22 : i32
      %189 = arith.index_cast %188 : i32 to index
      %c0_221 = arith.constant 0 : index
      %c1_222 = arith.constant 1 : index
      %190 = vector.load %arg19[%189, %c0_221, %c1_222] : memref<32x8x20xbf16, #tpu.memory_space<vmem>>, vector<1x2x16xbf16>
      %191 = vector.shape_cast %190 : vector<1x2x16xbf16> to vector<2x16xbf16>
      %192 = vector.shape_cast %187 : vector<2x16xbf16> to vector<1x2x16xbf16>
      tpu.vector_store %arg19[%189, %c0_221, %c1_222], %192 {strides = array<i32>} : memref<32x8x20xbf16, #tpu.memory_space<vmem>>, vector<1x2x16xbf16>,
    }
    %c8_i32_52 = arith.constant 8 : i32
    %c0_53 = arith.constant 0 : index
    %c16 = arith.constant 16 : index
    %c0_54 = arith.constant 0 : index
    %c0_55 = arith.constant 0 : index
    %40 = vector.load %arg1[%c0_53, %c16, %c0_54, %c0_55] : memref<1x24x2x16xbf16, #tpu.memory_space<vmem>>, vector<1x8x2x16xbf16>
    %41 = vector.shape_cast %40 : vector<1x8x2x16xbf16> to vector<8x2x16xbf16>
    %c4_56 = arith.constant 4 : index
    %c0_57 = arith.constant 0 : index
    %c1_58 = arith.constant 1 : index
    %42 = vector.load %arg20[%c4_56, %c0_57, %c1_58] : memref<32x8x20xbf16, #tpu.memory_space<vmem>>, vector<8x2x16xbf16>
    tpu.vector_store %arg20[%c4_56, %c0_57, %c1_58], %41 {strides = array<i32>} : memref<32x8x20xbf16, #tpu.memory_space<vmem>>, vector<8x2x16xbf16>,
    %c2 = arith.constant 2 : index
    %c0_59 = arith.constant 0 : index
    %c0_60 = arith.constant 0 : index
    %c0_61 = arith.constant 0 : index
    %43 = vector.load %arg2[%c2, %c0_59, %c0_60, %c0_61] : memref<3x3x2x18xbf16, #tpu.memory_space<vmem>>, vector<1x3x2x18xbf16>
    %44 = vector.shape_cast %43 : vector<1x3x2x18xbf16> to vector<3x2x18xbf16>
    %c2_62 = arith.constant 2 : index
    %c0_63 = arith.constant 0 : index
    %c0_64 = arith.constant 0 : index
    %45 = vector.load %arg3[%c2_62, %c0_63, %c0_64] : memref<3x2x1xf32, #tpu.memory_space<vmem>>, vector<1x2x1xf32>
    %46 = vector.shape_cast %45 : vector<1x2x1xf32> to vector<2x1xf32>
    %47 = vector.extract_strided_slice %44 {offsets = [0, 0, 0], sizes = [1, 2, 18], strides = [1, 1, 1]} : vector<3x2x18xbf16> to vector<1x2x18xbf16>
    %48 = vector.shape_cast %47 : vector<1x2x18xbf16> to vector<2x18xbf16>
    %49 = vector.extract_strided_slice %44 {offsets = [1, 0, 0], sizes = [1, 2, 18], strides = [1, 1, 1]} : vector<3x2x18xbf16> to vector<1x2x18xbf16>
    %50 = vector.shape_cast %49 : vector<1x2x18xbf16> to vector<2x18xbf16>
    %51 = vector.extract_strided_slice %44 {offsets = [2, 0, 0], sizes = [1, 2, 18], strides = [1, 1, 1]} : vector<3x2x18xbf16> to vector<1x2x18xbf16>
    %52 = vector.shape_cast %51 : vector<1x2x18xbf16> to vector<2x18xbf16>
    %c0_i32_65 = arith.constant 0 : i32
    %c8_i32_66 = arith.constant 8 : i32
    %53 = arith.addi %c0_i32_65, %c8_i32_66 : i32
    %c1_i32_67 = arith.constant 1 : i32
    scf.for %arg22 = %c0_i32_65 to %53 step %c1_i32_67  : i32 {
      %c1_i32_165 = arith.constant 1 : i32
      %123 = arith.muli %arg22, %c1_i32_165 : i32
      %c0_i32_166 = arith.constant 0 : i32
      %124 = arith.addi %123, %c0_i32_166 : i32
      %125 = arith.index_cast %124 : i32 to index
      %c0_167 = arith.constant 0 : index
      %c0_168 = arith.constant 0 : index
      %126 = vector.load %arg20[%125, %c0_167, %c0_168] : memref<32x8x20xbf16, #tpu.memory_space<vmem>>, vector<1x2x18xbf16>
      %127 = vector.shape_cast %126 : vector<1x2x18xbf16> to vector<2x18xbf16>
      %c0_169 = arith.constant 0 : index
      %c0_170 = arith.constant 0 : index
      %128 = vector.load %arg21[%c0_169, %c0_170] : memref<72x20xbf16, #tpu.memory_space<vmem>>, vector<2x18xbf16>
      tpu.vector_store %arg21[%c0_169, %c0_170], %127 {strides = array<i32>} : memref<72x20xbf16, #tpu.memory_space<vmem>>, vector<2x18xbf16>,
      %c1_i32_171 = arith.constant 1 : i32
      %129 = arith.muli %arg22, %c1_i32_171 : i32
      %c1_i32_172 = arith.constant 1 : i32
      %130 = arith.addi %129, %c1_i32_172 : i32
      %131 = arith.index_cast %130 : i32 to index
      %c0_173 = arith.constant 0 : index
      %c0_174 = arith.constant 0 : index
      %132 = vector.load %arg20[%131, %c0_173, %c0_174] : memref<32x8x20xbf16, #tpu.memory_space<vmem>>, vector<1x2x18xbf16>
      %133 = vector.shape_cast %132 : vector<1x2x18xbf16> to vector<2x18xbf16>
      %c2_175 = arith.constant 2 : index
      %c0_176 = arith.constant 0 : index
      %134 = vector.load %arg21[%c2_175, %c0_176] : memref<72x20xbf16, #tpu.memory_space<vmem>>, vector<2x18xbf16>
      tpu.vector_store %arg21[%c2_175, %c0_176], %133 {strides = array<i32>} : memref<72x20xbf16, #tpu.memory_space<vmem>>, vector<2x18xbf16>,
      %c1_i32_177 = arith.constant 1 : i32
      %135 = arith.muli %arg22, %c1_i32_177 : i32
      %c2_i32 = arith.constant 2 : i32
      %136 = arith.addi %135, %c2_i32 : i32
      %137 = arith.index_cast %136 : i32 to index
      %c0_178 = arith.constant 0 : index
      %c0_179 = arith.constant 0 : index
      %138 = vector.load %arg20[%137, %c0_178, %c0_179] : memref<32x8x20xbf16, #tpu.memory_space<vmem>>, vector<1x2x18xbf16>
      %139 = vector.shape_cast %138 : vector<1x2x18xbf16> to vector<2x18xbf16>
      %c4_180 = arith.constant 4 : index
      %c0_181 = arith.constant 0 : index
      %140 = vector.load %arg21[%c4_180, %c0_181] : memref<72x20xbf16, #tpu.memory_space<vmem>>, vector<2x18xbf16>
      tpu.vector_store %arg21[%c4_180, %c0_181], %139 {strides = array<i32>} : memref<72x20xbf16, #tpu.memory_space<vmem>>, vector<2x18xbf16>,
      %c1_i32_182 = arith.constant 1 : i32
      %141 = arith.muli %arg22, %c1_i32_182 : i32
      %c3_i32 = arith.constant 3 : i32
      %142 = arith.addi %141, %c3_i32 : i32
      %143 = arith.index_cast %142 : i32 to index
      %c0_183 = arith.constant 0 : index
      %c0_184 = arith.constant 0 : index
      %144 = vector.load %arg20[%143, %c0_183, %c0_184] : memref<32x8x20xbf16, #tpu.memory_space<vmem>>, vector<1x2x18xbf16>
      %145 = vector.shape_cast %144 : vector<1x2x18xbf16> to vector<2x18xbf16>
      %c6 = arith.constant 6 : index
      %c0_185 = arith.constant 0 : index
      %146 = vector.load %arg21[%c6, %c0_185] : memref<72x20xbf16, #tpu.memory_space<vmem>>, vector<2x18xbf16>
      tpu.vector_store %arg21[%c6, %c0_185], %145 {strides = array<i32>} : memref<72x20xbf16, #tpu.memory_space<vmem>>, vector<2x18xbf16>,
      %c1_i32_186 = arith.constant 1 : i32
      %147 = arith.muli %arg22, %c1_i32_186 : i32
      %c4_i32 = arith.constant 4 : i32
      %148 = arith.addi %147, %c4_i32 : i32
      %149 = arith.index_cast %148 : i32 to index
      %c0_187 = arith.constant 0 : index
      %c0_188 = arith.constant 0 : index
      %150 = vector.load %arg20[%149, %c0_187, %c0_188] : memref<32x8x20xbf16, #tpu.memory_space<vmem>>, vector<1x2x18xbf16>
      %151 = vector.shape_cast %150 : vector<1x2x18xbf16> to vector<2x18xbf16>
      %c8_189 = arith.constant 8 : index
      %c0_190 = arith.constant 0 : index
      %152 = vector.load %arg21[%c8_189, %c0_190] : memref<72x20xbf16, #tpu.memory_space<vmem>>, vector<2x18xbf16>
      tpu.vector_store %arg21[%c8_189, %c0_190], %151 {strides = array<i32>} : memref<72x20xbf16, #tpu.memory_space<vmem>>, vector<2x18xbf16>,
      %c1_i32_191 = arith.constant 1 : i32
      %153 = arith.muli %arg22, %c1_i32_191 : i32
      %c5_i32 = arith.constant 5 : i32
      %154 = arith.addi %153, %c5_i32 : i32
      %155 = arith.index_cast %154 : i32 to index
      %c0_192 = arith.constant 0 : index
      %c0_193 = arith.constant 0 : index
      %156 = vector.load %arg20[%155, %c0_192, %c0_193] : memref<32x8x20xbf16, #tpu.memory_space<vmem>>, vector<1x2x18xbf16>
      %157 = vector.shape_cast %156 : vector<1x2x18xbf16> to vector<2x18xbf16>
      %c10 = arith.constant 10 : index
      %c0_194 = arith.constant 0 : index
      %158 = vector.load %arg21[%c10, %c0_194] : memref<72x20xbf16, #tpu.memory_space<vmem>>, vector<2x18xbf16>
      tpu.vector_store %arg21[%c10, %c0_194], %157 {strides = array<i32>} : memref<72x20xbf16, #tpu.memory_space<vmem>>, vector<2x18xbf16>,
      %c1_i32_195 = arith.constant 1 : i32
      %159 = arith.muli %arg22, %c1_i32_195 : i32
      %c6_i32_196 = arith.constant 6 : i32
      %160 = arith.addi %159, %c6_i32_196 : i32
      %161 = arith.index_cast %160 : i32 to index
      %c0_197 = arith.constant 0 : index
      %c0_198 = arith.constant 0 : index
      %162 = vector.load %arg20[%161, %c0_197, %c0_198] : memref<32x8x20xbf16, #tpu.memory_space<vmem>>, vector<1x2x18xbf16>
      %163 = vector.shape_cast %162 : vector<1x2x18xbf16> to vector<2x18xbf16>
      %c12_199 = arith.constant 12 : index
      %c0_200 = arith.constant 0 : index
      %164 = vector.load %arg21[%c12_199, %c0_200] : memref<72x20xbf16, #tpu.memory_space<vmem>>, vector<2x18xbf16>
      tpu.vector_store %arg21[%c12_199, %c0_200], %163 {strides = array<i32>} : memref<72x20xbf16, #tpu.memory_space<vmem>>, vector<2x18xbf16>,
      %c1_i32_201 = arith.constant 1 : i32
      %165 = arith.muli %arg22, %c1_i32_201 : i32
      %c7_i32 = arith.constant 7 : i32
      %166 = arith.addi %165, %c7_i32 : i32
      %167 = arith.index_cast %166 : i32 to index
      %c0_202 = arith.constant 0 : index
      %c0_203 = arith.constant 0 : index
      %168 = vector.load %arg20[%167, %c0_202, %c0_203] : memref<32x8x20xbf16, #tpu.memory_space<vmem>>, vector<1x2x18xbf16>
      %169 = vector.shape_cast %168 : vector<1x2x18xbf16> to vector<2x18xbf16>
      %c14 = arith.constant 14 : index
      %c0_204 = arith.constant 0 : index
      %170 = vector.load %arg21[%c14, %c0_204] : memref<72x20xbf16, #tpu.memory_space<vmem>>, vector<2x18xbf16>
      tpu.vector_store %arg21[%c14, %c0_204], %169 {strides = array<i32>} : memref<72x20xbf16, #tpu.memory_space<vmem>>, vector<2x18xbf16>,
      %c1_i32_205 = arith.constant 1 : i32
      %171 = arith.muli %arg22, %c1_i32_205 : i32
      %c8_i32_206 = arith.constant 8 : i32
      %172 = arith.addi %171, %c8_i32_206 : i32
      %173 = arith.index_cast %172 : i32 to index
      %c0_207 = arith.constant 0 : index
      %c0_208 = arith.constant 0 : index
      %174 = vector.load %arg20[%173, %c0_207, %c0_208] : memref<32x8x20xbf16, #tpu.memory_space<vmem>>, vector<1x2x18xbf16>
      %175 = vector.shape_cast %174 : vector<1x2x18xbf16> to vector<2x18xbf16>
      %c16_209 = arith.constant 16 : index
      %c0_210 = arith.constant 0 : index
      %176 = vector.load %arg21[%c16_209, %c0_210] : memref<72x20xbf16, #tpu.memory_space<vmem>>, vector<2x18xbf16>
      tpu.vector_store %arg21[%c16_209, %c0_210], %175 {strides = array<i32>} : memref<72x20xbf16, #tpu.memory_space<vmem>>, vector<2x18xbf16>,
      %c0_211 = arith.constant 0 : index
      %c0_212 = arith.constant 0 : index
      %177 = vector.load %arg21[%c0_211, %c0_212] : memref<72x20xbf16, #tpu.memory_space<vmem>>, vector<18x16xbf16>
      %cst_213 = arith.constant dense<0.000000e+00> : vector<2x16xf32>
      %178 = tpu.matmul %48, %177, %cst_213 {dimension_numbers = #tpu.dot_dimension_numbers<[1], [0], [0], [1], [0, 0, 1, 1], [], []>} : vector<2x18xbf16>, vector<18x16xbf16>, vector<2x16xf32> -> vector<2x16xf32>
      %c0_214 = arith.constant 0 : index
      %c1_215 = arith.constant 1 : index
      %179 = vector.load %arg21[%c0_214, %c1_215] : memref<72x20xbf16, #tpu.memory_space<vmem>>, vector<18x16xbf16>
      %cst_216 = arith.constant dense<0.000000e+00> : vector<2x16xf32>
      %180 = tpu.matmul %50, %179, %cst_216 {dimension_numbers = #tpu.dot_dimension_numbers<[1], [0], [0], [1], [0, 0, 1, 1], [], []>} : vector<2x18xbf16>, vector<18x16xbf16>, vector<2x16xf32> -> vector<2x16xf32>
      %181 = arith.addf %178, %180 : vector<2x16xf32>
      %c0_217 = arith.constant 0 : index
      %c2_218 = arith.constant 2 : index
      %182 = vector.load %arg21[%c0_217, %c2_218] : memref<72x20xbf16, #tpu.memory_space<vmem>>, vector<18x16xbf16>
      %cst_219 = arith.constant dense<0.000000e+00> : vector<2x16xf32>
      %183 = tpu.matmul %52, %182, %cst_219 {dimension_numbers = #tpu.dot_dimension_numbers<[1], [0], [0], [1], [0, 0, 1, 1], [], []>} : vector<2x18xbf16>, vector<18x16xbf16>, vector<2x16xf32> -> vector<2x16xf32>
      %184 = arith.addf %181, %183 : vector<2x16xf32>
      %185 = vector.broadcast %46 : vector<2x1xf32> to vector<2x16xf32>
      %186 = arith.addf %184, %185 : vector<2x16xf32>
      %187 = arith.truncf %186 : vector<2x16xf32> to vector<2x16xbf16>
      %c20_i32 = arith.constant 20 : i32
      %188 = arith.addi %c20_i32, %arg22 : i32
      %189 = arith.index_cast %188 : i32 to index
      %c0_220 = arith.constant 0 : index
      %c1_221 = arith.constant 1 : index
      %190 = vector.load %arg19[%189, %c0_220, %c1_221] : memref<32x8x20xbf16, #tpu.memory_space<vmem>>, vector<1x2x16xbf16>
      %191 = vector.shape_cast %190 : vector<1x2x16xbf16> to vector<2x16xbf16>
      %192 = vector.shape_cast %187 : vector<2x16xbf16> to vector<1x2x16xbf16>
      tpu.vector_store %arg19[%189, %c0_220, %c1_221], %192 {strides = array<i32>} : memref<32x8x20xbf16, #tpu.memory_space<vmem>>, vector<1x2x16xbf16>,
    }
    %c8_i32_68 = arith.constant 8 : i32
    %cst_69 = arith.constant 0.000000e+00 : bf16
    %54 = vector.broadcast %cst_69 : bf16 to vector<4x8x18xbf16>
    %c0_70 = arith.constant 0 : index
    %c0_71 = arith.constant 0 : index
    %c0_72 = arith.constant 0 : index
    %55 = vector.load %arg20[%c0_70, %c0_71, %c0_72] : memref<32x8x20xbf16, #tpu.memory_space<vmem>>, vector<4x8x18xbf16>
    tpu.vector_store %arg20[%c0_70, %c0_71, %c0_72], %54 {strides = array<i32>} : memref<32x8x20xbf16, #tpu.memory_space<vmem>>, vector<4x8x18xbf16>,
    %c28_73 = arith.constant 28 : index
    %c0_74 = arith.constant 0 : index
    %c0_75 = arith.constant 0 : index
    %56 = vector.load %arg20[%c28_73, %c0_74, %c0_75] : memref<32x8x20xbf16, #tpu.memory_space<vmem>>, vector<4x8x18xbf16>
    tpu.vector_store %arg20[%c28_73, %c0_74, %c0_75], %54 {strides = array<i32>} : memref<32x8x20xbf16, #tpu.memory_space<vmem>>, vector<4x8x18xbf16>,
    %cst_76 = arith.constant 0.000000e+00 : bf16
    %57 = vector.broadcast %cst_76 : bf16 to vector<24x8x1xbf16>
    %c4_77 = arith.constant 4 : index
    %c0_78 = arith.constant 0 : index
    %c0_79 = arith.constant 0 : index
    %58 = vector.load %arg20[%c4_77, %c0_78, %c0_79] : memref<32x8x20xbf16, #tpu.memory_space<vmem>>, vector<24x8x1xbf16>
    tpu.vector_store %arg20[%c4_77, %c0_78, %c0_79], %57 {strides = array<i32>} : memref<32x8x20xbf16, #tpu.memory_space<vmem>>, vector<24x8x1xbf16>,
    %c4_80 = arith.constant 4 : index
    %c0_81 = arith.constant 0 : index
    %c17_82 = arith.constant 17 : index
    %59 = vector.load %arg20[%c4_80, %c0_81, %c17_82] : memref<32x8x20xbf16, #tpu.memory_space<vmem>>, vector<24x8x1xbf16>
    tpu.vector_store %arg20[%c4_80, %c0_81, %c17_82], %57 {strides = array<i32>} : memref<32x8x20xbf16, #tpu.memory_space<vmem>>, vector<24x8x1xbf16>,
    %c0_83 = arith.constant 0 : index
    %c0_84 = arith.constant 0 : index
    %c0_85 = arith.constant 0 : index
    %60 = vector.load %arg4[%c0_83, %c0_84, %c0_85] : memref<3x8x18xbf16, #tpu.memory_space<vmem>>, vector<3x8x18xbf16>
    %c0_86 = arith.constant 0 : index
    %c0_87 = arith.constant 0 : index
    %61 = vector.load %arg5[%c0_86, %c0_87] : memref<8x1xf32, #tpu.memory_space<vmem>>, vector<8x1xf32>
    %62 = vector.extract_strided_slice %60 {offsets = [0, 0, 0], sizes = [1, 8, 18], strides = [1, 1, 1]} : vector<3x8x18xbf16> to vector<1x8x18xbf16>
    %63 = vector.shape_cast %62 : vector<1x8x18xbf16> to vector<8x18xbf16>
    %64 = vector.extract_strided_slice %60 {offsets = [1, 0, 0], sizes = [1, 8, 18], strides = [1, 1, 1]} : vector<3x8x18xbf16> to vector<1x8x18xbf16>
    %65 = vector.shape_cast %64 : vector<1x8x18xbf16> to vector<8x18xbf16>
    %66 = vector.extract_strided_slice %60 {offsets = [2, 0, 0], sizes = [1, 8, 18], strides = [1, 1, 1]} : vector<3x8x18xbf16> to vector<1x8x18xbf16>
    %67 = vector.shape_cast %66 : vector<1x8x18xbf16> to vector<8x18xbf16>
    %c0_i32_88 = arith.constant 0 : i32
    %c24_i32 = arith.constant 24 : i32
    %68 = arith.addi %c0_i32_88, %c24_i32 : i32
    %c1_i32_89 = arith.constant 1 : i32
    scf.for %arg22 = %c0_i32_88 to %68 step %c1_i32_89  : i32 {
      %c1_i32_165 = arith.constant 1 : i32
      %123 = arith.muli %arg22, %c1_i32_165 : i32
      %c0_i32_166 = arith.constant 0 : i32
      %124 = arith.addi %123, %c0_i32_166 : i32
      %125 = arith.index_cast %124 : i32 to index
      %c0_167 = arith.constant 0 : index
      %c0_168 = arith.constant 0 : index
      %126 = vector.load %arg19[%125, %c0_167, %c0_168] : memref<32x8x20xbf16, #tpu.memory_space<vmem>>, vector<1x2x18xbf16>
      %127 = vector.shape_cast %126 : vector<1x2x18xbf16> to vector<2x18xbf16>
      %c0_169 = arith.constant 0 : index
      %c0_170 = arith.constant 0 : index
      %128 = vector.load %arg21[%c0_169, %c0_170] : memref<72x20xbf16, #tpu.memory_space<vmem>>, vector<2x18xbf16>
      tpu.vector_store %arg21[%c0_169, %c0_170], %127 {strides = array<i32>} : memref<72x20xbf16, #tpu.memory_space<vmem>>, vector<2x18xbf16>,
      %c1_i32_171 = arith.constant 1 : i32
      %129 = arith.muli %arg22, %c1_i32_171 : i32
      %c1_i32_172 = arith.constant 1 : i32
      %130 = arith.addi %129, %c1_i32_172 : i32
      %131 = arith.index_cast %130 : i32 to index
      %c0_173 = arith.constant 0 : index
      %c0_174 = arith.constant 0 : index
      %132 = vector.load %arg19[%131, %c0_173, %c0_174] : memref<32x8x20xbf16, #tpu.memory_space<vmem>>, vector<1x2x18xbf16>
      %133 = vector.shape_cast %132 : vector<1x2x18xbf16> to vector<2x18xbf16>
      %c2_175 = arith.constant 2 : index
      %c0_176 = arith.constant 0 : index
      %134 = vector.load %arg21[%c2_175, %c0_176] : memref<72x20xbf16, #tpu.memory_space<vmem>>, vector<2x18xbf16>
      tpu.vector_store %arg21[%c2_175, %c0_176], %133 {strides = array<i32>} : memref<72x20xbf16, #tpu.memory_space<vmem>>, vector<2x18xbf16>,
      %c1_i32_177 = arith.constant 1 : i32
      %135 = arith.muli %arg22, %c1_i32_177 : i32
      %c2_i32 = arith.constant 2 : i32
      %136 = arith.addi %135, %c2_i32 : i32
      %137 = arith.index_cast %136 : i32 to index
      %c0_178 = arith.constant 0 : index
      %c0_179 = arith.constant 0 : index
      %138 = vector.load %arg19[%137, %c0_178, %c0_179] : memref<32x8x20xbf16, #tpu.memory_space<vmem>>, vector<1x2x18xbf16>
      %139 = vector.shape_cast %138 : vector<1x2x18xbf16> to vector<2x18xbf16>
      %c4_180 = arith.constant 4 : index
      %c0_181 = arith.constant 0 : index
      %140 = vector.load %arg21[%c4_180, %c0_181] : memref<72x20xbf16, #tpu.memory_space<vmem>>, vector<2x18xbf16>
      tpu.vector_store %arg21[%c4_180, %c0_181], %139 {strides = array<i32>} : memref<72x20xbf16, #tpu.memory_space<vmem>>, vector<2x18xbf16>,
      %c1_i32_182 = arith.constant 1 : i32
      %141 = arith.muli %arg22, %c1_i32_182 : i32
      %c3_i32 = arith.constant 3 : i32
      %142 = arith.addi %141, %c3_i32 : i32
      %143 = arith.index_cast %142 : i32 to index
      %c0_183 = arith.constant 0 : index
      %c0_184 = arith.constant 0 : index
      %144 = vector.load %arg19[%143, %c0_183, %c0_184] : memref<32x8x20xbf16, #tpu.memory_space<vmem>>, vector<1x2x18xbf16>
      %145 = vector.shape_cast %144 : vector<1x2x18xbf16> to vector<2x18xbf16>
      %c6 = arith.constant 6 : index
      %c0_185 = arith.constant 0 : index
      %146 = vector.load %arg21[%c6, %c0_185] : memref<72x20xbf16, #tpu.memory_space<vmem>>, vector<2x18xbf16>
      tpu.vector_store %arg21[%c6, %c0_185], %145 {strides = array<i32>} : memref<72x20xbf16, #tpu.memory_space<vmem>>, vector<2x18xbf16>,
      %c1_i32_186 = arith.constant 1 : i32
      %147 = arith.muli %arg22, %c1_i32_186 : i32
      %c4_i32 = arith.constant 4 : i32
      %148 = arith.addi %147, %c4_i32 : i32
      %149 = arith.index_cast %148 : i32 to index
      %c0_187 = arith.constant 0 : index
      %c0_188 = arith.constant 0 : index
      %150 = vector.load %arg19[%149, %c0_187, %c0_188] : memref<32x8x20xbf16, #tpu.memory_space<vmem>>, vector<1x2x18xbf16>
      %151 = vector.shape_cast %150 : vector<1x2x18xbf16> to vector<2x18xbf16>
      %c8_189 = arith.constant 8 : index
      %c0_190 = arith.constant 0 : index
      %152 = vector.load %arg21[%c8_189, %c0_190] : memref<72x20xbf16, #tpu.memory_space<vmem>>, vector<2x18xbf16>
      tpu.vector_store %arg21[%c8_189, %c0_190], %151 {strides = array<i32>} : memref<72x20xbf16, #tpu.memory_space<vmem>>, vector<2x18xbf16>,
      %c1_i32_191 = arith.constant 1 : i32
      %153 = arith.muli %arg22, %c1_i32_191 : i32
      %c5_i32 = arith.constant 5 : i32
      %154 = arith.addi %153, %c5_i32 : i32
      %155 = arith.index_cast %154 : i32 to index
      %c0_192 = arith.constant 0 : index
      %c0_193 = arith.constant 0 : index
      %156 = vector.load %arg19[%155, %c0_192, %c0_193] : memref<32x8x20xbf16, #tpu.memory_space<vmem>>, vector<1x2x18xbf16>
      %157 = vector.shape_cast %156 : vector<1x2x18xbf16> to vector<2x18xbf16>
      %c10 = arith.constant 10 : index
      %c0_194 = arith.constant 0 : index
      %158 = vector.load %arg21[%c10, %c0_194] : memref<72x20xbf16, #tpu.memory_space<vmem>>, vector<2x18xbf16>
      tpu.vector_store %arg21[%c10, %c0_194], %157 {strides = array<i32>} : memref<72x20xbf16, #tpu.memory_space<vmem>>, vector<2x18xbf16>,
      %c1_i32_195 = arith.constant 1 : i32
      %159 = arith.muli %arg22, %c1_i32_195 : i32
      %c6_i32_196 = arith.constant 6 : i32
      %160 = arith.addi %159, %c6_i32_196 : i32
      %161 = arith.index_cast %160 : i32 to index
      %c0_197 = arith.constant 0 : index
      %c0_198 = arith.constant 0 : index
      %162 = vector.load %arg19[%161, %c0_197, %c0_198] : memref<32x8x20xbf16, #tpu.memory_space<vmem>>, vector<1x2x18xbf16>
      %163 = vector.shape_cast %162 : vector<1x2x18xbf16> to vector<2x18xbf16>
      %c12_199 = arith.constant 12 : index
      %c0_200 = arith.constant 0 : index
      %164 = vector.load %arg21[%c12_199, %c0_200] : memref<72x20xbf16, #tpu.memory_space<vmem>>, vector<2x18xbf16>
      tpu.vector_store %arg21[%c12_199, %c0_200], %163 {strides = array<i32>} : memref<72x20xbf16, #tpu.memory_space<vmem>>, vector<2x18xbf16>,
      %c1_i32_201 = arith.constant 1 : i32
      %165 = arith.muli %arg22, %c1_i32_201 : i32
      %c7_i32 = arith.constant 7 : i32
      %166 = arith.addi %165, %c7_i32 : i32
      %167 = arith.index_cast %166 : i32 to index
      %c0_202 = arith.constant 0 : index
      %c0_203 = arith.constant 0 : index
      %168 = vector.load %arg19[%167, %c0_202, %c0_203] : memref<32x8x20xbf16, #tpu.memory_space<vmem>>, vector<1x2x18xbf16>
      %169 = vector.shape_cast %168 : vector<1x2x18xbf16> to vector<2x18xbf16>
      %c14 = arith.constant 14 : index
      %c0_204 = arith.constant 0 : index
      %170 = vector.load %arg21[%c14, %c0_204] : memref<72x20xbf16, #tpu.memory_space<vmem>>, vector<2x18xbf16>
      tpu.vector_store %arg21[%c14, %c0_204], %169 {strides = array<i32>} : memref<72x20xbf16, #tpu.memory_space<vmem>>, vector<2x18xbf16>,
      %c1_i32_205 = arith.constant 1 : i32
      %171 = arith.muli %arg22, %c1_i32_205 : i32
      %c8_i32_206 = arith.constant 8 : i32
      %172 = arith.addi %171, %c8_i32_206 : i32
      %173 = arith.index_cast %172 : i32 to index
      %c0_207 = arith.constant 0 : index
      %c0_208 = arith.constant 0 : index
      %174 = vector.load %arg19[%173, %c0_207, %c0_208] : memref<32x8x20xbf16, #tpu.memory_space<vmem>>, vector<1x2x18xbf16>
      %175 = vector.shape_cast %174 : vector<1x2x18xbf16> to vector<2x18xbf16>
      %c16_209 = arith.constant 16 : index
      %c0_210 = arith.constant 0 : index
      %176 = vector.load %arg21[%c16_209, %c0_210] : memref<72x20xbf16, #tpu.memory_space<vmem>>, vector<2x18xbf16>
      tpu.vector_store %arg21[%c16_209, %c0_210], %175 {strides = array<i32>} : memref<72x20xbf16, #tpu.memory_space<vmem>>, vector<2x18xbf16>,
      %c0_211 = arith.constant 0 : index
      %c0_212 = arith.constant 0 : index
      %177 = vector.load %arg21[%c0_211, %c0_212] : memref<72x20xbf16, #tpu.memory_space<vmem>>, vector<18x16xbf16>
      %cst_213 = arith.constant dense<0.000000e+00> : vector<8x16xf32>
      %178 = tpu.matmul %63, %177, %cst_213 {dimension_numbers = #tpu.dot_dimension_numbers<[1], [0], [0], [1], [0, 0, 1, 1], [], []>} : vector<8x18xbf16>, vector<18x16xbf16>, vector<8x16xf32> -> vector<8x16xf32>
      %c0_214 = arith.constant 0 : index
      %c1_215 = arith.constant 1 : index
      %179 = vector.load %arg21[%c0_214, %c1_215] : memref<72x20xbf16, #tpu.memory_space<vmem>>, vector<18x16xbf16>
      %cst_216 = arith.constant dense<0.000000e+00> : vector<8x16xf32>
      %180 = tpu.matmul %65, %179, %cst_216 {dimension_numbers = #tpu.dot_dimension_numbers<[1], [0], [0], [1], [0, 0, 1, 1], [], []>} : vector<8x18xbf16>, vector<18x16xbf16>, vector<8x16xf32> -> vector<8x16xf32>
      %181 = arith.addf %178, %180 : vector<8x16xf32>
      %c0_217 = arith.constant 0 : index
      %c2_218 = arith.constant 2 : index
      %182 = vector.load %arg21[%c0_217, %c2_218] : memref<72x20xbf16, #tpu.memory_space<vmem>>, vector<18x16xbf16>
      %cst_219 = arith.constant dense<0.000000e+00> : vector<8x16xf32>
      %183 = tpu.matmul %67, %182, %cst_219 {dimension_numbers = #tpu.dot_dimension_numbers<[1], [0], [0], [1], [0, 0, 1, 1], [], []>} : vector<8x18xbf16>, vector<18x16xbf16>, vector<8x16xf32> -> vector<8x16xf32>
      %184 = arith.addf %181, %183 : vector<8x16xf32>
      %185 = vector.broadcast %61 : vector<8x1xf32> to vector<8x16xf32>
      %186 = arith.addf %184, %185 : vector<8x16xf32>
      %cst_220 = arith.constant 0.000000e+00 : f32
      %187 = vector.broadcast %cst_220 : f32 to vector<8x16xf32>
      %188 = arith.cmpf ogt, %186, %187 : vector<8x16xf32>
      %cst_221 = arith.constant 1.000000e-01 : f32
      %189 = vector.broadcast %cst_221 : f32 to vector<8x16xf32>
      %190 = arith.mulf %189, %186 : vector<8x16xf32>
      %191 = arith.select %188, %186, %190 : vector<8x16xi1>, vector<8x16xf32>
      %192 = arith.truncf %191 : vector<8x16xf32> to vector<8x16xbf16>
      %c0_222 = arith.constant 0 : index
      %193 = arith.index_cast %arg22 : i32 to index
      %c0_223 = arith.constant 0 : index
      %c0_224 = arith.constant 0 : index
      %194 = vector.load %arg14[%c0_222, %193, %c0_223, %c0_224] : memref<1x24x8x16xbf16, #tpu.memory_space<vmem>>, vector<1x1x8x16xbf16>
      %195 = vector.shape_cast %194 : vector<1x1x8x16xbf16> to vector<8x16xbf16>
      %196 = vector.shape_cast %192 : vector<8x16xbf16> to vector<1x1x8x16xbf16>
      tpu.vector_store %arg14[%c0_222, %193, %c0_223, %c0_224], %196 {strides = array<i32>} : memref<1x24x8x16xbf16, #tpu.memory_space<vmem>>, vector<1x1x8x16xbf16>,
      %c4_i32_225 = arith.constant 4 : i32
      %197 = arith.addi %c4_i32_225, %arg22 : i32
      %198 = arith.index_cast %197 : i32 to index
      %c0_226 = arith.constant 0 : index
      %c1_227 = arith.constant 1 : index
      %199 = vector.load %arg20[%198, %c0_226, %c1_227] : memref<32x8x20xbf16, #tpu.memory_space<vmem>>, vector<1x8x16xbf16>
      %200 = vector.shape_cast %199 : vector<1x8x16xbf16> to vector<8x16xbf16>
      %201 = vector.shape_cast %192 : vector<8x16xbf16> to vector<1x8x16xbf16>
      tpu.vector_store %arg20[%198, %c0_226, %c1_227], %201 {strides = array<i32>} : memref<32x8x20xbf16, #tpu.memory_space<vmem>>, vector<1x8x16xbf16>,
    }
    %c24_i32_90 = arith.constant 24 : i32
    %cst_91 = arith.constant 0.000000e+00 : bf16
    %69 = vector.broadcast %cst_91 : bf16 to vector<4x8x20xbf16>
    %c0_92 = arith.constant 0 : index
    %c0_93 = arith.constant 0 : index
    %c0_94 = arith.constant 0 : index
    %70 = vector.load %arg19[%c0_92, %c0_93, %c0_94] : memref<32x8x20xbf16, #tpu.memory_space<vmem>>, vector<4x8x20xbf16>
    tpu.vector_store %arg19[%c0_92, %c0_93, %c0_94], %69 {strides = array<i32>} : memref<32x8x20xbf16, #tpu.memory_space<vmem>>, vector<4x8x20xbf16>,
    %c16_95 = arith.constant 16 : index
    %c0_96 = arith.constant 0 : index
    %c0_97 = arith.constant 0 : index
    %71 = vector.load %arg19[%c16_95, %c0_96, %c0_97] : memref<32x8x20xbf16, #tpu.memory_space<vmem>>, vector<4x8x20xbf16>
    tpu.vector_store %arg19[%c16_95, %c0_96, %c0_97], %69 {strides = array<i32>} : memref<32x8x20xbf16, #tpu.memory_space<vmem>>, vector<4x8x20xbf16>,
    %cst_98 = arith.constant 0.000000e+00 : bf16
    %72 = vector.broadcast %cst_98 : bf16 to vector<12x8x2xbf16>
    %c4_99 = arith.constant 4 : index
    %c0_100 = arith.constant 0 : index
    %c0_101 = arith.constant 0 : index
    %73 = vector.load %arg19[%c4_99, %c0_100, %c0_101] : memref<32x8x20xbf16, #tpu.memory_space<vmem>>, vector<12x8x2xbf16>
    tpu.vector_store %arg19[%c4_99, %c0_100, %c0_101], %72 {strides = array<i32>} : memref<32x8x20xbf16, #tpu.memory_space<vmem>>, vector<12x8x2xbf16>,
    %c4_102 = arith.constant 4 : index
    %c0_103 = arith.constant 0 : index
    %c18 = arith.constant 18 : index
    %74 = vector.load %arg19[%c4_102, %c0_103, %c18] : memref<32x8x20xbf16, #tpu.memory_space<vmem>>, vector<12x8x2xbf16>
    tpu.vector_store %arg19[%c4_102, %c0_103, %c18], %72 {strides = array<i32>} : memref<32x8x20xbf16, #tpu.memory_space<vmem>>, vector<12x8x2xbf16>,
    %c0_104 = arith.constant 0 : index
    %c0_105 = arith.constant 0 : index
    %c0_106 = arith.constant 0 : index
    %75 = vector.load %arg6[%c0_104, %c0_105, %c0_106] : memref<3x8x72xbf16, #tpu.memory_space<vmem>>, vector<3x8x72xbf16>
    %c0_107 = arith.constant 0 : index
    %c0_108 = arith.constant 0 : index
    %76 = vector.load %arg7[%c0_107, %c0_108] : memref<8x1xf32, #tpu.memory_space<vmem>>, vector<8x1xf32>
    %77 = vector.extract_strided_slice %75 {offsets = [0, 0, 0], sizes = [1, 8, 72], strides = [1, 1, 1]} : vector<3x8x72xbf16> to vector<1x8x72xbf16>
    %78 = vector.shape_cast %77 : vector<1x8x72xbf16> to vector<8x72xbf16>
    %79 = vector.extract_strided_slice %75 {offsets = [1, 0, 0], sizes = [1, 8, 72], strides = [1, 1, 1]} : vector<3x8x72xbf16> to vector<1x8x72xbf16>
    %80 = vector.shape_cast %79 : vector<1x8x72xbf16> to vector<8x72xbf16>
    %81 = vector.extract_strided_slice %75 {offsets = [2, 0, 0], sizes = [1, 8, 72], strides = [1, 1, 1]} : vector<3x8x72xbf16> to vector<1x8x72xbf16>
    %82 = vector.shape_cast %81 : vector<1x8x72xbf16> to vector<8x72xbf16>
    %c0_i32_109 = arith.constant 0 : i32
    %c12_i32 = arith.constant 12 : i32
    %83 = arith.addi %c0_i32_109, %c12_i32 : i32
    %c1_i32_110 = arith.constant 1 : i32
    scf.for %arg22 = %c0_i32_109 to %83 step %c1_i32_110  : i32 {
      %c2_i32 = arith.constant 2 : i32
      %123 = arith.muli %arg22, %c2_i32 : i32
      %c0_i32_165 = arith.constant 0 : i32
      %124 = arith.addi %123, %c0_i32_165 : i32
      %125 = arith.index_cast %124 : i32 to index
      %c0_166 = arith.constant 0 : index
      %c0_167 = arith.constant 0 : index
      %126 = vector.load %arg20[%125, %c0_166, %c0_167] : memref<32x8x20xbf16, #tpu.memory_space<vmem>>, vector<1x8x18xbf16>
      %127 = vector.shape_cast %126 : vector<1x8x18xbf16> to vector<8x18xbf16>
      %c0_168 = arith.constant 0 : index
      %c0_169 = arith.constant 0 : index
      %128 = vector.load %arg21[%c0_168, %c0_169] : memref<72x20xbf16, #tpu.memory_space<vmem>>, vector<8x18xbf16>
      tpu.vector_store %arg21[%c0_168, %c0_169], %127 {strides = array<i32>} : memref<72x20xbf16, #tpu.memory_space<vmem>>, vector<8x18xbf16>,
      %c2_i32_170 = arith.constant 2 : i32
      %129 = arith.muli %arg22, %c2_i32_170 : i32
      %c1_i32_171 = arith.constant 1 : i32
      %130 = arith.addi %129, %c1_i32_171 : i32
      %131 = arith.index_cast %130 : i32 to index
      %c0_172 = arith.constant 0 : index
      %c0_173 = arith.constant 0 : index
      %132 = vector.load %arg20[%131, %c0_172, %c0_173] : memref<32x8x20xbf16, #tpu.memory_space<vmem>>, vector<1x8x18xbf16>
      %133 = vector.shape_cast %132 : vector<1x8x18xbf16> to vector<8x18xbf16>
      %c8_174 = arith.constant 8 : index
      %c0_175 = arith.constant 0 : index
      %134 = vector.load %arg21[%c8_174, %c0_175] : memref<72x20xbf16, #tpu.memory_space<vmem>>, vector<8x18xbf16>
      tpu.vector_store %arg21[%c8_174, %c0_175], %133 {strides = array<i32>} : memref<72x20xbf16, #tpu.memory_space<vmem>>, vector<8x18xbf16>,
      %c2_i32_176 = arith.constant 2 : i32
      %135 = arith.muli %arg22, %c2_i32_176 : i32
      %c2_i32_177 = arith.constant 2 : i32
      %136 = arith.addi %135, %c2_i32_177 : i32
      %137 = arith.index_cast %136 : i32 to index
      %c0_178 = arith.constant 0 : index
      %c0_179 = arith.constant 0 : index
      %138 = vector.load %arg20[%137, %c0_178, %c0_179] : memref<32x8x20xbf16, #tpu.memory_space<vmem>>, vector<1x8x18xbf16>
      %139 = vector.shape_cast %138 : vector<1x8x18xbf16> to vector<8x18xbf16>
      %c16_180 = arith.constant 16 : index
      %c0_181 = arith.constant 0 : index
      %140 = vector.load %arg21[%c16_180, %c0_181] : memref<72x20xbf16, #tpu.memory_space<vmem>>, vector<8x18xbf16>
      tpu.vector_store %arg21[%c16_180, %c0_181], %139 {strides = array<i32>} : memref<72x20xbf16, #tpu.memory_space<vmem>>, vector<8x18xbf16>,
      %c2_i32_182 = arith.constant 2 : i32
      %141 = arith.muli %arg22, %c2_i32_182 : i32
      %c3_i32 = arith.constant 3 : i32
      %142 = arith.addi %141, %c3_i32 : i32
      %143 = arith.index_cast %142 : i32 to index
      %c0_183 = arith.constant 0 : index
      %c0_184 = arith.constant 0 : index
      %144 = vector.load %arg20[%143, %c0_183, %c0_184] : memref<32x8x20xbf16, #tpu.memory_space<vmem>>, vector<1x8x18xbf16>
      %145 = vector.shape_cast %144 : vector<1x8x18xbf16> to vector<8x18xbf16>
      %c24 = arith.constant 24 : index
      %c0_185 = arith.constant 0 : index
      %146 = vector.load %arg21[%c24, %c0_185] : memref<72x20xbf16, #tpu.memory_space<vmem>>, vector<8x18xbf16>
      tpu.vector_store %arg21[%c24, %c0_185], %145 {strides = array<i32>} : memref<72x20xbf16, #tpu.memory_space<vmem>>, vector<8x18xbf16>,
      %c2_i32_186 = arith.constant 2 : i32
      %147 = arith.muli %arg22, %c2_i32_186 : i32
      %c4_i32 = arith.constant 4 : i32
      %148 = arith.addi %147, %c4_i32 : i32
      %149 = arith.index_cast %148 : i32 to index
      %c0_187 = arith.constant 0 : index
      %c0_188 = arith.constant 0 : index
      %150 = vector.load %arg20[%149, %c0_187, %c0_188] : memref<32x8x20xbf16, #tpu.memory_space<vmem>>, vector<1x8x18xbf16>
      %151 = vector.shape_cast %150 : vector<1x8x18xbf16> to vector<8x18xbf16>
      %c32 = arith.constant 32 : index
      %c0_189 = arith.constant 0 : index
      %152 = vector.load %arg21[%c32, %c0_189] : memref<72x20xbf16, #tpu.memory_space<vmem>>, vector<8x18xbf16>
      tpu.vector_store %arg21[%c32, %c0_189], %151 {strides = array<i32>} : memref<72x20xbf16, #tpu.memory_space<vmem>>, vector<8x18xbf16>,
      %c2_i32_190 = arith.constant 2 : i32
      %153 = arith.muli %arg22, %c2_i32_190 : i32
      %c5_i32 = arith.constant 5 : i32
      %154 = arith.addi %153, %c5_i32 : i32
      %155 = arith.index_cast %154 : i32 to index
      %c0_191 = arith.constant 0 : index
      %c0_192 = arith.constant 0 : index
      %156 = vector.load %arg20[%155, %c0_191, %c0_192] : memref<32x8x20xbf16, #tpu.memory_space<vmem>>, vector<1x8x18xbf16>
      %157 = vector.shape_cast %156 : vector<1x8x18xbf16> to vector<8x18xbf16>
      %c40 = arith.constant 40 : index
      %c0_193 = arith.constant 0 : index
      %158 = vector.load %arg21[%c40, %c0_193] : memref<72x20xbf16, #tpu.memory_space<vmem>>, vector<8x18xbf16>
      tpu.vector_store %arg21[%c40, %c0_193], %157 {strides = array<i32>} : memref<72x20xbf16, #tpu.memory_space<vmem>>, vector<8x18xbf16>,
      %c2_i32_194 = arith.constant 2 : i32
      %159 = arith.muli %arg22, %c2_i32_194 : i32
      %c6_i32_195 = arith.constant 6 : i32
      %160 = arith.addi %159, %c6_i32_195 : i32
      %161 = arith.index_cast %160 : i32 to index
      %c0_196 = arith.constant 0 : index
      %c0_197 = arith.constant 0 : index
      %162 = vector.load %arg20[%161, %c0_196, %c0_197] : memref<32x8x20xbf16, #tpu.memory_space<vmem>>, vector<1x8x18xbf16>
      %163 = vector.shape_cast %162 : vector<1x8x18xbf16> to vector<8x18xbf16>
      %c48 = arith.constant 48 : index
      %c0_198 = arith.constant 0 : index
      %164 = vector.load %arg21[%c48, %c0_198] : memref<72x20xbf16, #tpu.memory_space<vmem>>, vector<8x18xbf16>
      tpu.vector_store %arg21[%c48, %c0_198], %163 {strides = array<i32>} : memref<72x20xbf16, #tpu.memory_space<vmem>>, vector<8x18xbf16>,
      %c2_i32_199 = arith.constant 2 : i32
      %165 = arith.muli %arg22, %c2_i32_199 : i32
      %c7_i32 = arith.constant 7 : i32
      %166 = arith.addi %165, %c7_i32 : i32
      %167 = arith.index_cast %166 : i32 to index
      %c0_200 = arith.constant 0 : index
      %c0_201 = arith.constant 0 : index
      %168 = vector.load %arg20[%167, %c0_200, %c0_201] : memref<32x8x20xbf16, #tpu.memory_space<vmem>>, vector<1x8x18xbf16>
      %169 = vector.shape_cast %168 : vector<1x8x18xbf16> to vector<8x18xbf16>
      %c56 = arith.constant 56 : index
      %c0_202 = arith.constant 0 : index
      %170 = vector.load %arg21[%c56, %c0_202] : memref<72x20xbf16, #tpu.memory_space<vmem>>, vector<8x18xbf16>
      tpu.vector_store %arg21[%c56, %c0_202], %169 {strides = array<i32>} : memref<72x20xbf16, #tpu.memory_space<vmem>>, vector<8x18xbf16>,
      %c2_i32_203 = arith.constant 2 : i32
      %171 = arith.muli %arg22, %c2_i32_203 : i32
      %c8_i32_204 = arith.constant 8 : i32
      %172 = arith.addi %171, %c8_i32_204 : i32
      %173 = arith.index_cast %172 : i32 to index
      %c0_205 = arith.constant 0 : index
      %c0_206 = arith.constant 0 : index
      %174 = vector.load %arg20[%173, %c0_205, %c0_206] : memref<32x8x20xbf16, #tpu.memory_space<vmem>>, vector<1x8x18xbf16>
      %175 = vector.shape_cast %174 : vector<1x8x18xbf16> to vector<8x18xbf16>
      %c64 = arith.constant 64 : index
      %c0_207 = arith.constant 0 : index
      %176 = vector.load %arg21[%c64, %c0_207] : memref<72x20xbf16, #tpu.memory_space<vmem>>, vector<8x18xbf16>
      tpu.vector_store %arg21[%c64, %c0_207], %175 {strides = array<i32>} : memref<72x20xbf16, #tpu.memory_space<vmem>>, vector<8x18xbf16>,
      %c0_208 = arith.constant 0 : index
      %c0_209 = arith.constant 0 : index
      %177 = vector.load %arg21[%c0_208, %c0_209] : memref<72x20xbf16, #tpu.memory_space<vmem>>, vector<72x16xbf16>
      %cst_210 = arith.constant dense<0.000000e+00> : vector<8x16xf32>
      %178 = tpu.matmul %78, %177, %cst_210 {dimension_numbers = #tpu.dot_dimension_numbers<[1], [0], [0], [1], [0, 0, 1, 1], [], []>} : vector<8x72xbf16>, vector<72x16xbf16>, vector<8x16xf32> -> vector<8x16xf32>
      %c0_211 = arith.constant 0 : index
      %c1_212 = arith.constant 1 : index
      %179 = vector.load %arg21[%c0_211, %c1_212] : memref<72x20xbf16, #tpu.memory_space<vmem>>, vector<72x16xbf16>
      %cst_213 = arith.constant dense<0.000000e+00> : vector<8x16xf32>
      %180 = tpu.matmul %80, %179, %cst_213 {dimension_numbers = #tpu.dot_dimension_numbers<[1], [0], [0], [1], [0, 0, 1, 1], [], []>} : vector<8x72xbf16>, vector<72x16xbf16>, vector<8x16xf32> -> vector<8x16xf32>
      %181 = arith.addf %178, %180 : vector<8x16xf32>
      %c0_214 = arith.constant 0 : index
      %c2_215 = arith.constant 2 : index
      %182 = vector.load %arg21[%c0_214, %c2_215] : memref<72x20xbf16, #tpu.memory_space<vmem>>, vector<72x16xbf16>
      %cst_216 = arith.constant dense<0.000000e+00> : vector<8x16xf32>
      %183 = tpu.matmul %82, %182, %cst_216 {dimension_numbers = #tpu.dot_dimension_numbers<[1], [0], [0], [1], [0, 0, 1, 1], [], []>} : vector<8x72xbf16>, vector<72x16xbf16>, vector<8x16xf32> -> vector<8x16xf32>
      %184 = arith.addf %181, %183 : vector<8x16xf32>
      %185 = vector.broadcast %76 : vector<8x1xf32> to vector<8x16xf32>
      %186 = arith.addf %184, %185 : vector<8x16xf32>
      %cst_217 = arith.constant 0.000000e+00 : f32
      %187 = vector.broadcast %cst_217 : f32 to vector<8x16xf32>
      %188 = arith.cmpf ogt, %186, %187 : vector<8x16xf32>
      %cst_218 = arith.constant 1.000000e-01 : f32
      %189 = vector.broadcast %cst_218 : f32 to vector<8x16xf32>
      %190 = arith.mulf %189, %186 : vector<8x16xf32>
      %191 = arith.select %188, %186, %190 : vector<8x16xi1>, vector<8x16xf32>
      %192 = arith.truncf %191 : vector<8x16xf32> to vector<8x16xbf16>
      %c0_219 = arith.constant 0 : index
      %193 = arith.index_cast %arg22 : i32 to index
      %c0_220 = arith.constant 0 : index
      %c0_221 = arith.constant 0 : index
      %194 = vector.load %arg15[%c0_219, %193, %c0_220, %c0_221] : memref<1x12x8x16xbf16, #tpu.memory_space<vmem>>, vector<1x1x8x16xbf16>
      %195 = vector.shape_cast %194 : vector<1x1x8x16xbf16> to vector<8x16xbf16>
      %196 = vector.shape_cast %192 : vector<8x16xbf16> to vector<1x1x8x16xbf16>
      tpu.vector_store %arg15[%c0_219, %193, %c0_220, %c0_221], %196 {strides = array<i32>} : memref<1x12x8x16xbf16, #tpu.memory_space<vmem>>, vector<1x1x8x16xbf16>,
      %c4_i32_222 = arith.constant 4 : i32
      %197 = arith.addi %c4_i32_222, %arg22 : i32
      %198 = arith.index_cast %197 : i32 to index
      %c0_223 = arith.constant 0 : index
      %c2_224 = arith.constant 2 : index
      %199 = vector.load %arg19[%198, %c0_223, %c2_224] : memref<32x8x20xbf16, #tpu.memory_space<vmem>>, vector<1x8x16xbf16>
      %200 = vector.shape_cast %199 : vector<1x8x16xbf16> to vector<8x16xbf16>
      %201 = vector.shape_cast %192 : vector<8x16xbf16> to vector<1x8x16xbf16>
      tpu.vector_store %arg19[%198, %c0_223, %c2_224], %201 {strides = array<i32>} : memref<32x8x20xbf16, #tpu.memory_space<vmem>>, vector<1x8x16xbf16>,
    }
    %c12_i32_111 = arith.constant 12 : i32
    %cst_112 = arith.constant 0.000000e+00 : bf16
    %84 = vector.broadcast %cst_112 : bf16 to vector<1x8x18xbf16>
    %c0_113 = arith.constant 0 : index
    %c0_114 = arith.constant 0 : index
    %c0_115 = arith.constant 0 : index
    %85 = vector.load %arg20[%c0_113, %c0_114, %c0_115] : memref<32x8x20xbf16, #tpu.memory_space<vmem>>, vector<1x8x18xbf16>
    tpu.vector_store %arg20[%c0_113, %c0_114, %c0_115], %84 {strides = array<i32>} : memref<32x8x20xbf16, #tpu.memory_space<vmem>>, vector<1x8x18xbf16>,
    %c7 = arith.constant 7 : index
    %c0_116 = arith.constant 0 : index
    %c0_117 = arith.constant 0 : index
    %86 = vector.load %arg20[%c7, %c0_116, %c0_117] : memref<32x8x20xbf16, #tpu.memory_space<vmem>>, vector<1x8x18xbf16>
    tpu.vector_store %arg20[%c7, %c0_116, %c0_117], %84 {strides = array<i32>} : memref<32x8x20xbf16, #tpu.memory_space<vmem>>, vector<1x8x18xbf16>,
    %cst_118 = arith.constant 0.000000e+00 : bf16
    %87 = vector.broadcast %cst_118 : bf16 to vector<6x8x1xbf16>
    %c1_119 = arith.constant 1 : index
    %c0_120 = arith.constant 0 : index
    %c0_121 = arith.constant 0 : index
    %88 = vector.load %arg20[%c1_119, %c0_120, %c0_121] : memref<32x8x20xbf16, #tpu.memory_space<vmem>>, vector<6x8x1xbf16>
    tpu.vector_store %arg20[%c1_119, %c0_120, %c0_121], %87 {strides = array<i32>} : memref<32x8x20xbf16, #tpu.memory_space<vmem>>, vector<6x8x1xbf16>,
    %c1_122 = arith.constant 1 : index
    %c0_123 = arith.constant 0 : index
    %c17_124 = arith.constant 17 : index
    %89 = vector.load %arg20[%c1_122, %c0_123, %c17_124] : memref<32x8x20xbf16, #tpu.memory_space<vmem>>, vector<6x8x1xbf16>
    tpu.vector_store %arg20[%c1_122, %c0_123, %c17_124], %87 {strides = array<i32>} : memref<32x8x20xbf16, #tpu.memory_space<vmem>>, vector<6x8x1xbf16>,
    %c0_125 = arith.constant 0 : index
    %c0_126 = arith.constant 0 : index
    %c0_127 = arith.constant 0 : index
    %90 = vector.load %arg8[%c0_125, %c0_126, %c0_127] : memref<3x8x72xbf16, #tpu.memory_space<vmem>>, vector<3x8x72xbf16>
    %c0_128 = arith.constant 0 : index
    %c0_129 = arith.constant 0 : index
    %91 = vector.load %arg9[%c0_128, %c0_129] : memref<8x1xf32, #tpu.memory_space<vmem>>, vector<8x1xf32>
    %92 = vector.extract_strided_slice %90 {offsets = [0, 0, 0], sizes = [1, 8, 72], strides = [1, 1, 1]} : vector<3x8x72xbf16> to vector<1x8x72xbf16>
    %93 = vector.shape_cast %92 : vector<1x8x72xbf16> to vector<8x72xbf16>
    %94 = vector.extract_strided_slice %90 {offsets = [1, 0, 0], sizes = [1, 8, 72], strides = [1, 1, 1]} : vector<3x8x72xbf16> to vector<1x8x72xbf16>
    %95 = vector.shape_cast %94 : vector<1x8x72xbf16> to vector<8x72xbf16>
    %96 = vector.extract_strided_slice %90 {offsets = [2, 0, 0], sizes = [1, 8, 72], strides = [1, 1, 1]} : vector<3x8x72xbf16> to vector<1x8x72xbf16>
    %97 = vector.shape_cast %96 : vector<1x8x72xbf16> to vector<8x72xbf16>
    %c0_i32_130 = arith.constant 0 : i32
    %c6_i32 = arith.constant 6 : i32
    %98 = arith.addi %c0_i32_130, %c6_i32 : i32
    %c1_i32_131 = arith.constant 1 : i32
    scf.for %arg22 = %c0_i32_130 to %98 step %c1_i32_131  : i32 {
      %c2_i32 = arith.constant 2 : i32
      %123 = arith.muli %arg22, %c2_i32 : i32
      %c0_i32_165 = arith.constant 0 : i32
      %124 = arith.addi %123, %c0_i32_165 : i32
      %125 = arith.index_cast %124 : i32 to index
      %c0_166 = arith.constant 0 : index
      %c0_167 = arith.constant 0 : index
      %126 = vector.load %arg19[%125, %c0_166, %c0_167] : memref<32x8x20xbf16, #tpu.memory_space<vmem>>, vector<1x8x20xbf16>
      %127 = vector.shape_cast %126 : vector<1x8x20xbf16> to vector<8x20xbf16>
      %c0_168 = arith.constant 0 : index
      %c0_169 = arith.constant 0 : index
      %128 = vector.load %arg21[%c0_168, %c0_169] : memref<72x20xbf16, #tpu.memory_space<vmem>>, vector<8x20xbf16>
      tpu.vector_store %arg21[%c0_168, %c0_169], %127 {strides = array<i32>} : memref<72x20xbf16, #tpu.memory_space<vmem>>, vector<8x20xbf16>,
      %c2_i32_170 = arith.constant 2 : i32
      %129 = arith.muli %arg22, %c2_i32_170 : i32
      %c1_i32_171 = arith.constant 1 : i32
      %130 = arith.addi %129, %c1_i32_171 : i32
      %131 = arith.index_cast %130 : i32 to index
      %c0_172 = arith.constant 0 : index
      %c0_173 = arith.constant 0 : index
      %132 = vector.load %arg19[%131, %c0_172, %c0_173] : memref<32x8x20xbf16, #tpu.memory_space<vmem>>, vector<1x8x20xbf16>
      %133 = vector.shape_cast %132 : vector<1x8x20xbf16> to vector<8x20xbf16>
      %c8_174 = arith.constant 8 : index
      %c0_175 = arith.constant 0 : index
      %134 = vector.load %arg21[%c8_174, %c0_175] : memref<72x20xbf16, #tpu.memory_space<vmem>>, vector<8x20xbf16>
      tpu.vector_store %arg21[%c8_174, %c0_175], %133 {strides = array<i32>} : memref<72x20xbf16, #tpu.memory_space<vmem>>, vector<8x20xbf16>,
      %c2_i32_176 = arith.constant 2 : i32
      %135 = arith.muli %arg22, %c2_i32_176 : i32
      %c2_i32_177 = arith.constant 2 : i32
      %136 = arith.addi %135, %c2_i32_177 : i32
      %137 = arith.index_cast %136 : i32 to index
      %c0_178 = arith.constant 0 : index
      %c0_179 = arith.constant 0 : index
      %138 = vector.load %arg19[%137, %c0_178, %c0_179] : memref<32x8x20xbf16, #tpu.memory_space<vmem>>, vector<1x8x20xbf16>
      %139 = vector.shape_cast %138 : vector<1x8x20xbf16> to vector<8x20xbf16>
      %c16_180 = arith.constant 16 : index
      %c0_181 = arith.constant 0 : index
      %140 = vector.load %arg21[%c16_180, %c0_181] : memref<72x20xbf16, #tpu.memory_space<vmem>>, vector<8x20xbf16>
      tpu.vector_store %arg21[%c16_180, %c0_181], %139 {strides = array<i32>} : memref<72x20xbf16, #tpu.memory_space<vmem>>, vector<8x20xbf16>,
      %c2_i32_182 = arith.constant 2 : i32
      %141 = arith.muli %arg22, %c2_i32_182 : i32
      %c3_i32 = arith.constant 3 : i32
      %142 = arith.addi %141, %c3_i32 : i32
      %143 = arith.index_cast %142 : i32 to index
      %c0_183 = arith.constant 0 : index
      %c0_184 = arith.constant 0 : index
      %144 = vector.load %arg19[%143, %c0_183, %c0_184] : memref<32x8x20xbf16, #tpu.memory_space<vmem>>, vector<1x8x20xbf16>
      %145 = vector.shape_cast %144 : vector<1x8x20xbf16> to vector<8x20xbf16>
      %c24 = arith.constant 24 : index
      %c0_185 = arith.constant 0 : index
      %146 = vector.load %arg21[%c24, %c0_185] : memref<72x20xbf16, #tpu.memory_space<vmem>>, vector<8x20xbf16>
      tpu.vector_store %arg21[%c24, %c0_185], %145 {strides = array<i32>} : memref<72x20xbf16, #tpu.memory_space<vmem>>, vector<8x20xbf16>,
      %c2_i32_186 = arith.constant 2 : i32
      %147 = arith.muli %arg22, %c2_i32_186 : i32
      %c4_i32 = arith.constant 4 : i32
      %148 = arith.addi %147, %c4_i32 : i32
      %149 = arith.index_cast %148 : i32 to index
      %c0_187 = arith.constant 0 : index
      %c0_188 = arith.constant 0 : index
      %150 = vector.load %arg19[%149, %c0_187, %c0_188] : memref<32x8x20xbf16, #tpu.memory_space<vmem>>, vector<1x8x20xbf16>
      %151 = vector.shape_cast %150 : vector<1x8x20xbf16> to vector<8x20xbf16>
      %c32 = arith.constant 32 : index
      %c0_189 = arith.constant 0 : index
      %152 = vector.load %arg21[%c32, %c0_189] : memref<72x20xbf16, #tpu.memory_space<vmem>>, vector<8x20xbf16>
      tpu.vector_store %arg21[%c32, %c0_189], %151 {strides = array<i32>} : memref<72x20xbf16, #tpu.memory_space<vmem>>, vector<8x20xbf16>,
      %c2_i32_190 = arith.constant 2 : i32
      %153 = arith.muli %arg22, %c2_i32_190 : i32
      %c5_i32 = arith.constant 5 : i32
      %154 = arith.addi %153, %c5_i32 : i32
      %155 = arith.index_cast %154 : i32 to index
      %c0_191 = arith.constant 0 : index
      %c0_192 = arith.constant 0 : index
      %156 = vector.load %arg19[%155, %c0_191, %c0_192] : memref<32x8x20xbf16, #tpu.memory_space<vmem>>, vector<1x8x20xbf16>
      %157 = vector.shape_cast %156 : vector<1x8x20xbf16> to vector<8x20xbf16>
      %c40 = arith.constant 40 : index
      %c0_193 = arith.constant 0 : index
      %158 = vector.load %arg21[%c40, %c0_193] : memref<72x20xbf16, #tpu.memory_space<vmem>>, vector<8x20xbf16>
      tpu.vector_store %arg21[%c40, %c0_193], %157 {strides = array<i32>} : memref<72x20xbf16, #tpu.memory_space<vmem>>, vector<8x20xbf16>,
      %c2_i32_194 = arith.constant 2 : i32
      %159 = arith.muli %arg22, %c2_i32_194 : i32
      %c6_i32_195 = arith.constant 6 : i32
      %160 = arith.addi %159, %c6_i32_195 : i32
      %161 = arith.index_cast %160 : i32 to index
      %c0_196 = arith.constant 0 : index
      %c0_197 = arith.constant 0 : index
      %162 = vector.load %arg19[%161, %c0_196, %c0_197] : memref<32x8x20xbf16, #tpu.memory_space<vmem>>, vector<1x8x20xbf16>
      %163 = vector.shape_cast %162 : vector<1x8x20xbf16> to vector<8x20xbf16>
      %c48 = arith.constant 48 : index
      %c0_198 = arith.constant 0 : index
      %164 = vector.load %arg21[%c48, %c0_198] : memref<72x20xbf16, #tpu.memory_space<vmem>>, vector<8x20xbf16>
      tpu.vector_store %arg21[%c48, %c0_198], %163 {strides = array<i32>} : memref<72x20xbf16, #tpu.memory_space<vmem>>, vector<8x20xbf16>,
      %c2_i32_199 = arith.constant 2 : i32
      %165 = arith.muli %arg22, %c2_i32_199 : i32
      %c7_i32 = arith.constant 7 : i32
      %166 = arith.addi %165, %c7_i32 : i32
      %167 = arith.index_cast %166 : i32 to index
      %c0_200 = arith.constant 0 : index
      %c0_201 = arith.constant 0 : index
      %168 = vector.load %arg19[%167, %c0_200, %c0_201] : memref<32x8x20xbf16, #tpu.memory_space<vmem>>, vector<1x8x20xbf16>
      %169 = vector.shape_cast %168 : vector<1x8x20xbf16> to vector<8x20xbf16>
      %c56 = arith.constant 56 : index
      %c0_202 = arith.constant 0 : index
      %170 = vector.load %arg21[%c56, %c0_202] : memref<72x20xbf16, #tpu.memory_space<vmem>>, vector<8x20xbf16>
      tpu.vector_store %arg21[%c56, %c0_202], %169 {strides = array<i32>} : memref<72x20xbf16, #tpu.memory_space<vmem>>, vector<8x20xbf16>,
      %c2_i32_203 = arith.constant 2 : i32
      %171 = arith.muli %arg22, %c2_i32_203 : i32
      %c8_i32_204 = arith.constant 8 : i32
      %172 = arith.addi %171, %c8_i32_204 : i32
      %173 = arith.index_cast %172 : i32 to index
      %c0_205 = arith.constant 0 : index
      %c0_206 = arith.constant 0 : index
      %174 = vector.load %arg19[%173, %c0_205, %c0_206] : memref<32x8x20xbf16, #tpu.memory_space<vmem>>, vector<1x8x20xbf16>
      %175 = vector.shape_cast %174 : vector<1x8x20xbf16> to vector<8x20xbf16>
      %c64 = arith.constant 64 : index
      %c0_207 = arith.constant 0 : index
      %176 = vector.load %arg21[%c64, %c0_207] : memref<72x20xbf16, #tpu.memory_space<vmem>>, vector<8x20xbf16>
      tpu.vector_store %arg21[%c64, %c0_207], %175 {strides = array<i32>} : memref<72x20xbf16, #tpu.memory_space<vmem>>, vector<8x20xbf16>,
      %c0_208 = arith.constant 0 : index
      %c0_209 = arith.constant 0 : index
      %177 = vector.load %arg21[%c0_208, %c0_209] : memref<72x20xbf16, #tpu.memory_space<vmem>>, vector<72x16xbf16>
      %cst_210 = arith.constant dense<0.000000e+00> : vector<8x16xf32>
      %178 = tpu.matmul %93, %177, %cst_210 {dimension_numbers = #tpu.dot_dimension_numbers<[1], [0], [0], [1], [0, 0, 1, 1], [], []>} : vector<8x72xbf16>, vector<72x16xbf16>, vector<8x16xf32> -> vector<8x16xf32>
      %c0_211 = arith.constant 0 : index
      %c2_212 = arith.constant 2 : index
      %179 = vector.load %arg21[%c0_211, %c2_212] : memref<72x20xbf16, #tpu.memory_space<vmem>>, vector<72x16xbf16>
      %cst_213 = arith.constant dense<0.000000e+00> : vector<8x16xf32>
      %180 = tpu.matmul %95, %179, %cst_213 {dimension_numbers = #tpu.dot_dimension_numbers<[1], [0], [0], [1], [0, 0, 1, 1], [], []>} : vector<8x72xbf16>, vector<72x16xbf16>, vector<8x16xf32> -> vector<8x16xf32>
      %181 = arith.addf %178, %180 : vector<8x16xf32>
      %c0_214 = arith.constant 0 : index
      %c4_215 = arith.constant 4 : index
      %182 = vector.load %arg21[%c0_214, %c4_215] : memref<72x20xbf16, #tpu.memory_space<vmem>>, vector<72x16xbf16>
      %cst_216 = arith.constant dense<0.000000e+00> : vector<8x16xf32>
      %183 = tpu.matmul %97, %182, %cst_216 {dimension_numbers = #tpu.dot_dimension_numbers<[1], [0], [0], [1], [0, 0, 1, 1], [], []>} : vector<8x72xbf16>, vector<72x16xbf16>, vector<8x16xf32> -> vector<8x16xf32>
      %184 = arith.addf %181, %183 : vector<8x16xf32>
      %185 = vector.broadcast %91 : vector<8x1xf32> to vector<8x16xf32>
      %186 = arith.addf %184, %185 : vector<8x16xf32>
      %cst_217 = arith.constant 0.000000e+00 : f32
      %187 = vector.broadcast %cst_217 : f32 to vector<8x16xf32>
      %188 = arith.cmpf ogt, %186, %187 : vector<8x16xf32>
      %cst_218 = arith.constant 1.000000e-01 : f32
      %189 = vector.broadcast %cst_218 : f32 to vector<8x16xf32>
      %190 = arith.mulf %189, %186 : vector<8x16xf32>
      %191 = arith.select %188, %186, %190 : vector<8x16xi1>, vector<8x16xf32>
      %192 = arith.truncf %191 : vector<8x16xf32> to vector<8x16xbf16>
      %c0_219 = arith.constant 0 : index
      %193 = arith.index_cast %arg22 : i32 to index
      %c0_220 = arith.constant 0 : index
      %c0_221 = arith.constant 0 : index
      %194 = vector.load %arg16[%c0_219, %193, %c0_220, %c0_221] : memref<1x6x8x16xbf16, #tpu.memory_space<vmem>>, vector<1x1x8x16xbf16>
      %195 = vector.shape_cast %194 : vector<1x1x8x16xbf16> to vector<8x16xbf16>
      %196 = vector.shape_cast %192 : vector<8x16xbf16> to vector<1x1x8x16xbf16>
      tpu.vector_store %arg16[%c0_219, %193, %c0_220, %c0_221], %196 {strides = array<i32>} : memref<1x6x8x16xbf16, #tpu.memory_space<vmem>>, vector<1x1x8x16xbf16>,
      %c1_i32_222 = arith.constant 1 : i32
      %197 = arith.addi %c1_i32_222, %arg22 : i32
      %198 = arith.index_cast %197 : i32 to index
      %c0_223 = arith.constant 0 : index
      %c1_224 = arith.constant 1 : index
      %199 = vector.load %arg20[%198, %c0_223, %c1_224] : memref<32x8x20xbf16, #tpu.memory_space<vmem>>, vector<1x8x16xbf16>
      %200 = vector.shape_cast %199 : vector<1x8x16xbf16> to vector<8x16xbf16>
      %201 = vector.shape_cast %192 : vector<8x16xbf16> to vector<1x8x16xbf16>
      tpu.vector_store %arg20[%198, %c0_223, %c1_224], %201 {strides = array<i32>} : memref<32x8x20xbf16, #tpu.memory_space<vmem>>, vector<1x8x16xbf16>,
    }
    %c6_i32_132 = arith.constant 6 : i32
    %cst_133 = arith.constant 0.000000e+00 : bf16
    %99 = vector.broadcast %cst_133 : bf16 to vector<1x8x18xbf16>
    %c0_134 = arith.constant 0 : index
    %c0_135 = arith.constant 0 : index
    %c0_136 = arith.constant 0 : index
    %100 = vector.load %arg19[%c0_134, %c0_135, %c0_136] : memref<32x8x20xbf16, #tpu.memory_space<vmem>>, vector<1x8x18xbf16>
    tpu.vector_store %arg19[%c0_134, %c0_135, %c0_136], %99 {strides = array<i32>} : memref<32x8x20xbf16, #tpu.memory_space<vmem>>, vector<1x8x18xbf16>,
    %c7_137 = arith.constant 7 : index
    %c0_138 = arith.constant 0 : index
    %c0_139 = arith.constant 0 : index
    %101 = vector.load %arg19[%c7_137, %c0_138, %c0_139] : memref<32x8x20xbf16, #tpu.memory_space<vmem>>, vector<1x8x18xbf16>
    tpu.vector_store %arg19[%c7_137, %c0_138, %c0_139], %99 {strides = array<i32>} : memref<32x8x20xbf16, #tpu.memory_space<vmem>>, vector<1x8x18xbf16>,
    %cst_140 = arith.constant 0.000000e+00 : bf16
    %102 = vector.broadcast %cst_140 : bf16 to vector<6x8x1xbf16>
    %c1_141 = arith.constant 1 : index
    %c0_142 = arith.constant 0 : index
    %c0_143 = arith.constant 0 : index
    %103 = vector.load %arg19[%c1_141, %c0_142, %c0_143] : memref<32x8x20xbf16, #tpu.memory_space<vmem>>, vector<6x8x1xbf16>
    tpu.vector_store %arg19[%c1_141, %c0_142, %c0_143], %102 {strides = array<i32>} : memref<32x8x20xbf16, #tpu.memory_space<vmem>>, vector<6x8x1xbf16>,
    %c1_144 = arith.constant 1 : index
    %c0_145 = arith.constant 0 : index
    %c17_146 = arith.constant 17 : index
    %104 = vector.load %arg19[%c1_144, %c0_145, %c17_146] : memref<32x8x20xbf16, #tpu.memory_space<vmem>>, vector<6x8x1xbf16>
    tpu.vector_store %arg19[%c1_144, %c0_145, %c17_146], %102 {strides = array<i32>} : memref<32x8x20xbf16, #tpu.memory_space<vmem>>, vector<6x8x1xbf16>,
    %c0_147 = arith.constant 0 : index
    %c0_148 = arith.constant 0 : index
    %c0_149 = arith.constant 0 : index
    %105 = vector.load %arg10[%c0_147, %c0_148, %c0_149] : memref<3x8x24xbf16, #tpu.memory_space<vmem>>, vector<3x8x24xbf16>
    %c0_150 = arith.constant 0 : index
    %c0_151 = arith.constant 0 : index
    %106 = vector.load %arg11[%c0_150, %c0_151] : memref<8x1xf32, #tpu.memory_space<vmem>>, vector<8x1xf32>
    %107 = vector.extract_strided_slice %105 {offsets = [0, 0, 0], sizes = [1, 8, 24], strides = [1, 1, 1]} : vector<3x8x24xbf16> to vector<1x8x24xbf16>
    %108 = vector.shape_cast %107 : vector<1x8x24xbf16> to vector<8x24xbf16>
    %109 = vector.extract_strided_slice %105 {offsets = [1, 0, 0], sizes = [1, 8, 24], strides = [1, 1, 1]} : vector<3x8x24xbf16> to vector<1x8x24xbf16>
    %110 = vector.shape_cast %109 : vector<1x8x24xbf16> to vector<8x24xbf16>
    %111 = vector.extract_strided_slice %105 {offsets = [2, 0, 0], sizes = [1, 8, 24], strides = [1, 1, 1]} : vector<3x8x24xbf16> to vector<1x8x24xbf16>
    %112 = vector.shape_cast %111 : vector<1x8x24xbf16> to vector<8x24xbf16>
    %c0_i32_152 = arith.constant 0 : i32
    %c6_i32_153 = arith.constant 6 : i32
    %113 = arith.addi %c0_i32_152, %c6_i32_153 : i32
    %c1_i32_154 = arith.constant 1 : i32
    scf.for %arg22 = %c0_i32_152 to %113 step %c1_i32_154  : i32 {
      %c1_i32_165 = arith.constant 1 : i32
      %123 = arith.muli %arg22, %c1_i32_165 : i32
      %c0_i32_166 = arith.constant 0 : i32
      %124 = arith.addi %123, %c0_i32_166 : i32
      %125 = arith.index_cast %124 : i32 to index
      %c0_167 = arith.constant 0 : index
      %c0_168 = arith.constant 0 : index
      %126 = vector.load %arg20[%125, %c0_167, %c0_168] : memref<32x8x20xbf16, #tpu.memory_space<vmem>>, vector<1x8x18xbf16>
      %127 = vector.shape_cast %126 : vector<1x8x18xbf16> to vector<8x18xbf16>
      %c0_169 = arith.constant 0 : index
      %c0_170 = arith.constant 0 : index
      %128 = vector.load %arg21[%c0_169, %c0_170] : memref<72x20xbf16, #tpu.memory_space<vmem>>, vector<8x18xbf16>
      tpu.vector_store %arg21[%c0_169, %c0_170], %127 {strides = array<i32>} : memref<72x20xbf16, #tpu.memory_space<vmem>>, vector<8x18xbf16>,
      %c1_i32_171 = arith.constant 1 : i32
      %129 = arith.muli %arg22, %c1_i32_171 : i32
      %c1_i32_172 = arith.constant 1 : i32
      %130 = arith.addi %129, %c1_i32_172 : i32
      %131 = arith.index_cast %130 : i32 to index
      %c0_173 = arith.constant 0 : index
      %c0_174 = arith.constant 0 : index
      %132 = vector.load %arg20[%131, %c0_173, %c0_174] : memref<32x8x20xbf16, #tpu.memory_space<vmem>>, vector<1x8x18xbf16>
      %133 = vector.shape_cast %132 : vector<1x8x18xbf16> to vector<8x18xbf16>
      %c8_175 = arith.constant 8 : index
      %c0_176 = arith.constant 0 : index
      %134 = vector.load %arg21[%c8_175, %c0_176] : memref<72x20xbf16, #tpu.memory_space<vmem>>, vector<8x18xbf16>
      tpu.vector_store %arg21[%c8_175, %c0_176], %133 {strides = array<i32>} : memref<72x20xbf16, #tpu.memory_space<vmem>>, vector<8x18xbf16>,
      %c1_i32_177 = arith.constant 1 : i32
      %135 = arith.muli %arg22, %c1_i32_177 : i32
      %c2_i32 = arith.constant 2 : i32
      %136 = arith.addi %135, %c2_i32 : i32
      %137 = arith.index_cast %136 : i32 to index
      %c0_178 = arith.constant 0 : index
      %c0_179 = arith.constant 0 : index
      %138 = vector.load %arg20[%137, %c0_178, %c0_179] : memref<32x8x20xbf16, #tpu.memory_space<vmem>>, vector<1x8x18xbf16>
      %139 = vector.shape_cast %138 : vector<1x8x18xbf16> to vector<8x18xbf16>
      %c16_180 = arith.constant 16 : index
      %c0_181 = arith.constant 0 : index
      %140 = vector.load %arg21[%c16_180, %c0_181] : memref<72x20xbf16, #tpu.memory_space<vmem>>, vector<8x18xbf16>
      tpu.vector_store %arg21[%c16_180, %c0_181], %139 {strides = array<i32>} : memref<72x20xbf16, #tpu.memory_space<vmem>>, vector<8x18xbf16>,
      %c0_182 = arith.constant 0 : index
      %c0_183 = arith.constant 0 : index
      %141 = vector.load %arg21[%c0_182, %c0_183] : memref<72x20xbf16, #tpu.memory_space<vmem>>, vector<24x16xbf16>
      %cst_184 = arith.constant dense<0.000000e+00> : vector<8x16xf32>
      %142 = tpu.matmul %108, %141, %cst_184 {dimension_numbers = #tpu.dot_dimension_numbers<[1], [0], [0], [1], [0, 0, 1, 1], [], []>} : vector<8x24xbf16>, vector<24x16xbf16>, vector<8x16xf32> -> vector<8x16xf32>
      %c0_185 = arith.constant 0 : index
      %c1_186 = arith.constant 1 : index
      %143 = vector.load %arg21[%c0_185, %c1_186] : memref<72x20xbf16, #tpu.memory_space<vmem>>, vector<24x16xbf16>
      %cst_187 = arith.constant dense<0.000000e+00> : vector<8x16xf32>
      %144 = tpu.matmul %110, %143, %cst_187 {dimension_numbers = #tpu.dot_dimension_numbers<[1], [0], [0], [1], [0, 0, 1, 1], [], []>} : vector<8x24xbf16>, vector<24x16xbf16>, vector<8x16xf32> -> vector<8x16xf32>
      %145 = arith.addf %142, %144 : vector<8x16xf32>
      %c0_188 = arith.constant 0 : index
      %c2_189 = arith.constant 2 : index
      %146 = vector.load %arg21[%c0_188, %c2_189] : memref<72x20xbf16, #tpu.memory_space<vmem>>, vector<24x16xbf16>
      %cst_190 = arith.constant dense<0.000000e+00> : vector<8x16xf32>
      %147 = tpu.matmul %112, %146, %cst_190 {dimension_numbers = #tpu.dot_dimension_numbers<[1], [0], [0], [1], [0, 0, 1, 1], [], []>} : vector<8x24xbf16>, vector<24x16xbf16>, vector<8x16xf32> -> vector<8x16xf32>
      %148 = arith.addf %145, %147 : vector<8x16xf32>
      %149 = vector.broadcast %106 : vector<8x1xf32> to vector<8x16xf32>
      %150 = arith.addf %148, %149 : vector<8x16xf32>
      %cst_191 = arith.constant 0.000000e+00 : f32
      %151 = vector.broadcast %cst_191 : f32 to vector<8x16xf32>
      %152 = arith.cmpf ogt, %150, %151 : vector<8x16xf32>
      %cst_192 = arith.constant 1.000000e-01 : f32
      %153 = vector.broadcast %cst_192 : f32 to vector<8x16xf32>
      %154 = arith.mulf %153, %150 : vector<8x16xf32>
      %155 = arith.select %152, %150, %154 : vector<8x16xi1>, vector<8x16xf32>
      %156 = arith.truncf %155 : vector<8x16xf32> to vector<8x16xbf16>
      %c0_193 = arith.constant 0 : index
      %157 = arith.index_cast %arg22 : i32 to index
      %c0_194 = arith.constant 0 : index
      %c0_195 = arith.constant 0 : index
      %158 = vector.load %arg17[%c0_193, %157, %c0_194, %c0_195] : memref<1x6x8x16xbf16, #tpu.memory_space<vmem>>, vector<1x1x8x16xbf16>
      %159 = vector.shape_cast %158 : vector<1x1x8x16xbf16> to vector<8x16xbf16>
      %160 = vector.shape_cast %156 : vector<8x16xbf16> to vector<1x1x8x16xbf16>
      tpu.vector_store %arg17[%c0_193, %157, %c0_194, %c0_195], %160 {strides = array<i32>} : memref<1x6x8x16xbf16, #tpu.memory_space<vmem>>, vector<1x1x8x16xbf16>,
      %c1_i32_196 = arith.constant 1 : i32
      %161 = arith.addi %c1_i32_196, %arg22 : i32
      %162 = arith.index_cast %161 : i32 to index
      %c0_197 = arith.constant 0 : index
      %c1_198 = arith.constant 1 : index
      %163 = vector.load %arg19[%162, %c0_197, %c1_198] : memref<32x8x20xbf16, #tpu.memory_space<vmem>>, vector<1x8x16xbf16>
      %164 = vector.shape_cast %163 : vector<1x8x16xbf16> to vector<8x16xbf16>
      %165 = vector.shape_cast %156 : vector<8x16xbf16> to vector<1x8x16xbf16>
      tpu.vector_store %arg19[%162, %c0_197, %c1_198], %165 {strides = array<i32>} : memref<32x8x20xbf16, #tpu.memory_space<vmem>>, vector<1x8x16xbf16>,
    }
    %c6_i32_155 = arith.constant 6 : i32
    %c0_156 = arith.constant 0 : index
    %c0_157 = arith.constant 0 : index
    %c0_158 = arith.constant 0 : index
    %114 = vector.load %arg12[%c0_156, %c0_157, %c0_158] : memref<3x1x24xbf16, #tpu.memory_space<vmem>>, vector<3x1x24xbf16>
    %c0_159 = arith.constant 0 : index
    %c0_160 = arith.constant 0 : index
    %115 = vector.load %arg13[%c0_159, %c0_160] : memref<1x1xf32, #tpu.memory_space<vmem>>, vector<1x1xf32>
    %116 = vector.extract_strided_slice %114 {offsets = [0, 0, 0], sizes = [1, 1, 24], strides = [1, 1, 1]} : vector<3x1x24xbf16> to vector<1x1x24xbf16>
    %117 = vector.shape_cast %116 : vector<1x1x24xbf16> to vector<1x24xbf16>
    %118 = vector.extract_strided_slice %114 {offsets = [1, 0, 0], sizes = [1, 1, 24], strides = [1, 1, 1]} : vector<3x1x24xbf16> to vector<1x1x24xbf16>
    %119 = vector.shape_cast %118 : vector<1x1x24xbf16> to vector<1x24xbf16>
    %120 = vector.extract_strided_slice %114 {offsets = [2, 0, 0], sizes = [1, 1, 24], strides = [1, 1, 1]} : vector<3x1x24xbf16> to vector<1x1x24xbf16>
    %121 = vector.shape_cast %120 : vector<1x1x24xbf16> to vector<1x24xbf16>
    %c0_i32_161 = arith.constant 0 : i32
    %c6_i32_162 = arith.constant 6 : i32
    %122 = arith.addi %c0_i32_161, %c6_i32_162 : i32
    %c1_i32_163 = arith.constant 1 : i32
    scf.for %arg22 = %c0_i32_161 to %122 step %c1_i32_163  : i32 {
      %c1_i32_165 = arith.constant 1 : i32
      %123 = arith.muli %arg22, %c1_i32_165 : i32
      %c0_i32_166 = arith.constant 0 : i32
      %124 = arith.addi %123, %c0_i32_166 : i32
      %125 = arith.index_cast %124 : i32 to index
      %c0_167 = arith.constant 0 : index
      %c0_168 = arith.constant 0 : index
      %126 = vector.load %arg19[%125, %c0_167, %c0_168] : memref<32x8x20xbf16, #tpu.memory_space<vmem>>, vector<1x8x18xbf16>
      %127 = vector.shape_cast %126 : vector<1x8x18xbf16> to vector<8x18xbf16>
      %c0_169 = arith.constant 0 : index
      %c0_170 = arith.constant 0 : index
      %128 = vector.load %arg21[%c0_169, %c0_170] : memref<72x20xbf16, #tpu.memory_space<vmem>>, vector<8x18xbf16>
      tpu.vector_store %arg21[%c0_169, %c0_170], %127 {strides = array<i32>} : memref<72x20xbf16, #tpu.memory_space<vmem>>, vector<8x18xbf16>,
      %c1_i32_171 = arith.constant 1 : i32
      %129 = arith.muli %arg22, %c1_i32_171 : i32
      %c1_i32_172 = arith.constant 1 : i32
      %130 = arith.addi %129, %c1_i32_172 : i32
      %131 = arith.index_cast %130 : i32 to index
      %c0_173 = arith.constant 0 : index
      %c0_174 = arith.constant 0 : index
      %132 = vector.load %arg19[%131, %c0_173, %c0_174] : memref<32x8x20xbf16, #tpu.memory_space<vmem>>, vector<1x8x18xbf16>
      %133 = vector.shape_cast %132 : vector<1x8x18xbf16> to vector<8x18xbf16>
      %c8_175 = arith.constant 8 : index
      %c0_176 = arith.constant 0 : index
      %134 = vector.load %arg21[%c8_175, %c0_176] : memref<72x20xbf16, #tpu.memory_space<vmem>>, vector<8x18xbf16>
      tpu.vector_store %arg21[%c8_175, %c0_176], %133 {strides = array<i32>} : memref<72x20xbf16, #tpu.memory_space<vmem>>, vector<8x18xbf16>,
      %c1_i32_177 = arith.constant 1 : i32
      %135 = arith.muli %arg22, %c1_i32_177 : i32
      %c2_i32 = arith.constant 2 : i32
      %136 = arith.addi %135, %c2_i32 : i32
      %137 = arith.index_cast %136 : i32 to index
      %c0_178 = arith.constant 0 : index
      %c0_179 = arith.constant 0 : index
      %138 = vector.load %arg19[%137, %c0_178, %c0_179] : memref<32x8x20xbf16, #tpu.memory_space<vmem>>, vector<1x8x18xbf16>
      %139 = vector.shape_cast %138 : vector<1x8x18xbf16> to vector<8x18xbf16>
      %c16_180 = arith.constant 16 : index
      %c0_181 = arith.constant 0 : index
      %140 = vector.load %arg21[%c16_180, %c0_181] : memref<72x20xbf16, #tpu.memory_space<vmem>>, vector<8x18xbf16>
      tpu.vector_store %arg21[%c16_180, %c0_181], %139 {strides = array<i32>} : memref<72x20xbf16, #tpu.memory_space<vmem>>, vector<8x18xbf16>,
      %c0_182 = arith.constant 0 : index
      %c0_183 = arith.constant 0 : index
      %141 = vector.load %arg21[%c0_182, %c0_183] : memref<72x20xbf16, #tpu.memory_space<vmem>>, vector<24x16xbf16>
      %cst_184 = arith.constant dense<0.000000e+00> : vector<1x16xf32>
      %142 = tpu.matmul %117, %141, %cst_184 {dimension_numbers = #tpu.dot_dimension_numbers<[1], [0], [0], [1], [0, 0, 1, 1], [], []>} : vector<1x24xbf16>, vector<24x16xbf16>, vector<1x16xf32> -> vector<1x16xf32>
      %c0_185 = arith.constant 0 : index
      %c1_186 = arith.constant 1 : index
      %143 = vector.load %arg21[%c0_185, %c1_186] : memref<72x20xbf16, #tpu.memory_space<vmem>>, vector<24x16xbf16>
      %cst_187 = arith.constant dense<0.000000e+00> : vector<1x16xf32>
      %144 = tpu.matmul %119, %143, %cst_187 {dimension_numbers = #tpu.dot_dimension_numbers<[1], [0], [0], [1], [0, 0, 1, 1], [], []>} : vector<1x24xbf16>, vector<24x16xbf16>, vector<1x16xf32> -> vector<1x16xf32>
      %145 = arith.addf %142, %144 : vector<1x16xf32>
      %c0_188 = arith.constant 0 : index
      %c2_189 = arith.constant 2 : index
      %146 = vector.load %arg21[%c0_188, %c2_189] : memref<72x20xbf16, #tpu.memory_space<vmem>>, vector<24x16xbf16>
      %cst_190 = arith.constant dense<0.000000e+00> : vector<1x16xf32>
      %147 = tpu.matmul %121, %146, %cst_190 {dimension_numbers = #tpu.dot_dimension_numbers<[1], [0], [0], [1], [0, 0, 1, 1], [], []>} : vector<1x24xbf16>, vector<24x16xbf16>, vector<1x16xf32> -> vector<1x16xf32>
      %148 = arith.addf %145, %147 : vector<1x16xf32>
      %149 = vector.broadcast %115 : vector<1x1xf32> to vector<1x16xf32>
      %150 = arith.addf %148, %149 : vector<1x16xf32>
      %151 = arith.truncf %150 : vector<1x16xf32> to vector<1x16xbf16>
      %c0_191 = arith.constant 0 : index
      %152 = arith.index_cast %arg22 : i32 to index
      %c0_192 = arith.constant 0 : index
      %c0_193 = arith.constant 0 : index
      %153 = vector.load %arg18[%c0_191, %152, %c0_192, %c0_193] : memref<1x6x1x16xbf16, #tpu.memory_space<vmem>>, vector<1x1x1x16xbf16>
      %154 = vector.shape_cast %153 : vector<1x1x1x16xbf16> to vector<1x16xbf16>
      %155 = vector.shape_cast %151 : vector<1x16xbf16> to vector<1x1x1x16xbf16>
      tpu.vector_store %arg18[%c0_191, %152, %c0_192, %c0_193], %155 {strides = array<i32>} : memref<1x6x1x16xbf16, #tpu.memory_space<vmem>>, vector<1x1x1x16xbf16>,
    }
    %c6_i32_164 = arith.constant 6 : i32
    return
  }
  func.func @transform_0(%arg0: i32) -> (i32, i32, i32, i32) {
    %c0_i32 = arith.constant 0 : i32
    %c0_i32_0 = arith.constant 0 : i32
    %c0_i32_1 = arith.constant 0 : i32
    %c0_i32_2 = arith.constant 0 : i32
    return %arg0, %c0_i32, %c0_i32_0, %c0_i32_1 : i32, i32, i32, i32
  }
  func.func @transform_1(%arg0: i32) -> (i32, i32, i32, i32) {
    %c0_i32 = arith.constant 0 : i32
    %c0_i32_0 = arith.constant 0 : i32
    %c0_i32_1 = arith.constant 0 : i32
    %c0_i32_2 = arith.constant 0 : i32
    %c0_i32_3 = arith.constant 0 : i32
    return %c0_i32, %c0_i32_0, %c0_i32_1, %c0_i32_2 : i32, i32, i32, i32
  }
  func.func @transform_2(%arg0: i32) -> (i32, i32, i32) {
    %c0_i32 = arith.constant 0 : i32
    %c0_i32_0 = arith.constant 0 : i32
    %c0_i32_1 = arith.constant 0 : i32
    %c0_i32_2 = arith.constant 0 : i32
    return %c0_i32, %c0_i32_0, %c0_i32_1 : i32, i32, i32
  }
  func.func @transform_3(%arg0: i32) -> (i32, i32, i32) {
    %c0_i32 = arith.constant 0 : i32
    %c0_i32_0 = arith.constant 0 : i32
    %c0_i32_1 = arith.constant 0 : i32
    %c0_i32_2 = arith.constant 0 : i32
    return %c0_i32, %c0_i32_0, %c0_i32_1 : i32, i32, i32
  }
  func.func @transform_4(%arg0: i32) -> (i32, i32) {
    %c0_i32 = arith.constant 0 : i32
    %c0_i32_0 = arith.constant 0 : i32
    %c0_i32_1 = arith.constant 0 : i32
    return %c0_i32, %c0_i32_0 : i32, i32
  }
  func.func @transform_5(%arg0: i32) -> (i32, i32, i32) {
    %c0_i32 = arith.constant 0 : i32
    %c0_i32_0 = arith.constant 0 : i32
    %c0_i32_1 = arith.constant 0 : i32
    %c0_i32_2 = arith.constant 0 : i32
    return %c0_i32, %c0_i32_0, %c0_i32_1 : i32, i32, i32
  }
  func.func @transform_6(%arg0: i32) -> (i32, i32) {
    %c0_i32 = arith.constant 0 : i32
    %c0_i32_0 = arith.constant 0 : i32
    %c0_i32_1 = arith.constant 0 : i32
    return %c0_i32, %c0_i32_0 : i32, i32
  }
  func.func @transform_7(%arg0: i32) -> (i32, i32, i32) {
    %c0_i32 = arith.constant 0 : i32
    %c0_i32_0 = arith.constant 0 : i32
    %c0_i32_1 = arith.constant 0 : i32
    %c0_i32_2 = arith.constant 0 : i32
    return %c0_i32, %c0_i32_0, %c0_i32_1 : i32, i32, i32
  }
  func.func @transform_8(%arg0: i32) -> (i32, i32) {
    %c0_i32 = arith.constant 0 : i32
    %c0_i32_0 = arith.constant 0 : i32
    %c0_i32_1 = arith.constant 0 : i32
    return %c0_i32, %c0_i32_0 : i32, i32
  }
  func.func @transform_9(%arg0: i32) -> (i32, i32, i32) {
    %c0_i32 = arith.constant 0 : i32
    %c0_i32_0 = arith.constant 0 : i32
    %c0_i32_1 = arith.constant 0 : i32
    %c0_i32_2 = arith.constant 0 : i32
    return %c0_i32, %c0_i32_0, %c0_i32_1 : i32, i32, i32
  }
  func.func @transform_10(%arg0: i32) -> (i32, i32) {
    %c0_i32 = arith.constant 0 : i32
    %c0_i32_0 = arith.constant 0 : i32
    %c0_i32_1 = arith.constant 0 : i32
    return %c0_i32, %c0_i32_0 : i32, i32
  }
  func.func @transform_11(%arg0: i32) -> (i32, i32, i32) {
    %c0_i32 = arith.constant 0 : i32
    %c0_i32_0 = arith.constant 0 : i32
    %c0_i32_1 = arith.constant 0 : i32
    %c0_i32_2 = arith.constant 0 : i32
    return %c0_i32, %c0_i32_0, %c0_i32_1 : i32, i32, i32
  }
  func.func @transform_12(%arg0: i32) -> (i32, i32) {
    %c0_i32 = arith.constant 0 : i32
    %c0_i32_0 = arith.constant 0 : i32
    %c0_i32_1 = arith.constant 0 : i32
    return %c0_i32, %c0_i32_0 : i32, i32
  }
  func.func @transform_13(%arg0: i32) -> (i32, i32, i32, i32) {
    %c0_i32 = arith.constant 0 : i32
    %c0_i32_0 = arith.constant 0 : i32
    %c0_i32_1 = arith.constant 0 : i32
    %c0_i32_2 = arith.constant 0 : i32
    return %arg0, %c0_i32, %c0_i32_0, %c0_i32_1 : i32, i32, i32, i32
  }
  func.func @transform_14(%arg0: i32) -> (i32, i32, i32, i32) {
    %c0_i32 = arith.constant 0 : i32
    %c0_i32_0 = arith.constant 0 : i32
    %c0_i32_1 = arith.constant 0 : i32
    %c0_i32_2 = arith.constant 0 : i32
    return %arg0, %c0_i32, %c0_i32_0, %c0_i32_1 : i32, i32, i32, i32
  }
  func.func @transform_15(%arg0: i32) -> (i32, i32, i32, i32) {
    %c0_i32 = arith.constant 0 : i32
    %c0_i32_0 = arith.constant 0 : i32
    %c0_i32_1 = arith.constant 0 : i32
    %c0_i32_2 = arith.constant 0 : i32
    return %arg0, %c0_i32, %c0_i32_0, %c0_i32_1 : i32, i32, i32, i32
  }
  func.func @transform_16(%arg0: i32) -> (i32, i32, i32, i32) {
    %c0_i32 = arith.constant 0 : i32
    %c0_i32_0 = arith.constant 0 : i32
    %c0_i32_1 = arith.constant 0 : i32
    %c0_i32_2 = arith.constant 0 : i32
    return %arg0, %c0_i32, %c0_i32_0, %c0_i32_1 : i32, i32, i32, i32
  }
  func.func @transform_17(%arg0: i32) -> (i32, i32, i32, i32) {
    %c0_i32 = arith.constant 0 : i32
    %c0_i32_0 = arith.constant 0 : i32
    %c0_i32_1 = arith.constant 0 : i32
    %c0_i32_2 = arith.constant 0 : i32
    return %arg0, %c0_i32, %c0_i32_0, %c0_i32_1 : i32, i32, i32, i32
  }
}

</mosaic_0001>

<bundles_post_ra>
// kernel: tpu_custom_call.1
= control target key start
LH: loop header
LB: loop body
LE: loop exit
PB: predicated region body
PF: predicated region fallthrough
CT: control target
= control target key end

     0   :  { %s7377_s0 = inlined_call_operand.hbm [shape: bf16[2,24,2,16], index: 0, kind: input, shape index: {}]   ;;  %s7378_s1 = inlined_call_operand.hbm [shape: bf16[3,3,2,18], index: 1, kind: input, shape index: {}]   ;;  %s7379_s2 = inlined_call_operand.hbm [shape: f32[3,2,1], index: 2, kind: input, shape index: {}]   ;;  %s7380_s3 = inlined_call_operand.hbm [shape: bf16[3,8,18], index: 3, kind: input, shape index: {}]   ;;  %s7381_s4 = inlined_call_operand.hbm [shape: f32[8,1], index: 4, kind: input, shape index: {}]   ;;  %s7382_s5 = inlined_call_operand.hbm [shape: bf16[3,8,72], index: 5, kind: input, shape index: {}]   ;;  %s7383_s6 = inlined_call_operand.hbm [shape: f32[8,1], index: 6, kind: input, shape index: {}]   ;;  %s7384_s7 = inlined_call_operand.hbm [shape: bf16[3,8,72], index: 7, kind: input, shape index: {}]   ;;  %s7385_s8 = inlined_call_operand.hbm [shape: f32[8,1], index: 8, kind: input, shape index: {}]   ;;  %s7386_s9 = inlined_call_operand.hbm [shape: bf16[3,8,24], index: 9, kind: input, shape index: {}]   ;;  %s7387_s10 = inlined_call_operand.hbm [shape: f32[8,1], index: 10, kind: input, shape index: {}]   ;;  %s7388_s11 = inlined_call_operand.hbm [shape: bf16[3,1,24], index: 11, kind: input, shape index: {}]   ;;  %s7389_s12 = inlined_call_operand.<no memory space> [shape: f32[1,1], index: 12, kind: input, shape index: {}]   ;;  %s7390_s13 = inlined_call_operand.hbm [shape: bf16[2,24,8,16], index: 13, kind: output, shape index: {0}]   ;;  %s7391_s14 = inlined_call_operand.hbm [shape: bf16[2,12,8,16], index: 14, kind: output, shape index: {1}]   ;;  %s7392_s15 = inlined_call_operand.hbm [shape: bf16[2,6,8,16], index: 15, kind: output, shape index: {2}]   ;;  %s7393_s16 = inlined_call_operand.hbm [shape: bf16[2,6,8,16], index: 16, kind: output, shape index: {3}]   ;;  %s7394_s17 = inlined_call_operand.hbm [shape: bf16[2,6,1,16], index: 17, kind: output, shape index: {4}]  }
   0x1   :  { %7426 = sst [smem:[#allocation45_spill]] %s7377_s0  ;;  %v23_v0 = vstv %s7389_s12 }
   0x2   :  { %7427 = sst [smem:[#allocation46_spill]] %s7378_s1  ;;  %24 = vst [vmem:[#allocation5] sm:$0x1] %v23_v0 }
   0x3   :  { %7428 = sst [smem:[#allocation47_spill]] %s7379_s2 }
   0x4   :  { %7429 = sst [smem:[#allocation48_spill]] %s7380_s3 }
   0x5   :  { %7430 = sst [smem:[#allocation49_spill]] %s7381_s4 }
   0x6   :  { %7431 = sst [smem:[#allocation50_spill]] %s7382_s5 }
   0x7   :  { %7432 = sst [smem:[#allocation51_spill]] %s7383_s6 }
   0x8   :  { %7433 = sst [smem:[#allocation52_spill]] %s7384_s7 }
   0x9   :  { %7434 = sst [smem:[#allocation53_spill]] %s7385_s8 }
   0xa   :  { %7435 = sst [smem:[#allocation54_spill]] %s7386_s9 }
   0xb   :  { %7436 = sst [smem:[#allocation55_spill]] %s7387_s10 }
   0xc   :  { %7437 = sst [smem:[#allocation56_spill]] %s7388_s11 }
   0xd   :  { %7438 = sst [smem:[#allocation57_spill]] %s7390_s13 }
   0xe   :  { %7439 = sst [smem:[#allocation58_spill]] %s7391_s14 }
   0xf   :  { %7440 = sst [smem:[#allocation59_spill]] %s7392_s15 }
  0x10   :  { %7441 = sst [smem:[#allocation60_spill]] %s7393_s16 }
  0x11   :  { %7442 = sst [smem:[#allocation61_spill]] %s7394_s17 }
  0x12   :  { %25 = vsyncpa [#allocation7], 0 }
  0x13   :  { %27 = vsyncpa [#allocation7 + $0x1], 0 }
  0x14   :  { %28 = vsyncpa [#allocation10], 0 }
  0x15   :  { %29 = vsyncpa [#allocation13], 0 }
  0x16   :  { %30 = vsyncpa [#allocation16], 0 }
  0x17   :  { %31 = vsyncpa [#allocation19], 0 }
  0x18   :  { %32 = vsyncpa [#allocation22], 0 }
  0x19   :  { %33 = vsyncpa [#allocation25], 0 }
  0x1a   :  { %34 = vsyncpa [#allocation8], 0 }
  0x1b   :  { %36 = vsyncpa [#allocation8 + $0x1], 0 }
  0x1c   :  { %37 = vsyncpa [#allocation28], 0 }
  0x1d   :  { %39 = vsyncpa [#allocation28 + $0x1], 0 }
  0x1e   :  { %40 = vsyncpa [#allocation31], 0 }
  0x1f   :  { %42 = vsyncpa [#allocation31 + $0x1], 0  ;;  %s5869_s26 = smov 0   ;;  %s5871_s27 = smov 0  }
  0x20   :  { %s5873_s12 = smov 0   ;;  %s5875_s28 = smov 0  }
  0x21 LB: > { %s5700_s29 = smov [#allocation9]   ;;  %s5890_s30 = sadd.s32 4294967295, %s5666_s28   ;;  %s5666_s28 = sphi %s5875_s28, %s7502_s28   ;;  %s5662_s12 = sphi %s5873_s12, %s7501_s12   ;;  %s5658_s27 = sphi %s5871_s27, %s7500_s27   ;;  %s5654_s26 = sphi %s5869_s26, %s7499_s26  }
  0x22   : > { %s473_s0 = sshll.u32 %s5700_s29, 4  ;;  %7443 = sst [smem:[#allocation43_spill]] %s5890_s30  ;;  %s5895_s0 = int_to_ptr.vmem [resolvable:$true] %s473_s0 }
  0x23   : > { %p4128_p0 = scmp.ge.s32.totalorder %s5666_s28, 1  ;;  %p7409_p1 = scmp.eq.s32.totalorder %s5890_s30, 0 }
  0x24   : > { %p461_p2 = scmp.lt.s32.totalorder %s5666_s28, 3  ;;  %s5701_s19 = smov [#allocation12]  }
  0x25   : > { %s499_s1 = sshll.u32 %s5701_s19, 4  ;;  %s5702_s21 = smov [#allocation15]   ;;  %s5910_s1 = int_to_ptr.vmem [resolvable:$true] %s499_s1 }
  0x26   : > { %p5897_p3 = pnand %p4128_p0, %p461_p2  ;;  %s5912_s22 = sshll.u32 %s5702_s21, 4  ;;  %s524_s22 = int_to_ptr.vmem [resolvable:$true] %s5912_s22 }
  0x27   : > { %s7447_s25 = sld [smem:[#allocation46_spill]] }
  0x28   : > { %s7444_s18 = scalar_select %p5897_p3, 1, 0 }
  0x29   : > { %p4812_p5 = pneg %p5897_p3 }
  0x2a   : > { %7445 = sst [smem:[#allocation44_spill]] %s7444_s18 }
  0x2b   : > { %p5906_p6 = pnand %p4812_p5, %p7409_p1 }
  0x2d   : > { %s5086_s29 = scalar_lea.hbm %s7447_s25, 144  ;;  %p5922_p8 = pneg %p5906_p6 }
  0x2e   : > { %p5087_p7 = scmp.ne.s32.totalorder %s7447_s25, %s5086_s29  ;;  %p5093_p11 = scmp.lt.u32.totalorder %s5086_s29, %s7447_s25 }
  0x30   : > { %p5089_p9 = pnand %p5922_p8, %p5087_p7 }
  0x32   : > { %p5090_p10 = pneg %p5089_p9 }
  0x34   : > { %p5095_p12 = pnand %p5093_p11, %p5090_p10 }
  0x36   : > { %5098 = shalt.err (!%p5095_p12)
}
  0x37   : > { %s5099_s13 = scalar_lea.vmem %s5895_s0, 144  ;;  %s5106_s17 = scalar_lea.vmem %s5895_s0, 160 }
  0x38   : > { %p5100_p13 = scmp.ne.s32.totalorder %s5895_s0, %s5099_s13  ;;  %p5107_p5 = scmp.lt.s32.totalorder %s5895_s0, %s5895_s0 }
  0x39   : > { %p5108_p7 = scmp.lt.s32.totalorder %s5106_s17, %s5099_s13 }
  0x3a   : > { %p5102_p0 = pnand %p5100_p13, %p5922_p8 }
  0x3b   : > { %p5109_p9 = por %p5108_p7, %p5107_p5 }
  0x3c   : > { %p5103_p2 = pneg %p5102_p0 }
  0x3e   : > { %p5110_p4 = pnand %p5109_p9, %p5103_p2 }
  0x40   : > { %5113 = shalt.err (!%p5110_p4)
}
  0x41   : > { %s7407_s15 = smov 16   ;;  %s7411_s23 = smov 1  }
  0x42   : > { %4815 = dma.hbm_to_vmem [thread:$0]  (!%p5906_p6), %s7447_s25, 144, %s5895_s0, [#allocation10], %s7407_s15, %s7407_s15, %s7411_s23  }
  0x43   : > { %s7449_s3 = sld [smem:[#allocation48_spill]] }
  0x49   : > { %s5114_s13 = scalar_lea.hbm %s7449_s3, 192 }
  0x4a   : > { %p5115_p4 = scmp.ne.s32.totalorder %s7449_s3, %s5114_s13  ;;  %p5121_p12 = scmp.lt.u32.totalorder %s5114_s13, %s7449_s3 }
  0x4c   : > { %p5117_p10 = pnand %p5115_p4, %p5922_p8 }
  0x4e   : > { %p5118_p11 = pneg %p5117_p10 }
  0x50   : > { %p5123_p13 = pnand %p5121_p12, %p5118_p11 }
  0x52   : > { %5126 = shalt.err (!%p5123_p13)
}
  0x53   : > { %s5127_s0 = scalar_lea.vmem %s5910_s1, 192  ;;  %p5135_p7 = scmp.lt.s32.totalorder %s5910_s1, %s5910_s1 }
  0x54   : > { %p5128_p0 = scmp.ne.s32.totalorder %s5910_s1, %s5127_s0  ;;  %p5136_p9 = scmp.lt.s32.totalorder %s5127_s0, %s5127_s0 }
  0x56   : > { %p5130_p2 = pnand %p5128_p0, %p5922_p8  ;;  %p5137_p4 = por %p5136_p9, %p5135_p7 }
  0x58   : > { %p5131_p5 = pneg %p5130_p2 }
  0x5a   : > { %p5138_p10 = pnand %p5137_p4, %p5131_p5 }
  0x5c   : > { %5141 = shalt.err (!%p5138_p10)
}
  0x5d   : > { %s5705_s14 = smov 64   ;;  %s5706_s16 = smov 4  }
  0x5e   : > { %4821 = dma.hbm_to_vmem [thread:$0]  (!%p5906_p6), %s7449_s3, 192, %s5910_s1, [#allocation13], %s5705_s14, %s5705_s14, %s5706_s16  }
  0x5f   : > { %s7450_s5 = sld [smem:[#allocation50_spill]] }
  0x65   : > { %s5142_s21 = scalar_lea.hbm %s7450_s5, 192 }
  0x66   : > { %p5143_p11 = scmp.ne.s32.totalorder %s7450_s5, %s5142_s21  ;;  %p5149_p0 = scmp.lt.u32.totalorder %s5142_s21, %s7450_s5 }
  0x68   : > { %p5145_p12 = pnand %p5143_p11, %p5922_p8 }
  0x6a   : > { %p5146_p13 = pneg %p5145_p12 }
  0x6c   : > { %p5151_p2 = pnand %p5149_p0, %p5146_p13 }
  0x6e   : > { %5154 = shalt.err (!%p5151_p2)
}
  0x6f   : > { %s5155_s30 = scalar_lea.vmem %s524_s22, 192  ;;  %p5163_p4 = scmp.lt.s32.totalorder %s524_s22, %s524_s22 }
  0x70   : > { %p5156_p5 = scmp.ne.s32.totalorder %s524_s22, %s5155_s30  ;;  %p5164_p10 = scmp.lt.s32.totalorder %s5155_s30, %s5155_s30 }
  0x72   : > { %p5158_p7 = pnand %p5156_p5, %p5922_p8  ;;  %p5165_p1 = por %p5164_p10, %p5163_p4 }
  0x74   : > { %p5159_p9 = pneg %p5158_p7 }
  0x76   : > { %p5166_p3 = pnand %p5165_p1, %p5159_p9 }
  0x78   : > { %5169 = shalt.err (!%p5166_p3)
}
  0x79   : > { %4827 = dma.hbm_to_vmem [thread:$0]  (!%p5906_p6), %s7450_s5, 192, %s524_s22, [#allocation16], %s5705_s14, %s5705_s14, %s5706_s16  }
  0x7a   : > { %s5707_s18 = smov [#allocation18]   ;;  %s5708_s29 = smov [#allocation21]  }
  0x7b   : > { %s547_s24 = sshll.u32 %s5707_s18, 4  ;;  %s571_s21 = sshll.u32 %s5708_s29, 4  ;;  %s548_s24 = int_to_ptr.vmem [resolvable:$true] %s547_s24  ;;  %s572_s21 = int_to_ptr.vmem [resolvable:$true] %s571_s21 }
  0x7c   : > { %s7451_s7 = sld [smem:[#allocation52_spill]] }
  0x82   : > { %s5170_s0 = scalar_lea.hbm %s7451_s7, 192 }
  0x83   : > { %p5171_p1 = scmp.ne.s32.totalorder %s7451_s7, %s5170_s0  ;;  %p5177_p12 = scmp.lt.u32.totalorder %s5170_s0, %s7451_s7 }
  0x85   : > { %p5173_p3 = pnand %p5171_p1, %p5922_p8 }
  0x87   : > { %p5174_p11 = pneg %p5173_p3 }
  0x89   : > { %p5179_p13 = pnand %p5177_p12, %p5174_p11 }
  0x8b   : > { %5182 = shalt.err (!%p5179_p13)
}
  0x8c   : > { %s5183_s22 = scalar_lea.vmem %s548_s24, 192  ;;  %p5191_p7 = scmp.lt.s32.totalorder %s548_s24, %s548_s24 }
  0x8d   : > { %p5184_p0 = scmp.ne.s32.totalorder %s548_s24, %s5183_s22  ;;  %p5192_p9 = scmp.lt.s32.totalorder %s5183_s22, %s5183_s22 }
  0x8f   : > { %p5186_p2 = pnand %p5184_p0, %p5922_p8  ;;  %p5193_p4 = por %p5192_p9, %p5191_p7 }
  0x91   : > { %p5187_p5 = pneg %p5186_p2 }
  0x93   : > { %p5194_p10 = pnand %p5193_p4, %p5187_p5 }
  0x95   : > { %5197 = shalt.err (!%p5194_p10)
}
  0x96   : > { %4833 = dma.hbm_to_vmem [thread:$0]  (!%p5906_p6), %s7451_s7, 192, %s548_s24, [#allocation19], %s5705_s14, %s5705_s14, %s5706_s16  }
  0x97   : > { %s7452_s9 = sld [smem:[#allocation54_spill]] }
  0x9d   : > { %s5198_s29 = scalar_lea.hbm %s7452_s9, 192 }
  0x9e   : > { %p5199_p1 = scmp.ne.s32.totalorder %s7452_s9, %s5198_s29  ;;  %p5205_p12 = scmp.lt.u32.totalorder %s5198_s29, %s7452_s9 }
  0xa0   : > { %p5201_p3 = pnand %p5199_p1, %p5922_p8 }
  0xa2   : > { %p5202_p11 = pneg %p5201_p3 }
  0xa4   : > { %p5207_p13 = pnand %p5205_p12, %p5202_p11 }
  0xa6   : > { %5210 = shalt.err (!%p5207_p13)
}
  0xa7   : > { %s5211_s1 = scalar_lea.vmem %s572_s21, 192  ;;  %p5219_p7 = scmp.lt.s32.totalorder %s572_s21, %s572_s21 }
  0xa8   : > { %p5212_p0 = scmp.ne.s32.totalorder %s572_s21, %s5211_s1  ;;  %p5220_p9 = scmp.lt.s32.totalorder %s5211_s1, %s5211_s1 }
  0xaa   : > { %p5214_p2 = pnand %p5212_p0, %p5922_p8  ;;  %p5221_p4 = por %p5220_p9, %p5219_p7 }
  0xac   : > { %p5215_p5 = pneg %p5214_p2 }
  0xae   : > { %p5222_p10 = pnand %p5221_p4, %p5215_p5 }
  0xb0   : > { %5225 = shalt.err (!%p5222_p10)
}
  0xb1   : > { %4839 = dma.hbm_to_vmem [thread:$0]  (!%p5906_p6), %s7452_s9, 192, %s572_s21, [#allocation22], %s5705_s14, %s5705_s14, %s5706_s16  }
  0xb2   : > { %s5709_s3 = smov [#allocation11]   ;;  %s7453_s2 = sld [smem:[#allocation47_spill]] }
  0xb3   : > { %s486_s23 = sshll.u32 %s5709_s3, 4  ;;  %s487_s23 = int_to_ptr.vmem [resolvable:$true] %s486_s23 }
  0xb8   : > { %s5226_s29 = scalar_lea.hbm %s7453_s2, 96 }
  0xb9   : > { %p5227_p1 = scmp.ne.s32.totalorder %s7453_s2, %s5226_s29  ;;  %p5233_p12 = scmp.lt.u32.totalorder %s5226_s29, %s7453_s2 }
  0xbb   : > { %p5229_p3 = pnand %p5227_p1, %p5922_p8 }
  0xbd   : > { %p5230_p11 = pneg %p5229_p3 }
  0xbf   : > { %p5235_p13 = pnand %p5233_p12, %p5230_p11 }
  0xc1   : > { %5238 = shalt.err (!%p5235_p13)
}
  0xc2   : > { %s5239_s14 = scalar_lea.vmem %s487_s23, 96  ;;  %p5247_p7 = scmp.lt.s32.totalorder %s487_s23, %s487_s23 }
  0xc3   : > { %p5240_p0 = scmp.ne.s32.totalorder %s487_s23, %s5239_s14  ;;  %p5248_p9 = scmp.lt.s32.totalorder %s5239_s14, %s5239_s14 }
  0xc5   : > { %p5242_p2 = pnand %p5240_p0, %p5922_p8  ;;  %p5249_p4 = por %p5248_p9, %p5247_p7 }
  0xc7   : > { %p5243_p5 = pneg %p5242_p2 }
  0xc9   : > { %p5250_p10 = pnand %p5249_p4, %p5243_p5 }
  0xcb   : > { %5253 = shalt.err (!%p5250_p10)
}
  0xcc   : > { %s5710_s16 = smov 32   ;;  %s5711_s21 = smov 2  }
  0xcd   : > { %4818 = dma.hbm_to_vmem [thread:$0]  (!%p5906_p6), %s7453_s2, 96, %s487_s23, [#allocation10], %s5710_s16, %s5710_s16, %s5711_s21  }
  0xce   : > { %s5712_s22 = smov [#allocation14]   ;;  %s5713_s15 = smov [#allocation17]  }
  0xcf   : > { %s513_s3 = sshll.u32 %s5712_s22, 4  ;;  %s537_s18 = sshll.u32 %s5713_s15, 4  ;;  %s514_s3 = int_to_ptr.vmem [resolvable:$true] %s513_s3  ;;  %s6055_s18 = int_to_ptr.vmem [resolvable:$true] %s537_s18 }
  0xd0   : > { %s7454_s4 = sld [smem:[#allocation49_spill]] }
  0xd6   : > { %s5254_s17 = scalar_lea.hbm %s7454_s4, 128 }
  0xd7   : > { %p5255_p1 = scmp.ne.s32.totalorder %s7454_s4, %s5254_s17  ;;  %p5261_p12 = scmp.lt.u32.totalorder %s5254_s17, %s7454_s4 }
  0xd9   : > { %p5257_p3 = pnand %p5255_p1, %p5922_p8 }
  0xdb   : > { %p5258_p11 = pneg %p5257_p3 }
  0xdd   : > { %p5263_p13 = pnand %p5261_p12, %p5258_p11 }
  0xdf   : > { %5266 = shalt.err (!%p5263_p13)
}
  0xe0   : > { %s5267_s16 = scalar_lea.vmem %s514_s3, 128  ;;  %p5275_p7 = scmp.lt.s32.totalorder %s514_s3, %s514_s3 }
  0xe1   : > { %p5268_p0 = scmp.ne.s32.totalorder %s514_s3, %s5267_s16  ;;  %p5276_p9 = scmp.lt.s32.totalorder %s5267_s16, %s5267_s16 }
  0xe3   : > { %p5270_p2 = pnand %p5268_p0, %p5922_p8  ;;  %p5277_p4 = por %p5276_p9, %p5275_p7 }
  0xe5   : > { %p5271_p5 = pneg %p5270_p2 }
  0xe7   : > { %p5278_p10 = pnand %p5277_p4, %p5271_p5 }
  0xe9   : > { %5281 = shalt.err (!%p5278_p10)
}
  0xea   : > { %4824 = dma.hbm_to_vmem [thread:$0]  (!%p5906_p6), %s7454_s4, 128, %s514_s3, [#allocation13]  }
  0xeb   : > { %s7455_s6 = sld [smem:[#allocation51_spill]] }
  0xf1   : > { %s5282_s15 = scalar_lea.hbm %s7455_s6, 128 }
  0xf2   : > { %p5283_p1 = scmp.ne.s32.totalorder %s7455_s6, %s5282_s15  ;;  %p5289_p12 = scmp.lt.u32.totalorder %s5282_s15, %s7455_s6 }
  0xf4   : > { %p5285_p3 = pnand %p5283_p1, %p5922_p8 }
  0xf6   : > { %p5286_p11 = pneg %p5285_p3 }
  0xf8   : > { %p5291_p13 = pnand %p5289_p12, %p5286_p11 }
  0xfa   : > { %5294 = shalt.err (!%p5291_p13)
}
  0xfb   : > { %s5295_s3 = scalar_lea.vmem %s6055_s18, 128  ;;  %p5303_p7 = scmp.lt.s32.totalorder %s6055_s18, %s6055_s18 }
  0xfc   : > { %p5296_p0 = scmp.ne.s32.totalorder %s6055_s18, %s5295_s3  ;;  %p5304_p9 = scmp.lt.s32.totalorder %s5295_s3, %s5295_s3 }
  0xfe   : > { %p5298_p2 = pnand %p5296_p0, %p5922_p8  ;;  %p5305_p4 = por %p5304_p9, %p5303_p7 }
 0x100   : > { %p5299_p5 = pneg %p5298_p2 }
 0x102   : > { %p5306_p10 = pnand %p5305_p4, %p5299_p5 }
 0x104   : > { %5309 = shalt.err (!%p5306_p10)
}
 0x105   : > { %4830 = dma.hbm_to_vmem [thread:$0]  (!%p5906_p6), %s7455_s6, 128, %s6055_s18, [#allocation16]  }
 0x106   : > { %s5714_s23 = smov [#allocation20]   ;;  %s5715_s21 = smov [#allocation23]  }
 0x107   : > { %s561_s16 = sshll.u32 %s5714_s23, 4  ;;  %s585_s1 = sshll.u32 %s5715_s21, 4  ;;  %s562_s16 = int_to_ptr.vmem [resolvable:$true] %s561_s16  ;;  %s6098_s1 = int_to_ptr.vmem [resolvable:$true] %s585_s1 }
 0x108   : > { %s7456_s8 = sld [smem:[#allocation53_spill]] }
 0x10e   : > { %s5310_s15 = scalar_lea.hbm %s7456_s8, 128 }
 0x10f   : > { %p5311_p1 = scmp.ne.s32.totalorder %s7456_s8, %s5310_s15  ;;  %p5317_p12 = scmp.lt.u32.totalorder %s5310_s15, %s7456_s8 }
 0x111   : > { %p5313_p3 = pnand %p5311_p1, %p5922_p8 }
 0x113   : > { %p5314_p11 = pneg %p5313_p3 }
 0x115   : > { %p5319_p13 = pnand %p5317_p12, %p5314_p11 }
 0x117   : > { %5322 = shalt.err (!%p5319_p13)
}
 0x118   : > { %s5323_s0 = scalar_lea.vmem %s562_s16, 128  ;;  %p5331_p7 = scmp.lt.s32.totalorder %s562_s16, %s562_s16 }
 0x119   : > { %p5324_p0 = scmp.ne.s32.totalorder %s562_s16, %s5323_s0  ;;  %p5332_p9 = scmp.lt.s32.totalorder %s5323_s0, %s5323_s0 }
 0x11b   : > { %p5326_p2 = pnand %p5324_p0, %p5922_p8  ;;  %p5333_p4 = por %p5332_p9, %p5331_p7 }
 0x11d   : > { %p5327_p5 = pneg %p5326_p2 }
 0x11f   : > { %p5334_p10 = pnand %p5333_p4, %p5327_p5 }
 0x121   : > { %5337 = shalt.err (!%p5334_p10)
}
 0x122   : > { %4836 = dma.hbm_to_vmem [thread:$0]  (!%p5906_p6), %s7456_s8, 128, %s562_s16, [#allocation19]  }
 0x123   : > { %s7457_s10 = sld [smem:[#allocation55_spill]] }
 0x129   : > { %s5338_s21 = scalar_lea.hbm %s7457_s10, 128 }
 0x12a   : > { %p5339_p1 = scmp.ne.s32.totalorder %s7457_s10, %s5338_s21  ;;  %p5345_p12 = scmp.lt.u32.totalorder %s5338_s21, %s7457_s10 }
 0x12c   : > { %p5341_p3 = pnand %p5339_p1, %p5922_p8 }
 0x12e   : > { %p5342_p11 = pneg %p5341_p3 }
 0x130   : > { %p5347_p13 = pnand %p5345_p12, %p5342_p11 }
 0x132   : > { %5350 = shalt.err (!%p5347_p13)
}
 0x133   : > { %s5351_s16 = scalar_lea.vmem %s6098_s1, 128  ;;  %p5359_p7 = scmp.lt.s32.totalorder %s6098_s1, %s6098_s1 }
 0x134   : > { %p5352_p0 = scmp.ne.s32.totalorder %s6098_s1, %s5351_s16  ;;  %p5360_p9 = scmp.lt.s32.totalorder %s5351_s16, %s5351_s16 }
 0x136   : > { %p5354_p2 = pnand %p5352_p0, %p5922_p8  ;;  %p5361_p4 = por %p5360_p9, %p5359_p7 }
 0x138   : > { %p5355_p5 = pneg %p5354_p2 }
 0x13a   : > { %p5362_p10 = pnand %p5361_p4, %p5355_p5 }
 0x13c   : > { %5365 = shalt.err (!%p5362_p10)
}
 0x13d   : > { %4842 = dma.hbm_to_vmem [thread:$0]  (!%p5906_p6), %s7457_s10, 128, %s6098_s1, [#allocation22]  }
 0x13e   : > { %s5716_s18 = smov [#allocation24]   ;;  %s7458_s11 = sld [smem:[#allocation56_spill]] }
 0x13f   : > { %s595_s0 = sshll.u32 %s5716_s18, 4  ;;  %s596_s0 = int_to_ptr.vmem [resolvable:$true] %s595_s0 }
 0x144   : > { %s5366_s14 = scalar_lea.hbm %s7458_s11, 48 }
 0x145   : > { %p5367_p1 = scmp.ne.s32.totalorder %s7458_s11, %s5366_s14  ;;  %p5373_p12 = scmp.lt.u32.totalorder %s5366_s14, %s7458_s11 }
 0x147   : > { %p5369_p3 = pnand %p5367_p1, %p5922_p8 }
 0x149   : > { %p5370_p11 = pneg %p5369_p3 }
 0x14b   : > { %p5375_p13 = pnand %p5373_p12, %p5370_p11 }
 0x14d   : > { %5378 = shalt.err (!%p5375_p13)
}
 0x14e   : > { %s5379_s1 = scalar_lea.vmem %s596_s0, 48  ;;  %s5386_s15 = scalar_lea.vmem %s596_s0, 64 }
 0x14f   : > { %p5380_p0 = scmp.ne.s32.totalorder %s596_s0, %s5379_s1  ;;  %p5387_p7 = scmp.lt.s32.totalorder %s596_s0, %s596_s0 }
 0x150   : > { %p5388_p9 = scmp.lt.s32.totalorder %s5386_s15, %s5379_s1 }
 0x151   : > { %p5382_p2 = pnand %p5380_p0, %p5922_p8 }
 0x152   : > { %p5389_p4 = por %p5388_p9, %p5387_p7 }
 0x153   : > { %p5383_p5 = pneg %p5382_p2 }
 0x155   : > { %p5390_p10 = pnand %p5389_p4, %p5383_p5 }
 0x157   : > { %5393 = shalt.err (!%p5390_p10)
}
 0x158   : > { %s7459_s29 = smov 1   ;;  %s7460_s16 = smov 16  }
 0x159   : > { %s7461_s19 = sld [smem:[#allocation43_spill]]  ;;  %s7413_s20 = sadd.s32 4294967294, %s5666_s28  }
 0x15a   : > { %4845 = dma.hbm_to_vmem [thread:$0]  (!%p5906_p6), %s7458_s11, 48, %s596_s0, [#allocation25], %s7460_s16, %s7460_s16, %s7459_s29  }
 0x15b   : > { %s6164_s18 = sadd.s32 1, %s5666_s28   ;;  %s55_s3 = sadd.s32 1, %s5662_s12 }
 0x15c   : > { %s52_s30 = ssub.s32 %s5666_s28, %s6164_s18  ;;  %p62_p8 = scmp.ne.s32.totalorder %s5662_s12, %s5658_s27 }
 0x15d   : > { %p53_p1 = scmp.eq.s32.totalorder %s52_s30, 0  ;;  %p63_p3 = scmp.eq.s32.totalorder %s5666_s28, 0 }
 0x15e   : > { %p68_p11 = scmp.ne.s32.totalorder %s5658_s27, %s5654_s26  ;;  %p350_p5 = scmp.eq.s32.totalorder %s7413_s20, 1 }
 0x15f   : > { %p344_p12 = scmp.eq.s32.totalorder %s7461_s19, 1  ;;  %p64_p13 = por %p63_p3, %p62_p8 }
 0x160   : > { %s6176_s14 = scalar_select %p53_p1, %s5662_s12, %s55_s3  }
 0x161   : > { %p7462_p0 = scmp.eq.s32.totalorder %s7461_s19, 0  ;;  %p6184_p6 = por %p344_p12, %p62_p8 }
 0x162   : > { %p4877_p7 = scmp.lt.s32.totalorder %s5666_s28, 2  ;;  %s612_s21 = sand.u32 1, %s5662_s12  }
 0x163   : > { %p6180_p2 = por %p7462_p0, %p68_p11  ;;  %p6192_p9 = por %p350_p5, %p68_p11 }
 0x164   : > { %s7464_s0 = scalar_select %p6184_p6, 1, 0 }
 0x165   : > { %s7465_s24 = scalar_select %p6192_p9, 1, 0 }
 0x166   : > { %s4745_s22 = smul.u32 24, %s612_s21  ;;  %p6196_p4 = pnand %p4877_p7, %p64_p13 }
 0x167   : > { %s4746_s15 = smul.u32 384, %s5666_s28  ;;  %s7467_s19 = sld [smem:[#allocation45_spill]] }
 0x168   : > { %s616_s30 = scalar_lea.vmem [#allocation6], %s4745_s22  ;;  %s6208_s2 = scalar_lea.sflag [#allocation7], %s612_s21 }
 0x169   : > { %s623_s20 = sshll.u32 %s616_s30, 4  ;;  %p5396_p8 = pneg %p6196_p4  ;;  %s6206_s20 = int_to_ptr.vmem [resolvable:$true] %s623_s20 }
 0x16d   : > { %s6204_s3 = scalar_lea.hbm %s7467_s19, %s4746_s15  ;;  %s5399_s17 = scalar_lea.hbm %s7467_s19, 768 }
 0x16e   : > { %s5394_s4 = scalar_lea.hbm %s6204_s3, 384  ;;  %p5400_p11 = scmp.lt.u32.totalorder %s6204_s3, %s7467_s19 }
 0x16f   : > { %p5395_p10 = scmp.ne.s32.totalorder %s6204_s3, %s5394_s4  ;;  %p5401_p12 = scmp.lt.u32.totalorder %s5399_s17, %s5394_s4 }
 0x170   : > { %p5403_p0 = scmp.lt.u32.totalorder %s5394_s4, %s6204_s3 }
 0x171   : > { %p5397_p1 = pnand %p5396_p8, %p5395_p10  ;;  %p5402_p13 = por %p5401_p12, %p5400_p11 }
 0x173   : > { %p5398_p3 = pneg %p5397_p1  ;;  %p5404_p5 = por %p5403_p0, %p5402_p13 }
 0x175   : > { %p5405_p7 = pnand %p5404_p5, %p5398_p3 }
 0x177   : > { %5408 = shalt.err (!%p5405_p7)
}
 0x178   : > { %s5409_s21 = scalar_lea.vmem %s6206_s20, 384  ;;  %s5717_s22 = smov [#allocation6]  }
 0x179   : > { %p5410_p10 = scmp.ne.s32.totalorder %s6206_s20, %s5409_s21  ;;  %s5414_s30 = sshll.u32 %s5717_s22, 4  ;;  %s5415_s30 = int_to_ptr.vmem [resolvable:$false] %s5414_s30 }
 0x17a   : > { %s5416_s5 = scalar_lea.vmem %s5415_s30, 768  ;;  %p5417_p6 = scmp.lt.s32.totalorder %s6206_s20, %s5415_s30 }
 0x17b   : > { %p5412_p1 = pnand %p5410_p10, %p5396_p8  ;;  %p5418_p11 = scmp.lt.s32.totalorder %s5416_s5, %s5409_s21 }
 0x17d   : > { %p5413_p9 = pneg %p5412_p1  ;;  %p5419_p12 = por %p5418_p11, %p5417_p6 }
 0x17f   : > { %p5420_p13 = pnand %p5419_p12, %p5413_p9 }
 0x181   : > { %5423 = shalt.err (!%p5420_p13)
}
 0x182   : > { %4849 = dma.hbm_to_vmem [thread:$0]  (!%p6196_p4), %s6204_s3, 384, %s6206_s20, %s6208_s2, %s7460_s16, %s7460_s16, %s7459_s29  }
 0x183   : > { %s7468_s4 = sld [smem:[#allocation44_spill]] }
 0x189   : > { %p7469_p8 = scmp.ne.s32.totalorder %s7468_s4, 0 }
 0x18a   : > { %s6242_s6 = sand.u32 (!%p7469_p8), 1, %s5658_s27  }
 0x18b   : > { %635 = sbr.rel (%p7469_p8) target bundleno = 4574 (0x11de), region = 72  ;;  %s638_s1 = scalar_lea.sflag (!%p7469_p8), [#allocation7], %s6242_s6 }
 0x18c   : > { %s6245_s15 = smul.u32 (!%p7469_p8), 24, %s6242_s6 }
 0x18e   : > { %s6249_s13 = scalar_lea.vmem (!%p7469_p8), [#allocation6], %s6245_s15 }
 0x192   : > { %5613 = dma.done.wait (%p6180_p2), %s638_s1, 384  }
 0x193   : > { %5615 = vsyncadd (%p6180_p2), %s638_s1, 4294966912  ;;  %s7470_s2 = sld [smem:[#allocation43_spill]] }
 0x199   : > { %p7471_p6 = scmp.eq.s32.totalorder %s7470_s2, 0 }
 0x19b   : > { %5617 = dma.done.wait (%p7471_p6), [#allocation10], 240   ;;  %p7472_p9 = pmov %p7471_p6 }
 0x19c   : > { %p7473_p4 = pmov %p7471_p6 }
 0x19d   : > { %5619 = vsyncadd (%p7472_p9), [#allocation10], 4294967056 }
 0x19e   : > { %5621 = dma.done.wait (%p7473_p4), [#allocation13], 320   ;;  %p7474_p3 = pmov %p7473_p4 }
 0x1a0   : > { %5623 = vsyncadd (%p7474_p3), [#allocation13], 4294966976  ;;  %p7475_p0 = pmov %p7474_p3 }
 0x1a2   : > { %5625 = dma.done.wait (%p7475_p0), [#allocation16], 320   ;;  %p7476_p5 = pmov %p7475_p0 }
 0x1a3   : > { %p7477_p2 = pmov %p7475_p0 }
 0x1a4   : > { %5627 = vsyncadd (%p7476_p5), [#allocation16], 4294966976 }
 0x1a5   : > { %5629 = dma.done.wait (%p7477_p2), [#allocation19], 320   ;;  %p7478_p7 = pmov %p7475_p0 }
 0x1a6   : > { %p7479_p10 = pmov %p7475_p0 }
 0x1a7   : > { %5631 = vsyncadd (%p7478_p7), [#allocation19], 4294966976 }
 0x1a8   : > { %5633 = dma.done.wait (%p7479_p10), [#allocation22], 320   ;;  %p7480_p1 = pmov %p7475_p0 }
 0x1a9   : > { %p7481_p11 = pmov %p7475_p0 }
 0x1aa   : > { %5635 = vsyncadd (%p7480_p1), [#allocation22], 4294966976 }
 0x1ab   : > { %5637 = dma.done.wait (%p7481_p11), [#allocation25], 48   ;;  %p7482_p12 = pmov %p7475_p0 }
 0x1ac   : > { %vm757_vm0 = vcmask 139264   ;;  %v870_v1 = vlaneseq  ;;  %v5718_v2 = vmov 0   ;;  %v5719_v3 = vmov 1935823168   ;;  %v6447_v8 = vld [vmem:[#allocation9] sm:$0x1] }
 0x1ad   : > { %5639 = vsyncadd (%p7482_p12), [#allocation25], 4294967248  ;;  %758 = vst.msk [vmem:[#allocation3] sm:$0x1] %vm757_vm0, %v5718_v2  ;;  %v6311_v4 = vunpack.c.l.s4 %v5719_v3  ;;  %vm768_vm1 = vcmask 0   ;;  %vm777_vm2 = vcmask 139400  }
 0x1ae   : > { %759 = vst.msk [vmem:[#allocation3 + $0x4] sm:$0x1] %vm757_vm0, %v5718_v2  ;;  %760 = vst.msk [vmem:[#allocation3 + $0x8] sm:$0x1] %vm757_vm0, %v5718_v2  ;;  %v6313_v5 = vshrl.u32 %v870_v1, 7  ;;  %s4748_s29 = smul.u32 96, %s6242_s6 }
 0x1af   : > { %761 = vst.msk [vmem:[#allocation3 + $0xc] sm:$0x1] %vm757_vm0, %v5718_v2  ;;  %763 = vst.msk [vmem:[#allocation3 + $0x30] sm:$0x1] %vm757_vm0, %v5718_v2  ;;  %v869_v6 = vunpack.c.0.s8 %v6311_v4  ;;  %v6449_v9 = vld [vmem:[#allocation9 + $0x1] sm:$0x1] }
 0x1b0   : > { %764 = vst.msk [vmem:[#allocation3 + $0x34] sm:$0x1] %vm757_vm0, %v5718_v2  ;;  %765 = vst.msk [vmem:[#allocation3 + $0x38] sm:$0x1] %vm757_vm0, %v5718_v2  ;;  %v6451_v10 = vld [vmem:[#allocation9 + $0x2] sm:$0x1] }
 0x1b1   : > { %766 = vst.msk [vmem:[#allocation3 + $0x3c] sm:$0x1] %vm757_vm0, %v5718_v2  ;;  %786 = vst.msk [vmem:[#allocation2] sm:$0x1] %vm757_vm0, %v5718_v2  ;;  %v6445_v7 = vsub.s32 %v869_v6, %v6313_v5  ;;  %v6453_v11 = vld [vmem:[#allocation11] sm:$0x3] }
 0x1b2   : > { %787 = vst.msk [vmem:[#allocation2 + $0x4] sm:$0x1] %vm757_vm0, %v5718_v2  ;;  %788 = vst.msk [vmem:[#allocation2 + $0x8] sm:$0x1] %vm757_vm0, %v5718_v2  ;;  %s4749_s16 = smul.u32 48, %s6242_s6  ;;  %s7415_s20 = smov 1  }
 0x1b3   : > { %789 = vst.msk [vmem:[#allocation2 + $0xc] sm:$0x1] %vm757_vm0, %v5718_v2  ;;  %791 = vst.msk [vmem:[#allocation2 + $0x70] sm:$0x1] %vm757_vm0, %v5718_v2  ;;  %s4750_s23 = smul.u32 6, %s6242_s6  ;;  %vm996_vm3 = vcmask 131080  }
 0x1b4   : > { %792 = vst.msk [vmem:[#allocation2 + $0x74] sm:$0x1] %vm757_vm0, %v5718_v2  ;;  %793 = vst.msk [vmem:[#allocation2 + $0x78] sm:$0x1] %vm757_vm0, %v5718_v2  ;;  %s6492_s3 = scalar_lea.vmem [#allocation26], %s4748_s29  ;;  %s6496_s17 = scalar_lea.vmem [#allocation27], %s4749_s16 }
 0x1b5   : > { %794 = vst.msk [vmem:[#allocation2 + $0x7c] sm:$0x1] %vm757_vm0, %v5718_v2  ;;  %v4156_v12 = vld.sshfl [vmem:[%s6249_s13 + $0x2] sm:$0x1 pattern:$0x73625140] }
 0x1b6   : > { %771 = vst.msk [vmem:[#allocation3 + $0x18] sm:$0x1] %vm768_vm1, %v5718_v2  ;;  %796 = vst.msk [vmem:[#allocation2 + $0x10] sm:$0x1] %vm768_vm1, %v5718_v2  ;;  %v901_v13 = vrot.slane %v4156_v12, %v6445_v7  ;;  %s7416_s21 = scalar_lea.vmem [#allocation29], %s6245_s15  ;;  %s7417_s22 = scalar_lea.vmem [#allocation30], %s6245_s15 }
 0x1b7   : > { %797 = vst.msk [vmem:[#allocation2 + $0x14] sm:$0x1] %vm768_vm1, %v5718_v2  ;;  %798 = vst.msk [vmem:[#allocation2 + $0x18] sm:$0x1] %vm768_vm1, %v5718_v2  ;;  %s6502_s30 = scalar_lea.vmem [#allocation32], %s4750_s23  ;;  %s6504_s5 = smov 0  }
 0x1b8   : > { %799 = vst.msk [vmem:[#allocation2 + $0x1c] sm:$0x1] %vm768_vm1, %v5718_v2  ;;  %800 = vst.msk [vmem:[#allocation2 + $0x20] sm:$0x1] %vm768_vm1, %v5718_v2  ;;  %976 = vrot.lane.b32.xlu1 %v901_v13, %s7415_s20 }
 0x1b9   : > { %801 = vst.msk [vmem:[#allocation2 + $0x24] sm:$0x1] %vm768_vm1, %v5718_v2  ;;  %802 = vst.msk [vmem:[#allocation2 + $0x28] sm:$0x1] %vm768_vm1, %v5718_v2 }
 0x1ba   : > { %803 = vst.msk [vmem:[#allocation2 + $0x2c] sm:$0x1] %vm768_vm1, %v5718_v2  ;;  %804 = vst.msk [vmem:[#allocation2 + $0x30] sm:$0x1] %vm768_vm1, %v5718_v2 }
 0x1bb   : > { %805 = vst.msk [vmem:[#allocation2 + $0x34] sm:$0x1] %vm768_vm1, %v5718_v2  ;;  %806 = vst.msk [vmem:[#allocation2 + $0x38] sm:$0x1] %vm768_vm1, %v5718_v2 }
 0x1bc   : > { %807 = vst.msk [vmem:[#allocation2 + $0x3c] sm:$0x1] %vm768_vm1, %v5718_v2  ;;  %808 = vst.msk [vmem:[#allocation2 + $0x40] sm:$0x1] %vm768_vm1, %v5718_v2 }
 0x1bd   : > { %809 = vst.msk [vmem:[#allocation2 + $0x44] sm:$0x1] %vm768_vm1, %v5718_v2  ;;  %810 = vst.msk [vmem:[#allocation2 + $0x48] sm:$0x1] %vm768_vm1, %v5718_v2 }
 0x1be   : > { %811 = vst.msk [vmem:[#allocation2 + $0x4c] sm:$0x1] %vm768_vm1, %v5718_v2  ;;  %812 = vst.msk [vmem:[#allocation2 + $0x50] sm:$0x1] %vm768_vm1, %v5718_v2 }
 0x1bf   : > { %813 = vst.msk [vmem:[#allocation2 + $0x54] sm:$0x1] %vm768_vm1, %v5718_v2  ;;  %814 = vst.msk [vmem:[#allocation2 + $0x58] sm:$0x1] %vm768_vm1, %v5718_v2 }
 0x1c0   : > { %815 = vst.msk [vmem:[#allocation2 + $0x5c] sm:$0x1] %vm768_vm1, %v5718_v2  ;;  %816 = vst.msk [vmem:[#allocation2 + $0x60] sm:$0x1] %vm768_vm1, %v5718_v2 }
 0x1c1   : > { %817 = vst.msk [vmem:[#allocation2 + $0x64] sm:$0x1] %vm768_vm1, %v5718_v2  ;;  %818 = vst.msk [vmem:[#allocation2 + $0x68] sm:$0x1] %vm768_vm1, %v5718_v2 }
 0x1c2   : > { %819 = vst.msk [vmem:[#allocation2 + $0x6c] sm:$0x1] %vm768_vm1, %v5718_v2  ;;  %769 = vst.msk [vmem:[#allocation3 + $0x10] sm:$0x1] %vm768_vm1, %v5718_v2 }
 0x1c3   : > { %770 = vst.msk [vmem:[#allocation3 + $0x14] sm:$0x1] %vm768_vm1, %v5718_v2  ;;  %772 = vst.msk [vmem:[#allocation3 + $0x1c] sm:$0x1] %vm768_vm1, %v5718_v2 }
 0x1c4   : > { %773 = vst.msk [vmem:[#allocation3 + $0x20] sm:$0x1] %vm768_vm1, %v5718_v2  ;;  %774 = vst.msk [vmem:[#allocation3 + $0x24] sm:$0x1] %vm768_vm1, %v5718_v2 }
 0x1c5   : > { %775 = vst.msk [vmem:[#allocation3 + $0x28] sm:$0x1] %vm768_vm1, %v5718_v2  ;;  %776 = vst.msk [vmem:[#allocation3 + $0x2c] sm:$0x1] %vm768_vm1, %v5718_v2 }
 0x1c6   : > { %780 = vst.msk [vmem:[#allocation3 + $0x18] sm:$0x1] %vm777_vm2, %v5718_v2  ;;  %820 = vst.msk [vmem:[#allocation2 + $0x10] sm:$0x1] %vm777_vm2, %v5718_v2 }
 0x1c7   : > { %821 = vst.msk [vmem:[#allocation2 + $0x14] sm:$0x1] %vm777_vm2, %v5718_v2  ;;  %822 = vst.msk [vmem:[#allocation2 + $0x18] sm:$0x1] %vm777_vm2, %v5718_v2 }
 0x1c8   : > { %823 = vst.msk [vmem:[#allocation2 + $0x1c] sm:$0x1] %vm777_vm2, %v5718_v2  ;;  %824 = vst.msk [vmem:[#allocation2 + $0x20] sm:$0x1] %vm777_vm2, %v5718_v2 }
 0x1c9   : > { %825 = vst.msk [vmem:[#allocation2 + $0x24] sm:$0x1] %vm777_vm2, %v5718_v2  ;;  %826 = vst.msk [vmem:[#allocation2 + $0x28] sm:$0x1] %vm777_vm2, %v5718_v2 }
 0x1ca   : > { %827 = vst.msk [vmem:[#allocation2 + $0x2c] sm:$0x1] %vm777_vm2, %v5718_v2  ;;  %828 = vst.msk [vmem:[#allocation2 + $0x30] sm:$0x1] %vm777_vm2, %v5718_v2 }
 0x1cb   : > { %829 = vst.msk [vmem:[#allocation2 + $0x34] sm:$0x1] %vm777_vm2, %v5718_v2  ;;  %830 = vst.msk [vmem:[#allocation2 + $0x38] sm:$0x1] %vm777_vm2, %v5718_v2 }
 0x1cc   : > { %831 = vst.msk [vmem:[#allocation2 + $0x3c] sm:$0x1] %vm777_vm2, %v5718_v2  ;;  %832 = vst.msk [vmem:[#allocation2 + $0x40] sm:$0x1] %vm777_vm2, %v5718_v2 }
 0x1cd   : > { %833 = vst.msk [vmem:[#allocation2 + $0x44] sm:$0x1] %vm777_vm2, %v5718_v2  ;;  %834 = vst.msk [vmem:[#allocation2 + $0x48] sm:$0x1] %vm777_vm2, %v5718_v2 }
 0x1ce   : > { %835 = vst.msk [vmem:[#allocation2 + $0x4c] sm:$0x1] %vm777_vm2, %v5718_v2  ;;  %836 = vst.msk [vmem:[#allocation2 + $0x50] sm:$0x1] %vm777_vm2, %v5718_v2 }
 0x1cf   : > { %837 = vst.msk [vmem:[#allocation2 + $0x54] sm:$0x1] %vm777_vm2, %v5718_v2  ;;  %838 = vst.msk [vmem:[#allocation2 + $0x58] sm:$0x1] %vm777_vm2, %v5718_v2 }
 0x1d0   : > { %839 = vst.msk [vmem:[#allocation2 + $0x5c] sm:$0x1] %vm777_vm2, %v5718_v2  ;;  %840 = vst.msk [vmem:[#allocation2 + $0x60] sm:$0x1] %vm777_vm2, %v5718_v2 }
 0x1d1   : > { %841 = vst.msk [vmem:[#allocation2 + $0x64] sm:$0x1] %vm777_vm2, %v5718_v2  ;;  %842 = vst.msk [vmem:[#allocation2 + $0x68] sm:$0x1] %vm777_vm2, %v5718_v2 }
 0x1d2   : > { %843 = vst.msk [vmem:[#allocation2 + $0x6c] sm:$0x1] %vm777_vm2, %v5718_v2  ;;  %778 = vst.msk [vmem:[#allocation3 + $0x10] sm:$0x1] %vm777_vm2, %v5718_v2 }
 0x1d3   : > { %779 = vst.msk [vmem:[#allocation3 + $0x14] sm:$0x1] %vm777_vm2, %v5718_v2  ;;  %781 = vst.msk [vmem:[#allocation3 + $0x1c] sm:$0x1] %vm777_vm2, %v5718_v2 }
 0x1d4   : > { %782 = vst.msk [vmem:[#allocation3 + $0x20] sm:$0x1] %vm777_vm2, %v5718_v2  ;;  %783 = vst.msk [vmem:[#allocation3 + $0x24] sm:$0x1] %vm777_vm2, %v5718_v2 }
 0x1d5   : > { %784 = vst.msk [vmem:[#allocation3 + $0x28] sm:$0x1] %vm777_vm2, %v5718_v2  ;;  %785 = vst.msk [vmem:[#allocation3 + $0x2c] sm:$0x1] %vm777_vm2, %v5718_v2 }
 0x1d6   : > { %v4154_v14 = vld.sshfl [vmem:[%s6249_s13] sm:$0x1 pattern:$0x73625140] }
 0x1d7   : > { %v873_v15 = vrot.slane %v4154_v14, %v6445_v7  ;;  %v4157_v16 = vld.sshfl [vmem:[%s6249_s13 + $0x3] sm:$0x1 pattern:$0x73625140] }
 0x1d8   : > { %v915_v17 = vrot.slane %v4157_v16, %v6445_v7  ;;  %v4155_v18 = vld.sshfl [vmem:[%s6249_s13 + $0x1] sm:$0x1 pattern:$0x73625140] }
 0x1d9   : > { %972 = vrot.lane.b32.xlu0 %v873_v15, %s7415_s20  ;;  %v887_v19 = vrot.slane %v4155_v18, %v6445_v7  ;;  %v4159_v20 = vld.sshfl [vmem:[%s6249_s13 + $0x5] sm:$0x1 pattern:$0x73625140] }
 0x1da   : > { %v4158_v21 = vld.sshfl [vmem:[%s6249_s13 + $0x4] sm:$0x1 pattern:$0x73625140]  ;;  %978 = vrot.lane.b32.xlu1 %v915_v17, %s7415_s20  ;;  %v943_v22 = vrot.slane %v4159_v20, %v6445_v7 }
 0x1db   : > { %v929_v23 = vrot.slane %v4158_v21, %v6445_v7  ;;  %v4161_v24 = vld.sshfl [vmem:[%s6249_s13 + $0x7] sm:$0x1 pattern:$0x73625140] }
 0x1dc   : > { %v4160_v25 = vld.sshfl [vmem:[%s6249_s13 + $0x6] sm:$0x1 pattern:$0x73625140]  ;;  %v971_v26 = vrot.slane %v4161_v24, %v6445_v7 }
 0x1dd   : > { %974 = vrot.lane.b32.xlu0 %v887_v19, %s7415_s20  ;;  %v957_v27 = vrot.slane %v4160_v25, %v6445_v7 }
 0x1de   : > { %982 = vrot.lane.b32.xlu1 %v943_v22, %s7415_s20 }
 0x1e1   : > { %980 = vrot.lane.b32.xlu0 %v929_v23, %s7415_s20 }
 0x1e2   : > { %986 = vrot.lane.b32.xlu1 %v971_v26, %s7415_s20 }
 0x1e5   : > { %984 = vrot.lane.b32.xlu0 %v957_v27, %s7415_s20 }
 0x22a   : > { %v977_v28 = vpop.permute.xlu1 %976 }
 0x22b   : > { %999 = vst.msk [vmem:[#allocation3 + $0x18] sm:$0x1] %vm996_vm3, %v977_v28 }
 0x24b   : > { %v973_v29 = vpop.permute.xlu0 %972 }
 0x24c   : > { %997 = vst.msk [vmem:[#allocation3 + $0x10] sm:$0x1] %vm996_vm3, %v973_v29  ;;  %v979_v30 = vpop.permute.xlu1 %978 }
 0x24d   : > { %1000 = vst.msk [vmem:[#allocation3 + $0x1c] sm:$0x1] %vm996_vm3, %v979_v30 }
 0x24f   : > { %v975_v31 = vpop.permute.xlu0 %974 }
 0x250   : > { %998 = vst.msk [vmem:[#allocation3 + $0x14] sm:$0x1] %vm996_vm3, %v975_v31  ;;  %v983_v32 = vpop.permute.xlu1 %982 }
 0x251   : > { %1002 = vst.msk [vmem:[#allocation3 + $0x24] sm:$0x1] %vm996_vm3, %v983_v32 }
 0x253   : > { %v981_v33 = vpop.permute.xlu0 %980 }
 0x254   : > { %1001 = vst.msk [vmem:[#allocation3 + $0x20] sm:$0x1] %vm996_vm3, %v981_v33  ;;  %v987_v34 = vpop.permute.xlu1 %986 }
 0x255   : > { %1004 = vst.msk [vmem:[#allocation3 + $0x2c] sm:$0x1] %vm996_vm3, %v987_v34 }
 0x257   : > { %v985_v35 = vpop.permute.xlu0 %984 }
 0x258   : > { %1003 = vst.msk [vmem:[#allocation3 + $0x28] sm:$0x1] %vm996_vm3, %v985_v35 }
 0x259 LB: >> { %v5721_v36 = vmov 0.0   ;;  %s4162_s4 = sshll.u32 %s5670_s5, 2  ;;  %vm1026_vm4 = vcmask 140289   ;;  %vm1035_vm5 = vcmask 141314   ;;  %vm1044_vm6 = vcmask 142339   ;;  %s5723_s2 = smov 127   ;;  %s5670_s5 = sphi %s6504_s5, %s1014_s5  }
 0x25a   : >> { %4517 = vmatprep.subr.bf16.mxu0 %v5721_v36  ;;  %4525 = vmatprep.subr.bf16.mxu1 %v5721_v36  ;;  %s1016_s1 = scalar_lea.vmem [#allocation3], %s4162_s4  ;;  %vm5722_vm7 = vmmov 0   ;;  %vm1100_vm8 = vcmask 1040384   ;;  %s5724_s29 = smov 126   ;;  %vm1096_vm9 = vcmask 146432   ;;  %v5725_v55 = vmov 0  }
 0x25b   : >> { %4521 = vmatprep.mubr.msk.bf16.mxu0 %vm5722_vm7, %v5721_v36  ;;  %4529 = vmatprep.mubr.msk.bf16.mxu1 %vm5722_vm7, %v5721_v36  ;;  %s5726_s16 = smov 1   ;;  %s3697_s23 = scalar_lea.vmem [#allocation2], %s4162_s4 }
 0x25c   : >> { %5056 = vset.pattern.permute.xlu0 %v5725_v55  ;;  %s1014_s5 = sadd.s32 1, %s5670_s5  }
 0x25d   : >> { %p1011_p13 = scmp.ge.s32.totalorder %s1014_s5, 8  }
 0x25e   : > { %v4197_v23 = vld.sshfl [vmem:[%s6249_s13 + $0xa] sm:$0x1 pattern:$0x73625140] (%p1011_p13)  ;;  %v6565_v31 = vld [vmem:[#allocation9 + $0x5] sm:$0x1] (%p1011_p13) }
 0x25f   : >> { %v1017_v37 = vld [vmem:[%s1016_s1] sm:$0x1]  ;;  %v4164_v38 = vld [vmem:[%s1016_s1 + $0x4] sm:$0x1]  ;;  %v4166_v39 = vld [vmem:[%s1016_s1 + $0x8] sm:$0x1]  ;;  %v1317_v24 = vrot.slane (%p1011_p13), %v4197_v23, %v6445_v7 }
 0x260   : >> { %1018 = vst.msk [vmem:[#allocation4] sm:$0x1] %vm757_vm0, %v1017_v37  ;;  %v1024_v40 = vrot.slane %v4164_v38, 7  ;;  %v1033_v41 = vrot.slane %v4166_v39, 6  ;;  %v4168_v42 = vld [vmem:[%s1016_s1 + $0xc] sm:$0x1] }
 0x261   : >> { %v4170_v43 = vld [vmem:[%s1016_s1 + $0x10] sm:$0x1]  ;;  %v1042_v44 = vrot.slane %v4168_v42, 5  ;;  %v4172_v45 = vld [vmem:[%s1016_s1 + $0x14] sm:$0x1]  ;;  %s6589_s5 = smov (%p1011_p13), 0  }
 0x262   : >> { %1050 = vst.msk [vmem:[#allocation4 + $0x4] sm:$0x1] %vm757_vm0, %v4170_v43  ;;  %v4174_v46 = vld [vmem:[%s1016_s1 + $0x18] sm:$0x1]  ;;  %v1056_v47 = vrot.slane %v4172_v45, 7 }
 0x263   : >> { %1027 = vst.msk [vmem:[#allocation4] sm:$0x2] %vm1026_vm4, %v1024_v40  ;;  %v1064_v48 = vrot.slane %v4174_v46, 6  ;;  %v4176_v49 = vld [vmem:[%s1016_s1 + $0x1c] sm:$0x1] }
 0x264   : >> { %1036 = vst.msk [vmem:[#allocation4] sm:$0x4] %vm1035_vm5, %v1033_v41  ;;  %v4178_v50 = vld [vmem:[%s1016_s1 + $0x20] sm:$0x1]  ;;  %v1072_v51 = vrot.slane %v4176_v49, 5 }
 0x265   : >> { %1045 = vst.msk [vmem:[#allocation4] sm:$0x8] %vm1044_vm6, %v1042_v44  ;;  %v4195_v25 = vld.sshfl [vmem:[%s6249_s13 + $0x8] sm:$0x1 pattern:$0x73625140] (%p1011_p13) }
 0x266   : >> { %1079 = vst.msk [vmem:[#allocation4 + $0x8] sm:$0x1] %vm757_vm0, %v4178_v50  ;;  %v1289_v26 = vrot.slane (%p1011_p13), %v4195_v25, %v6445_v7  ;;  %v4198_v27 = vld.sshfl [vmem:[%s6249_s13 + $0xb] sm:$0x1 pattern:$0x73625140] (%p1011_p13) }
 0x267   : >> { %1058 = vst.msk [vmem:[#allocation4 + $0x4] sm:$0x2] %vm1026_vm4, %v1056_v47  ;;  %v1331_v28 = vrot.slane (%p1011_p13), %v4198_v27, %v6445_v7  ;;  %v4196_v29 = vld.sshfl [vmem:[%s6249_s13 + $0x9] sm:$0x1 pattern:$0x73625140] (%p1011_p13) }
 0x268   : >> { %1066 = vst.msk [vmem:[#allocation4 + $0x4] sm:$0x4] %vm1035_vm5, %v1064_v48  ;;  %v4199_v30 = vld.sshfl [vmem:[%s6249_s13 + $0xc] sm:$0x1 pattern:$0x73625140] (%p1011_p13) }
 0x269   : >> { %1074 = vst.msk [vmem:[#allocation4 + $0x4] sm:$0x8] %vm1044_vm6, %v1072_v51  ;;  %v6567_v32 = vld [vmem:[#allocation11 + $0x2] sm:$0x3] (%p1011_p13)  ;;  %v1345_v34 = vrot.slane (%p1011_p13), %v4199_v30, %v6445_v7 }
 0x26a   : > { %v4202_v35 = vld.sshfl [vmem:[%s6249_s13 + $0xf] sm:$0x1 pattern:$0x73625140] (%p1011_p13) }
 0x26b   : > { %v1387_v37 = vrot.slane (%p1011_p13), %v4202_v35, %v6445_v7 }
 0x26d   : >> { %v5058_v53 = vld [vmem:[#allocation4 + $0x8] ss:$0 sps:$4 sm:$0x11]  }
 0x26e   : >> { %v1149_v54 = vsel %vm1100_vm8, %v5058_v53, 0 }
 0x270   : >> { %v5057_v52 = vld [vmem:[#allocation4] sm:$0xff]  }
 0x271   : >> { %1091 = vrot.lane.b32.xlu0 %v5057_v52, %s5723_s2  ;;  %1191 = vrot.lane.b32.xlu1 %v5057_v52, %s5724_s29 }
 0x272   : >> { %4526 = vmatpush3.bf16.msra.mxu1 %v5057_v52 }
 0x273   : >> { %4527 = vmatprep.subr.bf16.mxu1 %v5721_v36 }
 0x275   : >> { %1093 = vrot.lane.b32.xlu0 %v5058_v53, %s5723_s2  ;;  %1193 = vrot.lane.b32.xlu1 %v5058_v53, %s5724_s29 }
 0x276   : >> { %4528 = vmatpush3.bf16.msra.mxu1 %v1149_v54 }
 0x279   : >> { %4530 = vmatmul.mubr.msk.bf16.vlgmr.msra.gmra.mrb[0].mxu1 %vm1096_vm9, %v6447_v8  ;;  %1245 = vperm.xlu0 %5056, %v6453_v11   ;;  %v6557_v8 = vld [vmem:[#allocation9 + $0x3] sm:$0x1] (%p1011_p13)  ;;  %v6562_v11 = vld [vmem:[#allocation9 + $0x4] sm:$0x1] (%p1011_p13) }
 0x27d   : > { %1388 = vrot.lane.b32.xlu0 (%p1011_p13), %v1289_v26, %s7415_s20 }
 0x2e3   : >> { %v1092_v56 = vpop.permute.xlu0 %1091  ;;  %v1192_v57 = vpop.permute.xlu1 %1191 }
 0x2e4   : >> { %4518 = vmatpush3.bf16.msra.mxu0 %v1092_v56 }
 0x2e5   : >> { %4519 = vmatprep.subr.bf16.mxu0 %v5721_v36 }
 0x2e7   : >> { %v1094_v58 = vpop.permute.xlu0 %1093  ;;  %v1194_v60 = vpop.permute.xlu1 %1193 }
 0x2e8   : >> { %v1102_v59 = vsel %vm1100_vm8, %v1094_v58, 0  ;;  %v1200_v61 = vsel %vm1100_vm8, %v1194_v60, 0 }
 0x2e9   : >> { %4520 = vmatpush3.bf16.msra.mxu0 %v1102_v59 }
 0x2ea   : >> { %4533 = vmatprep.subr.bf16.mxu0 %v5721_v36 }
 0x2ec   : >> { %4522 = vmatmul.mubr.msk.bf16.vlgmr.msra.gmra.mrb[0].mxu0 %vm1096_vm9, %v6449_v9  ;;  %v1303_v9 = vrot.slane (%p1011_p13), %v4196_v29, %v6445_v7 }
 0x2ed   : >> { %4534 = vmatpush3.bf16.msra.mxu0 %v1192_v57  ;;  %4537 = vmatprep.mubr.msk.bf16.mxu0 %vm5722_vm7, %v5721_v36 }
 0x2ee   : >> { %4535 = vmatprep.subr.bf16.mxu0 %v5721_v36  ;;  %1390 = vrot.lane.b32.xlu0 (%p1011_p13), %v1303_v9, %s7415_s20  ;;  %v4201_v36 = vld.sshfl [vmem:[%s6249_s13 + $0xe] sm:$0x1 pattern:$0x73625140] (%p1011_p13) }
 0x2ef   : > { %v1373_v38 = vrot.slane (%p1011_p13), %v4201_v36, %v6445_v7 }
 0x2f1   : >> { %4536 = vmatpush3.bf16.msra.mxu0 %v1200_v61 }
 0x2f2   : > { %1396 = vrot.lane.b32.xlu0 (%p1011_p13), %v1345_v34, %s7415_s20 }
 0x2f4   : >> { %4538 = vmatmul.mubr.msk.bf16.vlgmr.msra.gmra.mrb[4].mxu0 %vm1096_vm9, %v6451_v10  ;;  %v4200_v10 = vld.sshfl [vmem:[%s6249_s13 + $0xd] sm:$0x1 pattern:$0x73625140] (%p1011_p13) }
 0x2f5   : > { %v1359_v33 = vrot.slane (%p1011_p13), %v4200_v10, %v6445_v7 }
 0x2f6   : > { %1400 = vrot.lane.b32.xlu0 (%p1011_p13), %v1373_v38, %s7415_s20 }
 0x2f8   : >> { %v1246_v15 = vpop.permute.xlu0 %1245 }
 0x2fc   : > { %v1389_v40 = vpop.permute.xlu0 (%p1011_p13), %1388 }
 0x2fd   : > { %1412 = vst.msk [vmem:[#allocation3 + $0x10] sm:$0x1] (%p1011_p13), %vm996_vm3, %v1389_v40 }
 0x34c   : >> { %v1185_v62 = vpop.f32.mrb[0].mxu1 }
 0x34d   : >> { %v4531_v63 = vpop.f32.mrb[1].mxu1 }
 0x34e   : >> { %v1188_v0 = vpop.f32.mrb[2].mxu1 }
 0x34f   : >> { %v4532_v1 = vpop.f32.mrb[3].mxu1 }
 0x360   : > { %v1391_v42 = vpop.permute.xlu0 (%p1011_p13), %1390 }
 0x361   : > { %1413 = vst.msk [vmem:[#allocation3 + $0x14] sm:$0x1] (%p1011_p13), %vm996_vm3, %v1391_v42 }
 0x364   : > { %v1397_v44 = vpop.permute.xlu0 (%p1011_p13), %1396 }
 0x365   : > { %1416 = vst.msk [vmem:[#allocation3 + $0x20] sm:$0x1] (%p1011_p13), %vm996_vm3, %v1397_v44 }
 0x368   : > { %v1401_v46 = vpop.permute.xlu0 (%p1011_p13), %1400 }
 0x369   : > { %1418 = vst.msk [vmem:[#allocation3 + $0x28] sm:$0x1] (%p1011_p13), %vm996_vm3, %v1401_v46 }
 0x3bf   : >> { %v1138_v3 = vpop.f32.mrb[0].mxu0 }
 0x3c0   : >> { %v4523_v4 = vpop.f32.mrb[1].mxu0  ;;  %v1186_v6 = vadd.f32 %v1185_v62, %v1138_v3 }
 0x3c1   : >> { %v1141_v12 = vpop.f32.mrb[2].mxu0 }
 0x3c2   : >> { %v4524_v13 = vpop.f32.mrb[3].mxu0 }
 0x3c7   : >> { %v1236_v14 = vpop.f32.mrb[4].mxu0 }
 0x3c8   : >> { %v1242_v16 = vadd.f32 %v1236_v14, %v1186_v6  ;;  %v4539_v17 = vpop.f32.mrb[5].mxu0 }
 0x3c9   : >> { %v1239_v18 = vpop.f32.mrb[6].mxu0 }
 0x3ca   : >> { %v1248_v19 = vadd.f32 %v1246_v15, %v1242_v16  ;;  %v4540_v20 = vpop.f32.mrb[7].mxu0 }
 0x3cc   : >> { %v4402_v21 = vpack.c.bf16 %v1248_v19, %v1248_v19 }
 0x3ce   : >> { %1253 = vrot.lane.b32.xlu1 %v4402_v21, %s5726_s16 }
 0x3d2   : > { %1392 = vrot.lane.b32.xlu1 (%p1011_p13), %v1317_v24, %s7415_s20 }
 0x3d6   : > { %1394 = vrot.lane.b32.xlu1 (%p1011_p13), %v1331_v28, %s7415_s20 }
 0x3da   : > { %1398 = vrot.lane.b32.xlu1 (%p1011_p13), %v1359_v33, %s7415_s20 }
 0x3de   : > { %1402 = vrot.lane.b32.xlu1 (%p1011_p13), %v1387_v37, %s7415_s20 }
 0x43b   : > { %1013 = sbr.rel (!%p1011_p13) target bundleno = 601 (0x259), region = 369 }
 0x440   : >> { %v1254_v22 = vpop.permute.xlu1 %1253 }
 0x441   : >> { %4186 = vst.msk [vmem:[%s3697_s23 + $0x10] sm:$0x1] %vm996_vm3, %v1254_v22 }
 0x444   : > { %v1393_v39 = vpop.permute.xlu1 %1392 }
 0x445   : > { %1414 = vst.msk [vmem:[#allocation3 + $0x18] sm:$0x1] %vm996_vm3, %v1393_v39 }
 0x448   : > { %v1395_v41 = vpop.permute.xlu1 %1394 }
 0x449   : > { %1415 = vst.msk [vmem:[#allocation3 + $0x1c] sm:$0x1] %vm996_vm3, %v1395_v41 }
 0x44c   : > { %v1399_v43 = vpop.permute.xlu1 %1398 }
 0x44d   : > { %1417 = vst.msk [vmem:[#allocation3 + $0x24] sm:$0x1] %vm996_vm3, %v1399_v43 }
 0x450   : > { %v1403_v45 = vpop.permute.xlu1 %1402 }
 0x451   : > { %1419 = vst.msk [vmem:[#allocation3 + $0x2c] sm:$0x1] %vm996_vm3, %v1403_v45 }
 0x452 LB: >> { %v5727_v47 = vmov 0.0   ;;  %s4203_s4 = sshll.u32 %s5674_s5, 2  ;;  %vm5728_vm10 = vmmov 0   ;;  %s5729_s2 = smov 127   ;;  %v5731_v3 = vmov 0   ;;  %s5674_s5 = sphi %s6589_s5, %s1431_s5  }
 0x453   : >> { %4541 = vmatprep.subr.bf16.mxu0 %v5727_v47  ;;  %4549 = vmatprep.subr.bf16.mxu1 %v5727_v47  ;;  %s1433_s1 = scalar_lea.vmem [#allocation3], %s4203_s4  ;;  %s5730_s29 = smov 126  }
 0x454   : >> { %4545 = vmatprep.mubr.msk.bf16.mxu0 %vm5728_vm10, %v5727_v47  ;;  %4553 = vmatprep.mubr.msk.bf16.mxu1 %vm5728_vm10, %v5727_v47  ;;  %s5732_s16 = smov 1   ;;  %s3726_s23 = scalar_lea.vmem [#allocation2], %s4203_s4 }
 0x455   : >> { %5059 = vset.pattern.permute.xlu0 %v5731_v3  ;;  %s1431_s5 = sadd.s32 1, %s5674_s5  }
 0x456   : >> { %p1428_p8 = scmp.ge.s32.totalorder %s1431_s5, 8  }
 0x457   : > { %v4238_v34 = vld.sshfl [vmem:[%s6249_s13 + $0x12] sm:$0x1 pattern:$0x73625140] (%p1428_p8)  ;;  %v6641_v42 = vld [vmem:[#allocation9 + $0x8] sm:$0x1] (%p1428_p8) }
 0x458   : >> { %v1434_v48 = vld [vmem:[%s1433_s1] sm:$0x1]  ;;  %v4205_v49 = vld [vmem:[%s1433_s1 + $0x4] sm:$0x1]  ;;  %v4207_v50 = vld [vmem:[%s1433_s1 + $0x8] sm:$0x1]  ;;  %v1735_v35 = vrot.slane (%p1428_p8), %v4238_v34, %v6445_v7 }
 0x459   : >> { %1435 = vst.msk [vmem:[#allocation4] sm:$0x1] %vm757_vm0, %v1434_v48  ;;  %v1441_v51 = vrot.slane %v4205_v49, 7  ;;  %v1450_v52 = vrot.slane %v4207_v50, 6  ;;  %v4209_v53 = vld [vmem:[%s1433_s1 + $0xc] sm:$0x1] }
 0x45a   : >> { %v4211_v54 = vld [vmem:[%s1433_s1 + $0x10] sm:$0x1]  ;;  %v1459_v55 = vrot.slane %v4209_v53, 5  ;;  %v4213_v56 = vld [vmem:[%s1433_s1 + $0x14] sm:$0x1] }
 0x45b   : >> { %1467 = vst.msk [vmem:[#allocation4 + $0x4] sm:$0x1] %vm757_vm0, %v4211_v54  ;;  %v4215_v57 = vld [vmem:[%s1433_s1 + $0x18] sm:$0x1]  ;;  %v1473_v58 = vrot.slane %v4213_v56, 7 }
 0x45c   : >> { %1444 = vst.msk [vmem:[#allocation4] sm:$0x2] %vm1026_vm4, %v1441_v51  ;;  %v1481_v59 = vrot.slane %v4215_v57, 6  ;;  %v4217_v60 = vld [vmem:[%s1433_s1 + $0x1c] sm:$0x1] }
 0x45d   : >> { %1453 = vst.msk [vmem:[#allocation4] sm:$0x4] %vm1035_vm5, %v1450_v52  ;;  %v4219_v61 = vld [vmem:[%s1433_s1 + $0x20] sm:$0x1]  ;;  %v1489_v62 = vrot.slane %v4217_v60, 5 }
 0x45e   : >> { %1462 = vst.msk [vmem:[#allocation4] sm:$0x8] %vm1044_vm6, %v1459_v55  ;;  %v4236_v36 = vld.sshfl [vmem:[%s6249_s13 + $0x10] sm:$0x1 pattern:$0x73625140] (%p1428_p8) }
 0x45f   : >> { %1496 = vst.msk [vmem:[#allocation4 + $0x8] sm:$0x1] %vm757_vm0, %v4219_v61  ;;  %v1707_v37 = vrot.slane (%p1428_p8), %v4236_v36, %v6445_v7  ;;  %v4239_v38 = vld.sshfl [vmem:[%s6249_s13 + $0x13] sm:$0x1 pattern:$0x73625140] (%p1428_p8) }
 0x460   : >> { %1475 = vst.msk [vmem:[#allocation4 + $0x4] sm:$0x2] %vm1026_vm4, %v1473_v58  ;;  %v1749_v39 = vrot.slane (%p1428_p8), %v4239_v38, %v6445_v7  ;;  %v4237_v40 = vld.sshfl [vmem:[%s6249_s13 + $0x11] sm:$0x1 pattern:$0x73625140] (%p1428_p8) }
 0x461   : >> { %1483 = vst.msk [vmem:[#allocation4 + $0x4] sm:$0x4] %vm1035_vm5, %v1481_v59  ;;  %v4240_v41 = vld.sshfl [vmem:[%s6249_s13 + $0x14] sm:$0x1 pattern:$0x73625140] (%p1428_p8) }
 0x462   : >> { %1491 = vst.msk [vmem:[#allocation4 + $0x4] sm:$0x8] %vm1044_vm6, %v1489_v62  ;;  %v6643_v43 = vld [vmem:[#allocation11 + $0x4] sm:$0x3] (%p1428_p8)  ;;  %v1763_v45 = vrot.slane (%p1428_p8), %v4240_v41, %v6445_v7 }
 0x463   : > { %v4243_v46 = vld.sshfl [vmem:[%s6249_s13 + $0x17] sm:$0x1 pattern:$0x73625140] (%p1428_p8) }
 0x464   : > { %v1805_v48 = vrot.slane (%p1428_p8), %v4243_v46, %v6445_v7 }
 0x466   : >> { %v5061_v0 = vld [vmem:[#allocation4 + $0x8] ss:$0 sps:$4 sm:$0x11]  }
 0x467   : >> { %v1566_v1 = vsel %vm1100_vm8, %v5061_v0, 0 }
 0x469   : >> { %v5060_v63 = vld [vmem:[#allocation4] sm:$0xff]  }
 0x46a   : >> { %1508 = vrot.lane.b32.xlu0 %v5060_v63, %s5729_s2  ;;  %1608 = vrot.lane.b32.xlu1 %v5060_v63, %s5730_s29 }
 0x46b   : >> { %4550 = vmatpush3.bf16.msra.mxu1 %v5060_v63 }
 0x46c   : >> { %4551 = vmatprep.subr.bf16.mxu1 %v5727_v47 }
 0x46e   : >> { %1510 = vrot.lane.b32.xlu0 %v5061_v0, %s5729_s2  ;;  %1610 = vrot.lane.b32.xlu1 %v5061_v0, %s5730_s29 }
 0x46f   : >> { %4552 = vmatpush3.bf16.msra.mxu1 %v1566_v1 }
 0x472   : >> { %4554 = vmatmul.mubr.msk.bf16.vlgmr.msra.gmra.mrb[0].mxu1 %vm1096_vm9, %v6557_v8  ;;  %1662 = vperm.xlu0 %5059, %v6567_v32   ;;  %v6633_v8 = vld [vmem:[#allocation9 + $0x6] sm:$0x1] (%p1428_p8)  ;;  %v6638_v32 = vld [vmem:[#allocation9 + $0x7] sm:$0x1] (%p1428_p8) }
 0x476   : > { %1806 = vrot.lane.b32.xlu0 (%p1428_p8), %v1707_v37, %s7415_s20 }
 0x4dc   : >> { %v1509_v4 = vpop.permute.xlu0 %1508  ;;  %v1609_v6 = vpop.permute.xlu1 %1608 }
 0x4dd   : >> { %4542 = vmatpush3.bf16.msra.mxu0 %v1509_v4 }
 0x4de   : >> { %4543 = vmatprep.subr.bf16.mxu0 %v5727_v47 }
 0x4e0   : >> { %v1511_v12 = vpop.permute.xlu0 %1510  ;;  %v1611_v14 = vpop.permute.xlu1 %1610 }
 0x4e1   : >> { %v1519_v13 = vsel %vm1100_vm8, %v1511_v12, 0  ;;  %v1617_v15 = vsel %vm1100_vm8, %v1611_v14, 0 }
 0x4e2   : >> { %4544 = vmatpush3.bf16.msra.mxu0 %v1519_v13 }
 0x4e3   : >> { %4557 = vmatprep.subr.bf16.mxu0 %v5727_v47 }
 0x4e5   : >> { %4546 = vmatmul.mubr.msk.bf16.vlgmr.msra.gmra.mrb[0].mxu0 %vm1096_vm9, %v6562_v11  ;;  %v1721_v11 = vrot.slane (%p1428_p8), %v4237_v40, %v6445_v7 }
 0x4e6   : >> { %4558 = vmatpush3.bf16.msra.mxu0 %v1609_v6  ;;  %4561 = vmatprep.mubr.msk.bf16.mxu0 %vm5728_vm10, %v5727_v47 }
 0x4e7   : >> { %4559 = vmatprep.subr.bf16.mxu0 %v5727_v47  ;;  %1808 = vrot.lane.b32.xlu0 (%p1428_p8), %v1721_v11, %s7415_s20  ;;  %v4242_v47 = vld.sshfl [vmem:[%s6249_s13 + $0x16] sm:$0x1 pattern:$0x73625140] (%p1428_p8) }
 0x4e8   : > { %v1791_v49 = vrot.slane (%p1428_p8), %v4242_v47, %v6445_v7 }
 0x4ea   : >> { %4560 = vmatpush3.bf16.msra.mxu0 %v1617_v15 }
 0x4eb   : > { %1814 = vrot.lane.b32.xlu0 (%p1428_p8), %v1763_v45, %s7415_s20 }
 0x4ed   : >> { %4562 = vmatmul.mubr.msk.bf16.vlgmr.msra.gmra.mrb[4].mxu0 %vm1096_vm9, %v6565_v31  ;;  %v4241_v31 = vld.sshfl [vmem:[%s6249_s13 + $0x15] sm:$0x1 pattern:$0x73625140] (%p1428_p8)  ;;  %s6665_s13 = smov (%p1428_p8), 0  }
 0x4ee   : > { %v1777_v44 = vrot.slane (%p1428_p8), %v4241_v31, %v6445_v7 }
 0x4ef   : > { %1818 = vrot.lane.b32.xlu0 (%p1428_p8), %v1791_v49, %s7415_s20 }
 0x4f1   : >> { %v1663_v26 = vpop.permute.xlu0 %1662 }
 0x4f5   : > { %v1807_v51 = vpop.permute.xlu0 (%p1428_p8), %1806 }
 0x4f6   : > { %1830 = vst.msk [vmem:[#allocation3 + $0x10] sm:$0x1] (%p1428_p8), %vm996_vm3, %v1807_v51 }
 0x545   : >> { %v1602_v16 = vpop.f32.mrb[0].mxu1 }
 0x546   : >> { %v4555_v17 = vpop.f32.mrb[1].mxu1 }
 0x547   : >> { %v1605_v18 = vpop.f32.mrb[2].mxu1 }
 0x548   : >> { %v4556_v19 = vpop.f32.mrb[3].mxu1 }
 0x559   : > { %v1809_v53 = vpop.permute.xlu0 (%p1428_p8), %1808 }
 0x55a   : > { %1831 = vst.msk [vmem:[#allocation3 + $0x14] sm:$0x1] (%p1428_p8), %vm996_vm3, %v1809_v53 }
 0x55d   : > { %v1815_v7 = vpop.permute.xlu0 (%p1428_p8), %1814 }
 0x55e   : > { %1834 = vst.msk [vmem:[#allocation3 + $0x20] sm:$0x1] (%p1428_p8), %vm996_vm3, %v1815_v7 }
 0x561   : > { %v1819_v56 = vpop.permute.xlu0 (%p1428_p8), %1818 }
 0x562   : > { %1836 = vst.msk [vmem:[#allocation3 + $0x28] sm:$0x1] (%p1428_p8), %vm996_vm3, %v1819_v56 }
 0x5b8   : >> { %v1555_v20 = vpop.f32.mrb[0].mxu0 }
 0x5b9   : >> { %v4547_v21 = vpop.f32.mrb[1].mxu0  ;;  %v1603_v22 = vadd.f32 %v1602_v16, %v1555_v20 }
 0x5ba   : >> { %v1558_v23 = vpop.f32.mrb[2].mxu0 }
 0x5bb   : >> { %v4548_v24 = vpop.f32.mrb[3].mxu0 }
 0x5c0   : >> { %v1653_v25 = vpop.f32.mrb[4].mxu0 }
 0x5c1   : >> { %v1659_v27 = vadd.f32 %v1653_v25, %v1603_v22  ;;  %v4563_v28 = vpop.f32.mrb[5].mxu0 }
 0x5c2   : >> { %v1656_v29 = vpop.f32.mrb[6].mxu0 }
 0x5c3   : >> { %v1665_v9 = vadd.f32 %v1663_v26, %v1659_v27  ;;  %v4564_v10 = vpop.f32.mrb[7].mxu0 }
 0x5c5   : >> { %v4403_v30 = vpack.c.bf16 %v1665_v9, %v1665_v9 }
 0x5c7   : >> { %1671 = vrot.lane.b32.xlu1 %v4403_v30, %s5732_s16 }
 0x5cb   : > { %1810 = vrot.lane.b32.xlu1 (%p1428_p8), %v1735_v35, %s7415_s20 }
 0x5cf   : > { %1812 = vrot.lane.b32.xlu1 (%p1428_p8), %v1749_v39, %s7415_s20 }
 0x5d3   : > { %1816 = vrot.lane.b32.xlu1 (%p1428_p8), %v1777_v44, %s7415_s20 }
 0x5d7   : > { %1820 = vrot.lane.b32.xlu1 (%p1428_p8), %v1805_v48, %s7415_s20 }
 0x634   : > { %1430 = sbr.rel (!%p1428_p8) target bundleno = 1106 (0x452), region = 380 }
 0x639   : >> { %v1672_v33 = vpop.permute.xlu1 %1671 }
 0x63a   : >> { %4227 = vst.msk [vmem:[%s3726_s23 + $0x30] sm:$0x1] %vm996_vm3, %v1672_v33 }
 0x63d   : > { %v1811_v50 = vpop.permute.xlu1 %1810 }
 0x63e   : > { %1832 = vst.msk [vmem:[#allocation3 + $0x18] sm:$0x1] %vm996_vm3, %v1811_v50 }
 0x641   : > { %v1813_v52 = vpop.permute.xlu1 %1812 }
 0x642   : > { %1833 = vst.msk [vmem:[#allocation3 + $0x1c] sm:$0x1] %vm996_vm3, %v1813_v52 }
 0x645   : > { %v1817_v54 = vpop.permute.xlu1 %1816 }
 0x646   : > { %1835 = vst.msk [vmem:[#allocation3 + $0x24] sm:$0x1] %vm996_vm3, %v1817_v54 }
 0x649   : > { %v1821_v55 = vpop.permute.xlu1 %1820 }
 0x64a   : > { %1837 = vst.msk [vmem:[#allocation3 + $0x2c] sm:$0x1] %vm996_vm3, %v1821_v55 }
 0x64b LB: >> { %v5733_v57 = vmov 0.0   ;;  %s4244_s5 = sshll.u32 %s5678_s13, 2  ;;  %vm5734_vm11 = vmmov 0   ;;  %s5735_s1 = smov 127   ;;  %v5737_v19 = vmov 0   ;;  %s5678_s13 = sphi %s6665_s13, %s1849_s13  }
 0x64c   : >> { %4565 = vmatprep.subr.bf16.mxu0 %v5733_v57  ;;  %4573 = vmatprep.subr.bf16.mxu1 %v5733_v57  ;;  %s1851_s4 = scalar_lea.vmem [#allocation3], %s4244_s5  ;;  %s5736_s2 = smov 126  }
 0x64d   : >> { %4569 = vmatprep.mubr.msk.bf16.mxu0 %vm5734_vm11, %v5733_v57  ;;  %4577 = vmatprep.mubr.msk.bf16.mxu1 %vm5734_vm11, %v5733_v57  ;;  %s5738_s29 = smov 1   ;;  %s3755_s16 = scalar_lea.vmem [#allocation2], %s4244_s5 }
 0x64e   : >> { %5062 = vset.pattern.permute.xlu0 %v5737_v19  ;;  %s1849_s13 = sadd.s32 1, %s5678_s13  }
 0x64f   : >> { %p1846_p6 = scmp.ge.s32.totalorder %s1849_s13, 8  }
 0x650   : > { %vm2105_vm12 = vcmask (%p1846_p6), 3072   ;;  %v6701_v44 = vld [vmem:[#allocation12] sm:$0xf] (%p1846_p6)  ;;  %v6703_v45 = vld [vmem:[#allocation12 + $0x4] sm:$0xf] (%p1846_p6)  ;;  %v6705_v46 = vld [vmem:[#allocation14] sm:$0xff] (%p1846_p6) }
 0x651   : >> { %v1852_v58 = vld [vmem:[%s1851_s4] sm:$0x1]  ;;  %v4246_v59 = vld [vmem:[%s1851_s4 + $0x4] sm:$0x1]  ;;  %v4248_v60 = vld [vmem:[%s1851_s4 + $0x8] sm:$0x1] }
 0x652   : >> { %1853 = vst.msk [vmem:[#allocation4] sm:$0x1] %vm757_vm0, %v1852_v58  ;;  %v1859_v61 = vrot.slane %v4246_v59, 7  ;;  %v1868_v62 = vrot.slane %v4248_v60, 6  ;;  %v4250_v63 = vld [vmem:[%s1851_s4 + $0xc] sm:$0x1] }
 0x653   : >> { %v4252_v0 = vld [vmem:[%s1851_s4 + $0x10] sm:$0x1]  ;;  %v1877_v1 = vrot.slane %v4250_v63, 5  ;;  %v4254_v3 = vld [vmem:[%s1851_s4 + $0x14] sm:$0x1]  ;;  %vm2095_vm13 = vcmask (%p1846_p6), 142336  }
 0x654   : >> { %1885 = vst.msk [vmem:[#allocation4 + $0x4] sm:$0x1] %vm757_vm0, %v4252_v0  ;;  %v4256_v4 = vld [vmem:[%s1851_s4 + $0x18] sm:$0x1]  ;;  %v1891_v6 = vrot.slane %v4254_v3, 7  ;;  %vm2130_vm14 = vcmask (%p1846_p6), 142472  }
 0x655   : >> { %1862 = vst.msk [vmem:[#allocation4] sm:$0x2] %vm1026_vm4, %v1859_v61  ;;  %v1899_v12 = vrot.slane %v4256_v4, 6  ;;  %v4258_v13 = vld [vmem:[%s1851_s4 + $0x1c] sm:$0x1]  ;;  %s6821_s23 = smov (%p1846_p6), 0  }
 0x656   : >> { %1871 = vst.msk [vmem:[#allocation4] sm:$0x4] %vm1035_vm5, %v1868_v62  ;;  %v4260_v14 = vld [vmem:[%s1851_s4 + $0x20] sm:$0x1]  ;;  %v1907_v15 = vrot.slane %v4258_v13, 5 }
 0x657   : >> { %1880 = vst.msk [vmem:[#allocation4] sm:$0x8] %vm1044_vm6, %v1877_v1 }
 0x658   : >> { %1914 = vst.msk [vmem:[#allocation4 + $0x8] sm:$0x1] %vm757_vm0, %v4260_v14 }
 0x659   : >> { %1893 = vst.msk [vmem:[#allocation4 + $0x4] sm:$0x2] %vm1026_vm4, %v1891_v6 }
 0x65a   : >> { %1901 = vst.msk [vmem:[#allocation4 + $0x4] sm:$0x4] %vm1035_vm5, %v1899_v12 }
 0x65b   : >> { %1909 = vst.msk [vmem:[#allocation4 + $0x4] sm:$0x8] %vm1044_vm6, %v1907_v15 }
 0x65c   : > { %2106 = vst.msk [vmem:[#allocation3 + $0x10] sm:$0xf] (%p1846_p6), %vm2105_vm12, %v5718_v2  ;;  %2107 = vst.msk [vmem:[#allocation3 + $0x14] sm:$0xf] (%p1846_p6), %vm2105_vm12, %v5718_v2 }
 0x65d   : > { %2108 = vst.msk [vmem:[#allocation3 + $0x18] sm:$0xf] (%p1846_p6), %vm2105_vm12, %v5718_v2  ;;  %2109 = vst.msk [vmem:[#allocation3 + $0x1c] sm:$0xf] (%p1846_p6), %vm2105_vm12, %v5718_v2 }
 0x65e   : > { %2110 = vst.msk [vmem:[#allocation3 + $0x20] sm:$0xf] (%p1846_p6), %vm2105_vm12, %v5718_v2  ;;  %2111 = vst.msk [vmem:[#allocation3 + $0x24] sm:$0xf] (%p1846_p6), %vm2105_vm12, %v5718_v2 }
 0x65f   : >> { %v5064_v17 = vld [vmem:[#allocation4 + $0x8] ss:$0 sps:$4 sm:$0x11]   ;;  %2112 = vst.msk [vmem:[#allocation3 + $0x28] sm:$0xf] (%p1846_p6), %vm2105_vm12, %v5718_v2 }
 0x660   : >> { %v1984_v18 = vsel %vm1100_vm8, %v5064_v17, 0  ;;  %2113 = vst.msk [vmem:[#allocation3 + $0x2c] sm:$0xf] (%p1846_p6), %vm2105_vm12, %v5718_v2  ;;  %2114 = vst.msk [vmem:[#allocation3 + $0x30] sm:$0xf] (%p1846_p6), %vm2105_vm12, %v5718_v2 }
 0x661   : > { %2115 = vst.msk [vmem:[#allocation3 + $0x34] sm:$0xf] (%p1846_p6), %vm2105_vm12, %v5718_v2  ;;  %2116 = vst.msk [vmem:[#allocation3 + $0x38] sm:$0xf] (%p1846_p6), %vm2105_vm12, %v5718_v2 }
 0x662   : >> { %v5063_v16 = vld [vmem:[#allocation4] sm:$0xff]   ;;  %2117 = vst.msk [vmem:[#allocation3 + $0x3c] sm:$0xf] (%p1846_p6), %vm2105_vm12, %v5718_v2  ;;  %2118 = vst.msk [vmem:[#allocation3 + $0x40] sm:$0xf] (%p1846_p6), %vm2105_vm12, %v5718_v2 }
 0x663   : >> { %1926 = vrot.lane.b32.xlu0 %v5063_v16, %s5735_s1  ;;  %2026 = vrot.lane.b32.xlu1 %v5063_v16, %s5736_s2  ;;  %2119 = vst.msk [vmem:[#allocation3 + $0x44] sm:$0xf] (%p1846_p6), %vm2105_vm12, %v5718_v2  ;;  %2120 = vst.msk [vmem:[#allocation3 + $0x48] sm:$0xf] (%p1846_p6), %vm2105_vm12, %v5718_v2 }
 0x664   : >> { %4574 = vmatpush3.bf16.msra.mxu1 %v5063_v16  ;;  %2121 = vst.msk [vmem:[#allocation3 + $0x4c] sm:$0xf] (%p1846_p6), %vm2105_vm12, %v5718_v2  ;;  %2122 = vst.msk [vmem:[#allocation3 + $0x50] sm:$0xf] (%p1846_p6), %vm2105_vm12, %v5718_v2 }
 0x665   : >> { %4575 = vmatprep.subr.bf16.mxu1 %v5733_v57  ;;  %2123 = vst.msk [vmem:[#allocation3 + $0x54] sm:$0xf] (%p1846_p6), %vm2105_vm12, %v5718_v2  ;;  %2124 = vst.msk [vmem:[#allocation3 + $0x58] sm:$0xf] (%p1846_p6), %vm2105_vm12, %v5718_v2 }
 0x666   : > { %2125 = vst.msk [vmem:[#allocation3 + $0x5c] sm:$0xf] (%p1846_p6), %vm2105_vm12, %v5718_v2  ;;  %2126 = vst.msk [vmem:[#allocation3 + $0x60] sm:$0xf] (%p1846_p6), %vm2105_vm12, %v5718_v2 }
 0x667   : >> { %1928 = vrot.lane.b32.xlu0 %v5064_v17, %s5735_s1  ;;  %2028 = vrot.lane.b32.xlu1 %v5064_v17, %s5736_s2  ;;  %2127 = vst.msk [vmem:[#allocation3 + $0x64] sm:$0xf] (%p1846_p6), %vm2105_vm12, %v5718_v2  ;;  %2128 = vst.msk [vmem:[#allocation3 + $0x68] sm:$0xf] (%p1846_p6), %vm2105_vm12, %v5718_v2 }
 0x668   : >> { %4576 = vmatpush3.bf16.msra.mxu1 %v1984_v18  ;;  %2129 = vst.msk [vmem:[#allocation3 + $0x6c] sm:$0xf] (%p1846_p6), %vm2105_vm12, %v5718_v2 }
 0x669   : > { %2096 = vst.msk [vmem:[#allocation3] sm:$0xf] (%p1846_p6), %vm2095_vm13, %v5718_v2  ;;  %2097 = vst.msk [vmem:[#allocation3 + $0x4] sm:$0xf] (%p1846_p6), %vm2095_vm13, %v5718_v2 }
 0x66a   : > { %2098 = vst.msk [vmem:[#allocation3 + $0x8] sm:$0xf] (%p1846_p6), %vm2095_vm13, %v5718_v2  ;;  %2099 = vst.msk [vmem:[#allocation3 + $0xc] sm:$0xf] (%p1846_p6), %vm2095_vm13, %v5718_v2 }
 0x66b   : >> { %4578 = vmatmul.mubr.msk.bf16.vlgmr.msra.gmra.mrb[0].mxu1 %vm1096_vm9, %v6633_v8  ;;  %2080 = vperm.xlu0 %5062, %v6643_v43   ;;  %v6755_v8 = vld [vmem:[#allocation12 + $0x8] sm:$0xf] (%p1846_p6)  ;;  %2101 = vst.msk [vmem:[#allocation3 + $0x70] sm:$0xf] (%p1846_p6), %vm2095_vm13, %v5718_v2  ;;  %2102 = vst.msk [vmem:[#allocation3 + $0x74] sm:$0xf] (%p1846_p6), %vm2095_vm13, %v5718_v2 }
 0x66c   : > { %2103 = vst.msk [vmem:[#allocation3 + $0x78] sm:$0xf] (%p1846_p6), %vm2095_vm13, %v5718_v2  ;;  %2104 = vst.msk [vmem:[#allocation3 + $0x7c] sm:$0xf] (%p1846_p6), %vm2095_vm13, %v5718_v2 }
 0x66d   : > { %2131 = vst.msk [vmem:[#allocation3 + $0x10] sm:$0xf] (%p1846_p6), %vm2130_vm14, %v5718_v2  ;;  %2132 = vst.msk [vmem:[#allocation3 + $0x14] sm:$0xf] (%p1846_p6), %vm2130_vm14, %v5718_v2 }
 0x66e   : > { %2133 = vst.msk [vmem:[#allocation3 + $0x18] sm:$0xf] (%p1846_p6), %vm2130_vm14, %v5718_v2  ;;  %2134 = vst.msk [vmem:[#allocation3 + $0x1c] sm:$0xf] (%p1846_p6), %vm2130_vm14, %v5718_v2 }
 0x66f   : > { %2135 = vst.msk [vmem:[#allocation3 + $0x20] sm:$0xf] (%p1846_p6), %vm2130_vm14, %v5718_v2  ;;  %2136 = vst.msk [vmem:[#allocation3 + $0x24] sm:$0xf] (%p1846_p6), %vm2130_vm14, %v5718_v2 }
 0x670   : > { %2137 = vst.msk [vmem:[#allocation3 + $0x28] sm:$0xf] (%p1846_p6), %vm2130_vm14, %v5718_v2  ;;  %2138 = vst.msk [vmem:[#allocation3 + $0x2c] sm:$0xf] (%p1846_p6), %vm2130_vm14, %v5718_v2 }
 0x671   : > { %2139 = vst.msk [vmem:[#allocation3 + $0x30] sm:$0xf] (%p1846_p6), %vm2130_vm14, %v5718_v2  ;;  %2140 = vst.msk [vmem:[#allocation3 + $0x34] sm:$0xf] (%p1846_p6), %vm2130_vm14, %v5718_v2 }
 0x672   : > { %2141 = vst.msk [vmem:[#allocation3 + $0x38] sm:$0xf] (%p1846_p6), %vm2130_vm14, %v5718_v2  ;;  %2142 = vst.msk [vmem:[#allocation3 + $0x3c] sm:$0xf] (%p1846_p6), %vm2130_vm14, %v5718_v2 }
 0x673   : > { %2143 = vst.msk [vmem:[#allocation3 + $0x40] sm:$0xf] (%p1846_p6), %vm2130_vm14, %v5718_v2  ;;  %2144 = vst.msk [vmem:[#allocation3 + $0x44] sm:$0xf] (%p1846_p6), %vm2130_vm14, %v5718_v2 }
 0x674   : > { %2145 = vst.msk [vmem:[#allocation3 + $0x48] sm:$0xf] (%p1846_p6), %vm2130_vm14, %v5718_v2  ;;  %2146 = vst.msk [vmem:[#allocation3 + $0x4c] sm:$0xf] (%p1846_p6), %vm2130_vm14, %v5718_v2 }
 0x675   : > { %2147 = vst.msk [vmem:[#allocation3 + $0x50] sm:$0xf] (%p1846_p6), %vm2130_vm14, %v5718_v2  ;;  %2148 = vst.msk [vmem:[#allocation3 + $0x54] sm:$0xf] (%p1846_p6), %vm2130_vm14, %v5718_v2 }
 0x676   : > { %2149 = vst.msk [vmem:[#allocation3 + $0x58] sm:$0xf] (%p1846_p6), %vm2130_vm14, %v5718_v2  ;;  %2150 = vst.msk [vmem:[#allocation3 + $0x5c] sm:$0xf] (%p1846_p6), %vm2130_vm14, %v5718_v2 }
 0x677   : > { %2151 = vst.msk [vmem:[#allocation3 + $0x60] sm:$0xf] (%p1846_p6), %vm2130_vm14, %v5718_v2  ;;  %2152 = vst.msk [vmem:[#allocation3 + $0x64] sm:$0xf] (%p1846_p6), %vm2130_vm14, %v5718_v2 }
 0x678   : > { %2153 = vst.msk [vmem:[#allocation3 + $0x68] sm:$0xf] (%p1846_p6), %vm2130_vm14, %v5718_v2  ;;  %2154 = vst.msk [vmem:[#allocation3 + $0x6c] sm:$0xf] (%p1846_p6), %vm2130_vm14, %v5718_v2 }
 0x6d5   : >> { %v1927_v20 = vpop.permute.xlu0 %1926  ;;  %v2027_v21 = vpop.permute.xlu1 %2026 }
 0x6d6   : >> { %4566 = vmatpush3.bf16.msra.mxu0 %v1927_v20 }
 0x6d7   : >> { %4567 = vmatprep.subr.bf16.mxu0 %v5733_v57 }
 0x6d9   : >> { %v1929_v22 = vpop.permute.xlu0 %1928  ;;  %v2029_v24 = vpop.permute.xlu1 %2028 }
 0x6da   : >> { %v1937_v23 = vsel %vm1100_vm8, %v1929_v22, 0  ;;  %v2035_v25 = vsel %vm1100_vm8, %v2029_v24, 0 }
 0x6db   : >> { %4568 = vmatpush3.bf16.msra.mxu0 %v1937_v23 }
 0x6dc   : >> { %4581 = vmatprep.subr.bf16.mxu0 %v5733_v57 }
 0x6de   : >> { %4570 = vmatmul.mubr.msk.bf16.vlgmr.msra.gmra.mrb[0].mxu0 %vm1096_vm9, %v6638_v32 }
 0x6df   : >> { %4582 = vmatpush3.bf16.msra.mxu0 %v2027_v21  ;;  %4585 = vmatprep.mubr.msk.bf16.mxu0 %vm5734_vm11, %v5733_v57 }
 0x6e0   : >> { %4583 = vmatprep.subr.bf16.mxu0 %v5733_v57 }
 0x6e3   : >> { %4584 = vmatpush3.bf16.msra.mxu0 %v2035_v25 }
 0x6e6   : >> { %4586 = vmatmul.mubr.msk.bf16.vlgmr.msra.gmra.mrb[4].mxu0 %vm1096_vm9, %v6641_v42 }
 0x6ea   : >> { %v2081_v36 = vpop.permute.xlu0 %2080 }
 0x73e   : >> { %v2020_v26 = vpop.f32.mrb[0].mxu1 }
 0x73f   : >> { %v4579_v27 = vpop.f32.mrb[1].mxu1 }
 0x740   : >> { %v2023_v28 = vpop.f32.mrb[2].mxu1 }
 0x741   : >> { %v4580_v29 = vpop.f32.mrb[3].mxu1 }
 0x7b1   : >> { %v1973_v9 = vpop.f32.mrb[0].mxu0 }
 0x7b2   : >> { %v4571_v10 = vpop.f32.mrb[1].mxu0  ;;  %v2021_v30 = vadd.f32 %v2020_v26, %v1973_v9 }
 0x7b3   : >> { %v1976_v33 = vpop.f32.mrb[2].mxu0 }
 0x7b4   : >> { %v4572_v34 = vpop.f32.mrb[3].mxu0 }
 0x7b9   : >> { %v2071_v35 = vpop.f32.mrb[4].mxu0 }
 0x7ba   : >> { %v2077_v37 = vadd.f32 %v2071_v35, %v2021_v30  ;;  %v4587_v38 = vpop.f32.mrb[5].mxu0 }
 0x7bb   : >> { %v2074_v39 = vpop.f32.mrb[6].mxu0 }
 0x7bc   : >> { %v2083_v40 = vadd.f32 %v2081_v36, %v2077_v37  ;;  %v4588_v11 = vpop.f32.mrb[7].mxu0 }
 0x7be   : >> { %v4404_v31 = vpack.c.bf16 %v2083_v40, %v2083_v40 }
 0x7c0   : >> { %2089 = vrot.lane.b32.xlu1 %v4404_v31, %s5738_s29 }
 0x82d   : > { %1848 = sbr.rel (!%p1846_p6) target bundleno = 1611 (0x64b), region = 391 }
 0x832   : >> { %v2090_v41 = vpop.permute.xlu1 %2089 }
 0x833   : >> { %4268 = vst.msk [vmem:[%s3755_s16 + $0x50] sm:$0x1] %vm996_vm3, %v2090_v41 }
 0x834 LB: >> { %v5739_v32 = vmov 0.0   ;;  %s6827_s13 = sshll.u32 %s5682_s23, 2  ;;  %vm5740_vm15 = vmmov 0   ;;  %s5741_s4 = smov 127   ;;  %v5743_v62 = vmov 0   ;;  %vm2405_vm2 = vcmask 125952   ;;  %s5682_s23 = sphi %s6821_s23, %s2164_s23  }
 0x835   : >> { %4589 = vmatprep.subr.bf16.mxu0 %v5739_v32  ;;  %4597 = vmatprep.subr.bf16.mxu1 %v5739_v32  ;;  %s2166_s5 = scalar_lea.vmem [#allocation2], %s6827_s13  ;;  %s5742_s1 = smov 126   ;;  %vm2415_vm3 = vcmask 134152  }
 0x836   : >> { %4593 = vmatprep.mubr.msk.bf16.mxu0 %vm5740_vm15, %v5739_v32  ;;  %4601 = vmatprep.mubr.msk.bf16.mxu1 %vm5740_vm15, %v5739_v32  ;;  %s2404_s2 = scalar_lea.vmem %s6492_s3, %s6827_s13 [#allocation26]  ;;  %s5744_s29 = smov 1  }
 0x837   : >> { %5065 = vset.pattern.permute.xlu0 %v5743_v62  ;;  %s3786_s16 = scalar_lea.vmem [#allocation3], %s6827_s13  ;;  %s2164_s23 = sadd.s32 1, %s5682_s23  }
 0x838   : >> { %p2161_p9 = scmp.ge.s32.totalorder %s2164_s23, 24  }
 0x839   : > { %vm2427_vm7 = vcmask (%p2161_p9), 11264   ;;  %v6860_v30 = vld [vmem:[#allocation15] sm:$0xf] (%p2161_p9)  ;;  %v6862_v33 = vld [vmem:[#allocation15 + $0x4] sm:$0xf] (%p2161_p9)  ;;  %v6864_v34 = vld [vmem:[#allocation17] sm:$0xff] (%p2161_p9) }
 0x83a   : >> { %v2167_v42 = vld [vmem:[%s2166_s5] sm:$0x1]  ;;  %v4271_v43 = vld [vmem:[%s2166_s5 + $0x4] sm:$0x1]  ;;  %v4273_v47 = vld [vmem:[%s2166_s5 + $0x8] sm:$0x1] }
 0x83b   : >> { %2168 = vst.msk [vmem:[#allocation4] sm:$0x1] %vm757_vm0, %v2167_v42  ;;  %v2174_v48 = vrot.slane %v4271_v43, 7  ;;  %v2183_v49 = vrot.slane %v4273_v47, 6  ;;  %v4275_v50 = vld [vmem:[%s2166_s5 + $0xc] sm:$0x1] }
 0x83c   : >> { %v4277_v51 = vld [vmem:[%s2166_s5 + $0x10] sm:$0x1]  ;;  %v2192_v52 = vrot.slane %v4275_v50, 5  ;;  %v4279_v53 = vld [vmem:[%s2166_s5 + $0x14] sm:$0x1]  ;;  %s6920_s23 = smov (%p2161_p9), 0  }
 0x83d   : >> { %2200 = vst.msk [vmem:[#allocation4 + $0x4] sm:$0x1] %vm757_vm0, %v4277_v51  ;;  %v4281_v54 = vld [vmem:[%s2166_s5 + $0x18] sm:$0x1]  ;;  %v2206_v7 = vrot.slane %v4279_v53, 7 }
 0x83e   : >> { %2177 = vst.msk [vmem:[#allocation4] sm:$0x2] %vm1026_vm4, %v2174_v48  ;;  %v2214_v55 = vrot.slane %v4281_v54, 6  ;;  %v4283_v56 = vld [vmem:[%s2166_s5 + $0x1c] sm:$0x1] }
 0x83f   : >> { %2186 = vst.msk [vmem:[#allocation4] sm:$0x4] %vm1035_vm5, %v2183_v49  ;;  %v4285_v57 = vld [vmem:[%s2166_s5 + $0x20] sm:$0x1]  ;;  %v2222_v58 = vrot.slane %v4283_v56, 5 }
 0x840   : >> { %2195 = vst.msk [vmem:[#allocation4] sm:$0x8] %vm1044_vm6, %v2192_v52  ;;  %v6878_v35 = vld [vmem:[#allocation15 + $0x8] sm:$0xf] (%p2161_p9) }
 0x841   : >> { %2229 = vst.msk [vmem:[#allocation4 + $0x8] sm:$0x1] %vm757_vm0, %v4285_v57  ;;  %vm2417_vm0 = vcmask (%p2161_p9), 158720  }
 0x842   : >> { %2208 = vst.msk [vmem:[#allocation4 + $0x4] sm:$0x2] %vm1026_vm4, %v2206_v7  ;;  %vm2440_vm4 = vcmask (%p2161_p9), 158864  }
 0x843   : >> { %2216 = vst.msk [vmem:[#allocation4 + $0x4] sm:$0x4] %vm1035_vm5, %v2214_v55 }
 0x844   : >> { %2224 = vst.msk [vmem:[#allocation4 + $0x4] sm:$0x8] %vm1044_vm6, %v2222_v58 }
 0x845   : > { %2428 = vst.msk [vmem:[#allocation2 + $0x10] sm:$0xf] (%p2161_p9), %vm2427_vm7, %v5718_v2  ;;  %2429 = vst.msk [vmem:[#allocation2 + $0x14] sm:$0xf] (%p2161_p9), %vm2427_vm7, %v5718_v2 }
 0x846   : > { %2430 = vst.msk [vmem:[#allocation2 + $0x18] sm:$0xf] (%p2161_p9), %vm2427_vm7, %v5718_v2  ;;  %2431 = vst.msk [vmem:[#allocation2 + $0x1c] sm:$0xf] (%p2161_p9), %vm2427_vm7, %v5718_v2 }
 0x847   : > { %2432 = vst.msk [vmem:[#allocation2 + $0x20] sm:$0xf] (%p2161_p9), %vm2427_vm7, %v5718_v2  ;;  %2433 = vst.msk [vmem:[#allocation2 + $0x24] sm:$0xf] (%p2161_p9), %vm2427_vm7, %v5718_v2 }
 0x848   : >> { %v5067_v60 = vld [vmem:[#allocation4 + $0x8] ss:$0 sps:$4 sm:$0x11]   ;;  %2434 = vst.msk [vmem:[#allocation2 + $0x28] sm:$0xf] (%p2161_p9), %vm2427_vm7, %v5718_v2 }
 0x849   : >> { %v2299_v61 = vsel %vm1100_vm8, %v5067_v60, 0  ;;  %2435 = vst.msk [vmem:[#allocation2 + $0x2c] sm:$0xf] (%p2161_p9), %vm2427_vm7, %v5718_v2  ;;  %2436 = vst.msk [vmem:[#allocation2 + $0x30] sm:$0xf] (%p2161_p9), %vm2427_vm7, %v5718_v2 }
 0x84a   : > { %2437 = vst.msk [vmem:[#allocation2 + $0x34] sm:$0xf] (%p2161_p9), %vm2427_vm7, %v5718_v2  ;;  %2438 = vst.msk [vmem:[#allocation2 + $0x38] sm:$0xf] (%p2161_p9), %vm2427_vm7, %v5718_v2 }
 0x84b   : >> { %v5066_v59 = vld [vmem:[#allocation4] sm:$0xff]   ;;  %2439 = vst.msk [vmem:[#allocation2 + $0x3c] sm:$0xf] (%p2161_p9), %vm2427_vm7, %v5718_v2 }
 0x84c   : >> { %2241 = vrot.lane.b32.xlu0 %v5066_v59, %s5741_s4  ;;  %2341 = vrot.lane.b32.xlu1 %v5066_v59, %s5742_s1  ;;  %2418 = vst.msk [vmem:[#allocation2] sm:$0xf] (%p2161_p9), %vm2417_vm0, %v5718_v2  ;;  %2419 = vst.msk [vmem:[#allocation2 + $0x4] sm:$0xf] (%p2161_p9), %vm2417_vm0, %v5718_v2 }
 0x84d   : >> { %4598 = vmatpush3.bf16.msra.mxu1 %v5066_v59  ;;  %2420 = vst.msk [vmem:[#allocation2 + $0x8] sm:$0xf] (%p2161_p9), %vm2417_vm0, %v5718_v2  ;;  %2421 = vst.msk [vmem:[#allocation2 + $0xc] sm:$0xf] (%p2161_p9), %vm2417_vm0, %v5718_v2 }
 0x84e   : >> { %4599 = vmatprep.subr.bf16.mxu1 %v5739_v32  ;;  %2423 = vst.msk [vmem:[#allocation2 + $0x40] sm:$0xf] (%p2161_p9), %vm2417_vm0, %v5718_v2  ;;  %2424 = vst.msk [vmem:[#allocation2 + $0x44] sm:$0xf] (%p2161_p9), %vm2417_vm0, %v5718_v2 }
 0x84f   : > { %2425 = vst.msk [vmem:[#allocation2 + $0x48] sm:$0xf] (%p2161_p9), %vm2417_vm0, %v5718_v2  ;;  %2426 = vst.msk [vmem:[#allocation2 + $0x4c] sm:$0xf] (%p2161_p9), %vm2417_vm0, %v5718_v2 }
 0x850   : >> { %2243 = vrot.lane.b32.xlu0 %v5067_v60, %s5741_s4  ;;  %2343 = vrot.lane.b32.xlu1 %v5067_v60, %s5742_s1  ;;  %2441 = vst.msk [vmem:[#allocation2 + $0x10] sm:$0xf] (%p2161_p9), %vm2440_vm4, %v5718_v2  ;;  %2442 = vst.msk [vmem:[#allocation2 + $0x14] sm:$0xf] (%p2161_p9), %vm2440_vm4, %v5718_v2 }
 0x851   : >> { %4600 = vmatpush3.bf16.msra.mxu1 %v2299_v61  ;;  %2443 = vst.msk [vmem:[#allocation2 + $0x18] sm:$0xf] (%p2161_p9), %vm2440_vm4, %v5718_v2  ;;  %2444 = vst.msk [vmem:[#allocation2 + $0x1c] sm:$0xf] (%p2161_p9), %vm2440_vm4, %v5718_v2 }
 0x852   : > { %2445 = vst.msk [vmem:[#allocation2 + $0x20] sm:$0xf] (%p2161_p9), %vm2440_vm4, %v5718_v2  ;;  %2446 = vst.msk [vmem:[#allocation2 + $0x24] sm:$0xf] (%p2161_p9), %vm2440_vm4, %v5718_v2 }
 0x853   : > { %2447 = vst.msk [vmem:[#allocation2 + $0x28] sm:$0xf] (%p2161_p9), %vm2440_vm4, %v5718_v2  ;;  %2448 = vst.msk [vmem:[#allocation2 + $0x2c] sm:$0xf] (%p2161_p9), %vm2440_vm4, %v5718_v2 }
 0x854   : >> { %4602 = vmatmul.mubr.msk.bf16.vlgmr.msra.gmra.mrb[0].mxu1 %vm1096_vm9, %v6701_v44  ;;  %2395 = vperm.xlu0 %5065, %v6705_v46   ;;  %2449 = vst.msk [vmem:[#allocation2 + $0x30] sm:$0xf] (%p2161_p9), %vm2440_vm4, %v5718_v2  ;;  %2450 = vst.msk [vmem:[#allocation2 + $0x34] sm:$0xf] (%p2161_p9), %vm2440_vm4, %v5718_v2 }
 0x855   : > { %2451 = vst.msk [vmem:[#allocation2 + $0x38] sm:$0xf] (%p2161_p9), %vm2440_vm4, %v5718_v2  ;;  %2452 = vst.msk [vmem:[#allocation2 + $0x3c] sm:$0xf] (%p2161_p9), %vm2440_vm4, %v5718_v2 }
 0x8be   : >> { %v2242_v63 = vpop.permute.xlu0 %2241  ;;  %v2342_v0 = vpop.permute.xlu1 %2341 }
 0x8bf   : >> { %4590 = vmatpush3.bf16.msra.mxu0 %v2242_v63 }
 0x8c0   : >> { %4591 = vmatprep.subr.bf16.mxu0 %v5739_v32 }
 0x8c2   : >> { %v2244_v1 = vpop.permute.xlu0 %2243  ;;  %v2344_v4 = vpop.permute.xlu1 %2343 }
 0x8c3   : >> { %v2252_v3 = vsel %vm1100_vm8, %v2244_v1, 0  ;;  %v2350_v6 = vsel %vm1100_vm8, %v2344_v4, 0 }
 0x8c4   : >> { %4592 = vmatpush3.bf16.msra.mxu0 %v2252_v3 }
 0x8c5   : >> { %4605 = vmatprep.subr.bf16.mxu0 %v5739_v32 }
 0x8c7   : >> { %4594 = vmatmul.mubr.msk.bf16.vlgmr.msra.gmra.mrb[0].mxu0 %vm1096_vm9, %v6703_v45 }
 0x8c8   : >> { %4606 = vmatpush3.bf16.msra.mxu0 %v2342_v0  ;;  %4609 = vmatprep.mubr.msk.bf16.mxu0 %vm5740_vm15, %v5739_v32 }
 0x8c9   : >> { %4607 = vmatprep.subr.bf16.mxu0 %v5739_v32 }
 0x8cc   : >> { %4608 = vmatpush3.bf16.msra.mxu0 %v2350_v6 }
 0x8cf   : >> { %4610 = vmatmul.mubr.msk.bf16.vlgmr.msra.gmra.mrb[4].mxu0 %vm1096_vm9, %v6755_v8 }
 0x8d3   : >> { %v2396_v22 = vpop.permute.xlu0 %2395 }
 0x927   : >> { %v2335_v12 = vpop.f32.mrb[0].mxu1 }
 0x928   : >> { %v4603_v13 = vpop.f32.mrb[1].mxu1 }
 0x929   : >> { %v2338_v14 = vpop.f32.mrb[2].mxu1 }
 0x92a   : >> { %v4604_v15 = vpop.f32.mrb[3].mxu1 }
 0x99a   : >> { %v2288_v16 = vpop.f32.mrb[0].mxu0 }
 0x99b   : >> { %v4595_v17 = vpop.f32.mrb[1].mxu0  ;;  %v2336_v18 = vadd.f32 %v2335_v12, %v2288_v16 }
 0x99c   : >> { %v2291_v19 = vpop.f32.mrb[2].mxu0 }
 0x99d   : >> { %v4596_v20 = vpop.f32.mrb[3].mxu0 }
 0x9a2   : >> { %v2386_v21 = vpop.f32.mrb[4].mxu0 }
 0x9a3   : >> { %v2392_v23 = vadd.f32 %v2386_v21, %v2336_v18  ;;  %v4611_v24 = vpop.f32.mrb[5].mxu0 }
 0x9a4   : >> { %v2389_v25 = vpop.f32.mrb[6].mxu0 }
 0x9a5   : >> { %v2398_v26 = vadd.f32 %v2396_v22, %v2392_v23  ;;  %v4612_v27 = vpop.f32.mrb[7].mxu0 }
 0x9a7   : >> { %vm2399_vm1 = vcmp.gt.f32.partialorder %v2398_v26, 0.0  ;;  %v2400_v28 = vmul.f32 0.1, %v2398_v26 }
 0x9a9   : >> { %v2401_v29 = vsel %vm2399_vm1, %v2398_v26, %v2400_v28 }
 0x9aa   : >> { %v2402_v9 = vpack.c.bf16 %v2401_v29, %v2401_v29 }
 0x9ac   : >> { %2410 = vrot.lane.b32.xlu1 %v2402_v9, %s5744_s29  ;;  %2406 = vst.msk [vmem:[%s2404_s2] sm:$0xf] %vm2405_vm2, %v2402_v9 }
 0xa19   : > { %2163 = sbr.rel (!%p2161_p9) target bundleno = 2100 (0x834), region = 402 }
 0xa1e   : >> { %v2411_v10 = vpop.permute.xlu1 %2410 }
 0xa1f   : >> { %4294 = vst.msk [vmem:[%s3786_s16 + $0x10] sm:$0xf] %vm2415_vm3, %v2411_v10 }
 0xa20 LB: >> { %v5745_v36 = vmov 0.0   ;;  %s4406_s13 = sshll.u32 %s5686_s23, 3  ;;  %s5746_s4 = smov 127   ;;  %vm5747_vm5 = vmmov 0   ;;  %vm2558_vm6 = vcmask 1043456   ;;  %vm2554_vm8 = vcmask 588800   ;;  %s5686_s23 = sphi %s6920_s23, %s2462_s23  }
 0xa21   : >> { %4613 = vmatprep.subr.bf16.mxu0 %v5745_v36  ;;  %4627 = vmatprep.subr.bf16.mxu1 %v5745_v36  ;;  %s2465_s5 = scalar_lea.vmem [#allocation3], %s4406_s13  ;;  %s5748_s1 = smov 126   ;;  %v5749_v48 = vmov 0   ;;  %vm2736_vm10 = vcmask 142352  }
 0xa22   : >> { %4623 = vmatprep.mubr.msk.bf16.mxu0 %vm5747_vm5, %v5745_v36  ;;  %4637 = vmatprep.mubr.msk.bf16.mxu1 %vm5747_vm5, %v5745_v36  ;;  %s4329_s2 = sshll.u32 %s5686_s23, 2  ;;  %s5750_s16 = smov 2  }
 0xa23   : >> { %5068 = vset.pattern.permute.xlu0 %v5749_v48  ;;  %s2724_s29 = scalar_lea.vmem %s6496_s17, %s4329_s2 [#allocation27]  ;;  %s3825_s13 = scalar_lea.vmem [#allocation2], %s4329_s2 }
 0xa24   : >> { %s2462_s23 = sadd.s32 1, %s5686_s23  }
 0xa25   : >> { %p2459_p4 = scmp.ge.s32.totalorder %s2462_s23, 12  }
 0xa26   : >> { %v2466_v37 = vld [vmem:[%s2465_s5] sm:$0xf]  ;;  %v4299_v38 = vld [vmem:[%s2465_s5 + $0x4] sm:$0xf]  ;;  %v4302_v39 = vld [vmem:[%s2465_s5 + $0x8] sm:$0xf] }
 0xa27   : >> { %2467 = vst.msk [vmem:[#allocation4] sm:$0xf] %vm2095_vm13, %v2466_v37  ;;  %2472 = vst.msk [vmem:[#allocation4 + $0x4] sm:$0xf] %vm2095_vm13, %v4299_v38  ;;  %v4305_v40 = vld [vmem:[%s2465_s5 + $0xc] sm:$0xf] }
 0xa28   : >> { %2477 = vst.msk [vmem:[#allocation4 + $0x8] sm:$0xf] %vm2095_vm13, %v4302_v39  ;;  %v4308_v11 = vld [vmem:[%s2465_s5 + $0x10] sm:$0xf]  ;;  %v4311_v31 = vld [vmem:[%s2465_s5 + $0x14] sm:$0xf] }
 0xa29   : >> { %2482 = vst.msk [vmem:[#allocation4 + $0xc] sm:$0xf] %vm2095_vm13, %v4305_v40  ;;  %2487 = vst.msk [vmem:[#allocation4 + $0x10] sm:$0xf] %vm2095_vm13, %v4308_v11  ;;  %v4314_v41 = vld [vmem:[%s2465_s5 + $0x18] sm:$0xf] }
 0xa2a   : >> { %2492 = vst.msk [vmem:[#allocation4 + $0x14] sm:$0xf] %vm2095_vm13, %v4311_v31  ;;  %v4317_v44 = vld [vmem:[%s2465_s5 + $0x1c] sm:$0xf]  ;;  %v4320_v45 = vld [vmem:[%s2465_s5 + $0x20] sm:$0xf] }
 0xa2b   : >> { %2497 = vst.msk [vmem:[#allocation4 + $0x18] sm:$0xf] %vm2095_vm13, %v4314_v41  ;;  %2502 = vst.msk [vmem:[#allocation4 + $0x1c] sm:$0xf] %vm2095_vm13, %v4317_v44  ;;  %v6988_v23 = vld [vmem:[#allocation18] sm:$0xf] (%p2459_p4) }
 0xa2c   : >> { %2507 = vst.msk [vmem:[#allocation4 + $0x20] sm:$0xf] %vm2095_vm13, %v4320_v45  ;;  %2738 = vst.msk [vmem:[#allocation3] sm:$0xf] (%p2459_p4), %vm2095_vm13, %v5718_v2  ;;  %v6990_v24 = vld [vmem:[#allocation18 + $0x4] sm:$0xf] (%p2459_p4) }
 0xa2d   : > { %2742 = vst.msk [vmem:[#allocation3 + $0x4] sm:$0xf] (%p2459_p4), %vm2105_vm12, %v5718_v2  ;;  %2743 = vst.msk [vmem:[#allocation3 + $0x8] sm:$0xf] (%p2459_p4), %vm2105_vm12, %v5718_v2  ;;  %v6992_v25 = vld [vmem:[#allocation18 + $0x8] sm:$0xf] (%p2459_p4) }
 0xa2e   : >> { %v5069_v46 = vld [vmem:[#allocation4] sm:$0xff]   ;;  %2744 = vst.msk [vmem:[#allocation3 + $0xc] sm:$0xf] (%p2459_p4), %vm2105_vm12, %v5718_v2  ;;  %2745 = vst.msk [vmem:[#allocation3 + $0x10] sm:$0xf] (%p2459_p4), %vm2105_vm12, %v5718_v2  ;;  %s7008_s23 = smov (%p2459_p4), 0  }
 0xa2f   : >> { %2540 = vrot.lane.b32.xlu0 %v5069_v46, %s5746_s4  ;;  %4628 = vmatpush3.bf16.msra.mxu1 %v5069_v46  ;;  %2746 = vst.msk [vmem:[#allocation3 + $0x14] sm:$0xf] (%p2459_p4), %vm2105_vm12, %v5718_v2  ;;  %2747 = vst.msk [vmem:[#allocation3 + $0x18] sm:$0xf] (%p2459_p4), %vm2105_vm12, %v5718_v2  ;;  %v7006_v26 = vld [vmem:[#allocation20] sm:$0xff] (%p2459_p4) }
 0xa30   : >> { %v5070_v8 = vld [vmem:[#allocation4 + $0x8] sm:$0xff]   ;;  %4629 = vmatprep.subr.bf16.mxu1 %v5745_v36  ;;  %2740 = vst.msk [vmem:[#allocation3 + $0x1c] sm:$0xf] (%p2459_p4), %vm2095_vm13, %v5718_v2 }
 0xa31   : >> { %v5071_v32 = vld [vmem:[#allocation4 + $0x10] sm:$0xff]   ;;  %2748 = vst.msk [vmem:[#allocation3 + $0x4] sm:$0xf] (%p2459_p4), %vm2130_vm14, %v5718_v2  ;;  %2749 = vst.msk [vmem:[#allocation3 + $0x8] sm:$0xf] (%p2459_p4), %vm2130_vm14, %v5718_v2 }
 0xa32   : >> { %2544 = vrot.lane.b32.xlu1 %v5071_v32, %s5746_s4  ;;  %v5072_v42 = vld [vmem:[#allocation4 + $0x18] sm:$0xff]   ;;  %2750 = vst.msk [vmem:[#allocation3 + $0xc] sm:$0xf] (%p2459_p4), %vm2130_vm14, %v5718_v2  ;;  %2751 = vst.msk [vmem:[#allocation3 + $0x10] sm:$0xf] (%p2459_p4), %vm2130_vm14, %v5718_v2 }
 0xa33   : >> { %2542 = vrot.lane.b32.xlu0 %v5070_v8, %s5746_s4  ;;  %v5073_v43 = vld [vmem:[#allocation4 + $0x20] ss:$0 sps:$4 sm:$0xff]   ;;  %4630 = vmatpush3.bf16.msra.mxu1 %v5070_v8  ;;  %2752 = vst.msk [vmem:[#allocation3 + $0x14] sm:$0xf] (%p2459_p4), %vm2130_vm14, %v5718_v2  ;;  %2753 = vst.msk [vmem:[#allocation3 + $0x18] sm:$0xf] (%p2459_p4), %vm2130_vm14, %v5718_v2 }
 0xa34   : >> { %4631 = vmatprep.subr.bf16.mxu1 %v5745_v36  ;;  %v2610_v47 = vsel %vm2558_vm6, %v5073_v43, 0 }
 0xa36   : >> { %2546 = vrot.lane.b32.xlu1 %v5072_v42, %s5746_s4 }
 0xa37   : >> { %2548 = vrot.lane.b32.xlu0 %v5073_v43, %s5746_s4  ;;  %4632 = vmatpush3.bf16.msra.mxu1 %v5071_v32 }
 0xa38   : >> { %4633 = vmatprep.subr.bf16.mxu1 %v5745_v36 }
 0xa3a   : >> { %2652 = vrot.lane.b32.xlu1 %v5069_v46, %s5748_s1 }
 0xa3b   : >> { %2654 = vrot.lane.b32.xlu0 %v5070_v8, %s5748_s1  ;;  %4634 = vmatpush3.bf16.msra.mxu1 %v5072_v42 }
 0xa3c   : >> { %4635 = vmatprep.subr.bf16.mxu1 %v5745_v36 }
 0xa3e   : >> { %2656 = vrot.lane.b32.xlu1 %v5071_v32, %s5748_s1 }
 0xa3f   : >> { %2658 = vrot.lane.b32.xlu0 %v5072_v42, %s5748_s1  ;;  %4636 = vmatpush3.bf16.msra.mxu1 %v2610_v47 }
 0xa42   : >> { %2660 = vrot.lane.b32.xlu1 %v5073_v43, %s5748_s1  ;;  %4638 = vmatmul.mubr.msk.bf16.vlgmr.msra.gmra.mrb[0].mxu1 %vm2554_vm8, %v6860_v30 }
 0xa43   : >> { %2715 = vperm.xlu0 %5068, %v6864_v34  }
 0xaa1   : >> { %v2541_v49 = vpop.permute.xlu0 %2540 }
 0xaa2   : >> { %4614 = vmatpush3.bf16.msra.mxu0 %v2541_v49 }
 0xaa3   : >> { %4615 = vmatprep.subr.bf16.mxu0 %v5745_v36 }
 0xaa4   : >> { %v2545_v51 = vpop.permute.xlu1 %2544 }
 0xaa5   : >> { %v2543_v50 = vpop.permute.xlu0 %2542 }
 0xaa6   : >> { %4616 = vmatpush3.bf16.msra.mxu0 %v2543_v50 }
 0xaa7   : >> { %4617 = vmatprep.subr.bf16.mxu0 %v5745_v36 }
 0xaa8   : >> { %v2547_v52 = vpop.permute.xlu1 %2546 }
 0xaa9   : >> { %v2549_v53 = vpop.permute.xlu0 %2548 }
 0xaaa   : >> { %4618 = vmatpush3.bf16.msra.mxu0 %v2545_v51  ;;  %v2560_v54 = vsel %vm2558_vm6, %v2549_v53, 0 }
 0xaab   : >> { %4619 = vmatprep.subr.bf16.mxu0 %v5745_v36 }
 0xaac   : >> { %v2653_v7 = vpop.permute.xlu1 %2652 }
 0xaad   : >> { %v2655_v55 = vpop.permute.xlu0 %2654 }
 0xaae   : >> { %4620 = vmatpush3.bf16.msra.mxu0 %v2547_v52 }
 0xaaf   : >> { %4621 = vmatprep.subr.bf16.mxu0 %v5745_v36 }
 0xab0   : >> { %v2657_v56 = vpop.permute.xlu1 %2656 }
 0xab1   : >> { %v2659_v57 = vpop.permute.xlu0 %2658 }
 0xab2   : >> { %4622 = vmatpush3.bf16.msra.mxu0 %v2560_v54 }
 0xab3   : >> { %4641 = vmatprep.subr.bf16.mxu0 %v5745_v36 }
 0xab4   : >> { %v2661_v58 = vpop.permute.xlu1 %2660 }
 0xab5   : >> { %4624 = vmatmul.mubr.msk.bf16.vlgmr.msra.gmra.mrb[0].mxu0 %vm2554_vm8, %v6862_v33  ;;  %v2670_v59 = vsel %vm2558_vm6, %v2661_v58, 0 }
 0xab6   : >> { %4642 = vmatpush3.bf16.msra.mxu0 %v2653_v7  ;;  %4651 = vmatprep.mubr.msk.bf16.mxu0 %vm5747_vm5, %v5745_v36 }
 0xab7   : >> { %4643 = vmatprep.subr.bf16.mxu0 %v5745_v36 }
 0xaba   : >> { %4644 = vmatpush3.bf16.msra.mxu0 %v2655_v55 }
 0xabb   : >> { %4645 = vmatprep.subr.bf16.mxu0 %v5745_v36 }
 0xabe   : >> { %4646 = vmatpush3.bf16.msra.mxu0 %v2657_v56 }
 0xabf   : >> { %4647 = vmatprep.subr.bf16.mxu0 %v5745_v36 }
 0xac2   : >> { %4648 = vmatpush3.bf16.msra.mxu0 %v2659_v57  ;;  %v2716_v13 = vpop.permute.xlu0 %2715 }
 0xac3   : >> { %4649 = vmatprep.subr.bf16.mxu0 %v5745_v36 }
 0xac6   : >> { %4650 = vmatpush3.bf16.msra.mxu0 %v2670_v59 }
 0xac9   : >> { %4652 = vmatmul.mubr.msk.bf16.vlgmr.msra.gmra.mrb[4].mxu0 %vm2554_vm8, %v6878_v35 }
 0xb15   : >> { %v2646_v60 = vpop.f32.mrb[0].mxu1 }
 0xb16   : >> { %v4639_v61 = vpop.f32.mrb[1].mxu1 }
 0xb17   : >> { %v2649_v62 = vpop.f32.mrb[2].mxu1 }
 0xb18   : >> { %v4640_v63 = vpop.f32.mrb[3].mxu1 }
 0xb88   : >> { %v2596_v0 = vpop.f32.mrb[0].mxu0 }
 0xb89   : >> { %v4625_v1 = vpop.f32.mrb[1].mxu0  ;;  %v2647_v3 = vadd.f32 %v2646_v60, %v2596_v0 }
 0xb8a   : >> { %v2599_v4 = vpop.f32.mrb[2].mxu0 }
 0xb8b   : >> { %v4626_v6 = vpop.f32.mrb[3].mxu0 }
 0xb9c   : >> { %v2706_v12 = vpop.f32.mrb[4].mxu0 }
 0xb9d   : >> { %v2712_v14 = vadd.f32 %v2706_v12, %v2647_v3  ;;  %v4653_v15 = vpop.f32.mrb[5].mxu0 }
 0xb9e   : >> { %v2709_v16 = vpop.f32.mrb[6].mxu0 }
 0xb9f   : >> { %v2718_v17 = vadd.f32 %v2716_v13, %v2712_v14  ;;  %v4654_v18 = vpop.f32.mrb[7].mxu0 }
 0xba1   : >> { %vm2719_vm9 = vcmp.gt.f32.partialorder %v2718_v17, 0.0  ;;  %v2720_v19 = vmul.f32 0.1, %v2718_v17 }
 0xba3   : >> { %v2721_v20 = vsel %vm2719_vm9, %v2718_v17, %v2720_v19 }
 0xba4   : >> { %v2722_v21 = vpack.c.bf16 %v2721_v20, %v2721_v20 }
 0xba6   : >> { %2731 = vrot.lane.b32.xlu1 %v2722_v21, %s5750_s16  ;;  %2726 = vst.msk [vmem:[%s2724_s29] sm:$0xf] %vm2405_vm2, %v2722_v21 }
 0xc13   : > { %2461 = sbr.rel (!%p2459_p4) target bundleno = 2592 (0xa20), region = 413 }
 0xc18   : >> { %v2732_v22 = vpop.permute.xlu1 %2731 }
 0xc19   : >> { %4332 = vst.msk [vmem:[%s3825_s13 + $0x10] sm:$0xf] %vm2736_vm10, %v2732_v22 }
 0xc1a LB: >> { %v5751_v27 = vmov 0.0   ;;  %s4416_s5 = sshll.u32 %s5690_s23, 3  ;;  %s5752_s1 = smov 126   ;;  %vm5753_vm11 = vmmov 0   ;;  %v5755_v41 = vmov 0   ;;  %s5690_s23 = sphi %s7008_s23, %s2763_s23  }
 0xc1b   : >> { %4655 = vmatprep.subr.bf16.mxu0 %v5751_v27  ;;  %4669 = vmatprep.subr.bf16.mxu1 %v5751_v27  ;;  %s2766_s4 = scalar_lea.vmem [#allocation2], %s4416_s5  ;;  %s5754_s2 = smov 124  }
 0xc1c   : >> { %4665 = vmatprep.mubr.msk.bf16.mxu0 %vm5753_vm11, %v5751_v27  ;;  %4679 = vmatprep.mubr.msk.bf16.mxu1 %vm5753_vm11, %v5751_v27  ;;  %s4367_s29 = sshll.u32 %s5690_s23, 2  ;;  %s5756_s13 = smov 1  }
 0xc1d   : >> { %5074 = vset.pattern.permute.xlu0 %v5755_v41  ;;  %s3025_s16 = scalar_lea.vmem %s7416_s21, %s4367_s29 [#allocation29]  ;;  %s3864_s5 = scalar_lea.vmem [#allocation3], %s4367_s29 }
 0xc1e   : >> { %s2763_s23 = sadd.s32 1, %s5690_s23  }
 0xc1f   : >> { %p2760_p3 = scmp.ge.s32.totalorder %s2763_s23, 6  }
 0xc20   : >> { %v2767_v28 = vld [vmem:[%s2766_s4] sm:$0xf]  ;;  %v4337_v29 = vld [vmem:[%s2766_s4 + $0x4] sm:$0xf]  ;;  %v4340_v9 = vld [vmem:[%s2766_s4 + $0x8] sm:$0xf] }
 0xc21   : >> { %2768 = vst.msk [vmem:[#allocation4] sm:$0xf] %vm2417_vm0, %v2767_v28  ;;  %2773 = vst.msk [vmem:[#allocation4 + $0x4] sm:$0xf] %vm2417_vm0, %v4337_v29  ;;  %v4343_v10 = vld [vmem:[%s2766_s4 + $0xc] sm:$0xf] }
 0xc22   : >> { %2778 = vst.msk [vmem:[#allocation4 + $0x8] sm:$0xf] %vm2417_vm0, %v4340_v9  ;;  %v4346_v30 = vld [vmem:[%s2766_s4 + $0x10] sm:$0xf]  ;;  %v4349_v33 = vld [vmem:[%s2766_s4 + $0x14] sm:$0xf] }
 0xc23   : >> { %2783 = vst.msk [vmem:[#allocation4 + $0xc] sm:$0xf] %vm2417_vm0, %v4343_v10  ;;  %2788 = vst.msk [vmem:[#allocation4 + $0x10] sm:$0xf] %vm2417_vm0, %v4346_v30  ;;  %v4352_v34 = vld [vmem:[%s2766_s4 + $0x18] sm:$0xf] }
 0xc24   : >> { %2793 = vst.msk [vmem:[#allocation4 + $0x14] sm:$0xf] %vm2417_vm0, %v4349_v33  ;;  %v4355_v35 = vld [vmem:[%s2766_s4 + $0x1c] sm:$0xf]  ;;  %v4358_v36 = vld [vmem:[%s2766_s4 + $0x20] sm:$0xf] }
 0xc25   : >> { %2798 = vst.msk [vmem:[#allocation4 + $0x18] sm:$0xf] %vm2417_vm0, %v4352_v34  ;;  %2803 = vst.msk [vmem:[#allocation4 + $0x1c] sm:$0xf] %vm2417_vm0, %v4355_v35  ;;  %v7078_v14 = vld [vmem:[#allocation21] sm:$0xf] (%p2760_p3) }
 0xc26   : >> { %2808 = vst.msk [vmem:[#allocation4 + $0x20] sm:$0xf] %vm2417_vm0, %v4358_v36  ;;  %v7080_v15 = vld [vmem:[#allocation21 + $0x4] sm:$0xf] (%p2760_p3)  ;;  %v7082_v16 = vld [vmem:[#allocation21 + $0x8] sm:$0xf] (%p2760_p3) }
 0xc27   : > { %3043 = vst.msk [vmem:[#allocation2 + $0x4] sm:$0xf] (%p2760_p3), %vm2105_vm12, %v5718_v2  ;;  %3044 = vst.msk [vmem:[#allocation2 + $0x8] sm:$0xf] (%p2760_p3), %vm2105_vm12, %v5718_v2  ;;  %v7096_v17 = vld [vmem:[#allocation23] sm:$0xff] (%p2760_p3)  ;;  %s7098_s23 = smov (%p2760_p3), 0  }
 0xc28   : >> { %v5075_v37 = vld [vmem:[#allocation4] sm:$0xff]   ;;  %3045 = vst.msk [vmem:[#allocation2 + $0xc] sm:$0xf] (%p2760_p3), %vm2105_vm12, %v5718_v2  ;;  %3046 = vst.msk [vmem:[#allocation2 + $0x10] sm:$0xf] (%p2760_p3), %vm2105_vm12, %v5718_v2 }
 0xc29   : >> { %2841 = vrot.lane.b32.xlu0 %v5075_v37, %s5752_s1  ;;  %4670 = vmatpush3.bf16.msra.mxu1 %v5075_v37  ;;  %3047 = vst.msk [vmem:[#allocation2 + $0x14] sm:$0xf] (%p2760_p3), %vm2105_vm12, %v5718_v2  ;;  %3048 = vst.msk [vmem:[#allocation2 + $0x18] sm:$0xf] (%p2760_p3), %vm2105_vm12, %v5718_v2 }
 0xc2a   : >> { %v5076_v38 = vld [vmem:[#allocation4 + $0x8] sm:$0xff]   ;;  %4671 = vmatprep.subr.bf16.mxu1 %v5751_v27  ;;  %3039 = vst.msk [vmem:[#allocation2] sm:$0xf] (%p2760_p3), %vm2095_vm13, %v5718_v2  ;;  %3041 = vst.msk [vmem:[#allocation2 + $0x1c] sm:$0xf] (%p2760_p3), %vm2095_vm13, %v5718_v2 }
 0xc2b   : >> { %v5077_v39 = vld [vmem:[#allocation4 + $0x10] sm:$0xff]   ;;  %3049 = vst.msk [vmem:[#allocation2 + $0x4] sm:$0xf] (%p2760_p3), %vm2130_vm14, %v5718_v2  ;;  %3050 = vst.msk [vmem:[#allocation2 + $0x8] sm:$0xf] (%p2760_p3), %vm2130_vm14, %v5718_v2 }
 0xc2c   : >> { %2845 = vrot.lane.b32.xlu1 %v5077_v39, %s5752_s1  ;;  %v5078_v40 = vld [vmem:[#allocation4 + $0x18] sm:$0xff]   ;;  %3051 = vst.msk [vmem:[#allocation2 + $0xc] sm:$0xf] (%p2760_p3), %vm2130_vm14, %v5718_v2  ;;  %3052 = vst.msk [vmem:[#allocation2 + $0x10] sm:$0xf] (%p2760_p3), %vm2130_vm14, %v5718_v2 }
 0xc2d   : >> { %2843 = vrot.lane.b32.xlu0 %v5076_v38, %s5752_s1  ;;  %v5079_v11 = vld [vmem:[#allocation4 + $0x20] ss:$0 sps:$4 sm:$0xff]   ;;  %4672 = vmatpush3.bf16.msra.mxu1 %v5076_v38  ;;  %3053 = vst.msk [vmem:[#allocation2 + $0x14] sm:$0xf] (%p2760_p3), %vm2130_vm14, %v5718_v2  ;;  %3054 = vst.msk [vmem:[#allocation2 + $0x18] sm:$0xf] (%p2760_p3), %vm2130_vm14, %v5718_v2 }
 0xc2e   : >> { %4673 = vmatprep.subr.bf16.mxu1 %v5751_v27  ;;  %v2911_v31 = vsel %vm2558_vm6, %v5079_v11, 0 }
 0xc30   : >> { %2847 = vrot.lane.b32.xlu1 %v5078_v40, %s5752_s1 }
 0xc31   : >> { %2849 = vrot.lane.b32.xlu0 %v5079_v11, %s5752_s1  ;;  %4674 = vmatpush3.bf16.msra.mxu1 %v5077_v39 }
 0xc32   : >> { %4675 = vmatprep.subr.bf16.mxu1 %v5751_v27 }
 0xc34   : >> { %2953 = vrot.lane.b32.xlu1 %v5075_v37, %s5754_s2 }
 0xc35   : >> { %2955 = vrot.lane.b32.xlu0 %v5076_v38, %s5754_s2  ;;  %4676 = vmatpush3.bf16.msra.mxu1 %v5078_v40 }
 0xc36   : >> { %4677 = vmatprep.subr.bf16.mxu1 %v5751_v27 }
 0xc38   : >> { %2957 = vrot.lane.b32.xlu1 %v5077_v39, %s5754_s2 }
 0xc39   : >> { %2959 = vrot.lane.b32.xlu0 %v5078_v40, %s5754_s2  ;;  %4678 = vmatpush3.bf16.msra.mxu1 %v2911_v31 }
 0xc3c   : >> { %2961 = vrot.lane.b32.xlu1 %v5079_v11, %s5754_s2  ;;  %4680 = vmatmul.mubr.msk.bf16.vlgmr.msra.gmra.mrb[0].mxu1 %vm2554_vm8, %v6988_v23 }
 0xc3d   : >> { %3016 = vperm.xlu0 %5074, %v7006_v26  }
 0xc9b   : >> { %v2842_v44 = vpop.permute.xlu0 %2841 }
 0xc9c   : >> { %4656 = vmatpush3.bf16.msra.mxu0 %v2842_v44 }
 0xc9d   : >> { %4657 = vmatprep.subr.bf16.mxu0 %v5751_v27 }
 0xc9e   : >> { %v2846_v46 = vpop.permute.xlu1 %2845 }
 0xc9f   : >> { %v2844_v45 = vpop.permute.xlu0 %2843 }
 0xca0   : >> { %4658 = vmatpush3.bf16.msra.mxu0 %v2844_v45 }
 0xca1   : >> { %4659 = vmatprep.subr.bf16.mxu0 %v5751_v27 }
 0xca2   : >> { %v2848_v8 = vpop.permute.xlu1 %2847 }
 0xca3   : >> { %v2850_v32 = vpop.permute.xlu0 %2849 }
 0xca4   : >> { %4660 = vmatpush3.bf16.msra.mxu0 %v2846_v46  ;;  %v2861_v42 = vsel %vm2558_vm6, %v2850_v32, 0 }
 0xca5   : >> { %4661 = vmatprep.subr.bf16.mxu0 %v5751_v27 }
 0xca6   : >> { %v2954_v43 = vpop.permute.xlu1 %2953 }
 0xca7   : >> { %v2956_v47 = vpop.permute.xlu0 %2955 }
 0xca8   : >> { %4662 = vmatpush3.bf16.msra.mxu0 %v2848_v8 }
 0xca9   : >> { %4663 = vmatprep.subr.bf16.mxu0 %v5751_v27 }
 0xcaa   : >> { %v2958_v48 = vpop.permute.xlu1 %2957 }
 0xcab   : >> { %v2960_v49 = vpop.permute.xlu0 %2959 }
 0xcac   : >> { %4664 = vmatpush3.bf16.msra.mxu0 %v2861_v42 }
 0xcad   : >> { %4683 = vmatprep.subr.bf16.mxu0 %v5751_v27 }
 0xcae   : >> { %v2962_v50 = vpop.permute.xlu1 %2961 }
 0xcaf   : >> { %4666 = vmatmul.mubr.msk.bf16.vlgmr.msra.gmra.mrb[0].mxu0 %vm2554_vm8, %v6990_v24  ;;  %v2971_v51 = vsel %vm2558_vm6, %v2962_v50, 0 }
 0xcb0   : >> { %4684 = vmatpush3.bf16.msra.mxu0 %v2954_v43  ;;  %4693 = vmatprep.mubr.msk.bf16.mxu0 %vm5753_vm11, %v5751_v27 }
 0xcb1   : >> { %4685 = vmatprep.subr.bf16.mxu0 %v5751_v27 }
 0xcb4   : >> { %4686 = vmatpush3.bf16.msra.mxu0 %v2956_v47 }
 0xcb5   : >> { %4687 = vmatprep.subr.bf16.mxu0 %v5751_v27 }
 0xcb8   : >> { %4688 = vmatpush3.bf16.msra.mxu0 %v2958_v48 }
 0xcb9   : >> { %4689 = vmatprep.subr.bf16.mxu0 %v5751_v27 }
 0xcbc   : >> { %4690 = vmatpush3.bf16.msra.mxu0 %v2960_v49  ;;  %v3017_v61 = vpop.permute.xlu0 %3016 }
 0xcbd   : >> { %4691 = vmatprep.subr.bf16.mxu0 %v5751_v27 }
 0xcc0   : >> { %4692 = vmatpush3.bf16.msra.mxu0 %v2971_v51 }
 0xcc3   : >> { %4694 = vmatmul.mubr.msk.bf16.vlgmr.msra.gmra.mrb[4].mxu0 %vm2554_vm8, %v6992_v25 }
 0xd0f   : >> { %v2947_v52 = vpop.f32.mrb[0].mxu1 }
 0xd10   : >> { %v4681_v53 = vpop.f32.mrb[1].mxu1 }
 0xd11   : >> { %v2950_v54 = vpop.f32.mrb[2].mxu1 }
 0xd12   : >> { %v4682_v7 = vpop.f32.mrb[3].mxu1 }
 0xd82   : >> { %v2897_v55 = vpop.f32.mrb[0].mxu0 }
 0xd83   : >> { %v4667_v56 = vpop.f32.mrb[1].mxu0  ;;  %v2948_v57 = vadd.f32 %v2947_v52, %v2897_v55 }
 0xd84   : >> { %v2900_v58 = vpop.f32.mrb[2].mxu0 }
 0xd85   : >> { %v4668_v59 = vpop.f32.mrb[3].mxu0 }
 0xd96   : >> { %v3007_v60 = vpop.f32.mrb[4].mxu0 }
 0xd97   : >> { %v3013_v62 = vadd.f32 %v3007_v60, %v2948_v57  ;;  %v4695_v63 = vpop.f32.mrb[5].mxu0 }
 0xd98   : >> { %v3010_v0 = vpop.f32.mrb[6].mxu0 }
 0xd99   : >> { %v3019_v1 = vadd.f32 %v3017_v61, %v3013_v62  ;;  %v4696_v3 = vpop.f32.mrb[7].mxu0 }
 0xd9b   : >> { %vm3020_vm15 = vcmp.gt.f32.partialorder %v3019_v1, 0.0  ;;  %v3021_v4 = vmul.f32 0.1, %v3019_v1 }
 0xd9d   : >> { %v3022_v6 = vsel %vm3020_vm15, %v3019_v1, %v3021_v4 }
 0xd9e   : >> { %v3023_v12 = vpack.c.bf16 %v3022_v6, %v3022_v6 }
 0xda0   : >> { %3032 = vrot.lane.b32.xlu1 %v3023_v12, %s5756_s13  ;;  %3027 = vst.msk [vmem:[%s3025_s16] sm:$0xf] %vm2405_vm2, %v3023_v12 }
 0xe0d   : > { %2762 = sbr.rel (!%p2760_p3) target bundleno = 3098 (0xc1a), region = 424 }
 0xe12   : >> { %v3033_v13 = vpop.permute.xlu1 %3032 }
 0xe13   : >> { %4370 = vst.msk [vmem:[%s3864_s5 + $0x4] sm:$0xf] %vm2415_vm3, %v3033_v13 }
 0xe14 LB: >> { %v5757_v18 = vmov 0.0   ;;  %s7104_s4 = sshll.u32 %s5694_s23, 2  ;;  %vm5758_vm12 = vmmov 0   ;;  %s5759_s2 = smov 127   ;;  %vm3095_vm14 = vcmask 195584   ;;  %v5761_v24 = vmov 0   ;;  %s5694_s23 = sphi %s7098_s23, %s3064_s23  }
 0xe15   : >> { %4697 = vmatprep.subr.bf16.mxu0 %v5757_v18  ;;  %4705 = vmatprep.subr.bf16.mxu1 %v5757_v18  ;;  %s3066_s1 = scalar_lea.vmem [#allocation3], %s7104_s4  ;;  %s5760_s29 = smov 126  }
 0xe16   : >> { %4701 = vmatprep.mubr.msk.bf16.mxu0 %vm5758_vm12, %v5757_v18  ;;  %4709 = vmatprep.mubr.msk.bf16.mxu1 %vm5758_vm12, %v5757_v18  ;;  %s3253_s16 = scalar_lea.vmem %s7417_s22, %s7104_s4 [#allocation30]  ;;  %s5762_s13 = smov 1  }
 0xe17   : >> { %5080 = vset.pattern.permute.xlu0 %v5761_v24  ;;  %s3877_s5 = scalar_lea.vmem [#allocation2], %s7104_s4  ;;  %s3064_s23 = sadd.s32 1, %s5694_s23  }
 0xe18   : >> { %p3061_p0 = scmp.ge.s32.totalorder %s3064_s23, 6  }
 0xe19   : > { %v7132_v47 = vld [vmem:[#allocation24] sm:$0x1] (%p3061_p0)  ;;  %v7134_v48 = vld [vmem:[#allocation24 + $0x1] sm:$0x1] (%p3061_p0)  ;;  %v7136_v49 = vld [vmem:[#allocation24 + $0x2] sm:$0x1] (%p3061_p0) }
 0xe1a   : >> { %v3067_v19 = vld [vmem:[%s3066_s1] sm:$0xf]  ;;  %v4373_v20 = vld [vmem:[%s3066_s1 + $0x4] sm:$0xf]  ;;  %v4375_v2 = vld [vmem:[%s3066_s1 + $0x8] sm:$0xf] }
 0xe1b   : >> { %3068 = vst.msk [vmem:[#allocation4] sm:$0xf] %vm2095_vm13, %v3067_v19  ;;  %3073 = vst.msk [vmem:[#allocation4 + $0x4] sm:$0xf] %vm2095_vm13, %v4373_v20  ;;  %v7138_v50 = vld [vmem:[#allocation5] sm:$0x1] (%p3061_p0) }
 0xe1c   : >> { %3078 = vst.msk [vmem:[#allocation4 + $0x8] sm:$0xf] %vm2095_vm13, %v4375_v2  ;;  %s7140_s1 = smov (%p3061_p0), 0  }
 0xe22   : >> { %v5081_v21 = vld [vmem:[#allocation4] sm:$0xff]  }
 0xe23   : >> { %3090 = vrot.lane.b32.xlu0 %v5081_v21, %s5759_s2  ;;  %v5082_v22 = vld [vmem:[#allocation4 + $0x8] ss:$0 sps:$4 sm:$0xff]   ;;  %3190 = vrot.lane.b32.xlu1 %v5081_v21, %s5760_s29 }
 0xe24   : >> { %4706 = vmatpush3.bf16.msra.mxu1 %v5081_v21  ;;  %v3148_v23 = vsel %vm2558_vm6, %v5082_v22, 0 }
 0xe25   : >> { %4707 = vmatprep.subr.bf16.mxu1 %v5757_v18 }
 0xe27   : >> { %3092 = vrot.lane.b32.xlu0 %v5082_v22, %s5759_s2  ;;  %3192 = vrot.lane.b32.xlu1 %v5082_v22, %s5760_s29 }
 0xe28   : >> { %4708 = vmatpush3.bf16.msra.mxu1 %v3148_v23 }
 0xe2b   : >> { %4710 = vmatmul.mubr.msk.bf16.vlgmr.msra.gmra.mrb[0].mxu1 %vm3095_vm14, %v7078_v14  ;;  %3244 = vperm.xlu0 %5080, %v7096_v17  }
 0xe95   : >> { %v3091_v25 = vpop.permute.xlu0 %3090  ;;  %v3191_v26 = vpop.permute.xlu1 %3190 }
 0xe96   : >> { %4698 = vmatpush3.bf16.msra.mxu0 %v3091_v25 }
 0xe97   : >> { %4699 = vmatprep.subr.bf16.mxu0 %v5757_v18 }
 0xe99   : >> { %v3093_v27 = vpop.permute.xlu0 %3092  ;;  %v3193_v29 = vpop.permute.xlu1 %3192 }
 0xe9a   : >> { %v3101_v28 = vsel %vm2558_vm6, %v3093_v27, 0  ;;  %v3199_v9 = vsel %vm2558_vm6, %v3193_v29, 0 }
 0xe9b   : >> { %4700 = vmatpush3.bf16.msra.mxu0 %v3101_v28 }
 0xe9c   : >> { %4713 = vmatprep.subr.bf16.mxu0 %v5757_v18 }
 0xe9e   : >> { %4702 = vmatmul.mubr.msk.bf16.vlgmr.msra.gmra.mrb[0].mxu0 %vm3095_vm14, %v7080_v15 }
 0xe9f   : >> { %4714 = vmatpush3.bf16.msra.mxu0 %v3191_v26  ;;  %4717 = vmatprep.mubr.msk.bf16.mxu0 %vm5758_vm12, %v5757_v18 }
 0xea0   : >> { %4715 = vmatprep.subr.bf16.mxu0 %v5757_v18 }
 0xea3   : >> { %4716 = vmatpush3.bf16.msra.mxu0 %v3199_v9 }
 0xea6   : >> { %4718 = vmatmul.mubr.msk.bf16.vlgmr.msra.gmra.mrb[4].mxu0 %vm3095_vm14, %v7082_v16 }
 0xeaa   : >> { %v3245_v11 = vpop.permute.xlu0 %3244 }
 0xefe   : >> { %v3184_v10 = vpop.f32.mrb[0].mxu1 }
 0xeff   : >> { %v4711_v30 = vpop.f32.mrb[1].mxu1 }
 0xf00   : >> { %v3187_v33 = vpop.f32.mrb[2].mxu1 }
 0xf01   : >> { %v4712_v34 = vpop.f32.mrb[3].mxu1 }
 0xf71   : >> { %v3137_v35 = vpop.f32.mrb[0].mxu0 }
 0xf72   : >> { %v4703_v36 = vpop.f32.mrb[1].mxu0  ;;  %v3185_v37 = vadd.f32 %v3184_v10, %v3137_v35 }
 0xf73   : >> { %v3140_v38 = vpop.f32.mrb[2].mxu0 }
 0xf74   : >> { %v4704_v39 = vpop.f32.mrb[3].mxu0 }
 0xf79   : >> { %v3235_v40 = vpop.f32.mrb[4].mxu0 }
 0xf7a   : >> { %v3241_v31 = vadd.f32 %v3235_v40, %v3185_v37  ;;  %v4719_v41 = vpop.f32.mrb[5].mxu0 }
 0xf7b   : >> { %v3238_v44 = vpop.f32.mrb[6].mxu0 }
 0xf7c   : >> { %v3247_v45 = vadd.f32 %v3245_v11, %v3241_v31  ;;  %v4720_v46 = vpop.f32.mrb[7].mxu0 }
 0xf7e   : >> { %vm3248_vm1 = vcmp.gt.f32.partialorder %v3247_v45, 0.0  ;;  %v3249_v8 = vmul.f32 0.1, %v3247_v45 }
 0xf80   : >> { %v3250_v32 = vsel %vm3248_vm1, %v3247_v45, %v3249_v8 }
 0xf81   : >> { %v3251_v42 = vpack.c.bf16 %v3250_v32, %v3250_v32 }
 0xf83   : >> { %3259 = vrot.lane.b32.xlu1 %v3251_v42, %s5762_s13  ;;  %3255 = vst.msk [vmem:[%s3253_s16] sm:$0xf] %vm2405_vm2, %v3251_v42 }
 0xff0   : > { %3063 = sbr.rel (!%p3061_p0) target bundleno = 3604 (0xe14), region = 435 }
 0xff5   : >> { %v3260_v43 = vpop.permute.xlu1 %3259 }
 0xff6   : >> { %4384 = vst.msk [vmem:[%s3877_s5 + $0x4] sm:$0xf] %vm2415_vm3, %v3260_v43 }
 0xff7 LB: >> { %v5763_v51 = vmov 0.0   ;;  %s4385_s23 = sshll.u32 %s5698_s1, 2  ;;  %vm5764_vm2 = vmmov 0   ;;  %s5765_s2 = smov 127   ;;  %v5767_v57 = vmov 0   ;;  %v3460_v16 = vsub.s32 0, %v6313_v5  ;;  %s5698_s1 = sphi %s7140_s1, %s3275_s1  }
 0xff8   : >> { %4721 = vmatprep.subr.bf16.mxu0 %v5763_v51  ;;  %4729 = vmatprep.subr.bf16.mxu1 %v5763_v51  ;;  %s3277_s4 = scalar_lea.vmem [#allocation2], %s4385_s23  ;;  %s5766_s29 = smov 126   ;;  %vm3465_vm3 = vcmask 122880   ;;  %vm3466_vm7 = vsmask.f32 256 }
 0xff9   : >> { %4725 = vmatprep.mubr.msk.bf16.mxu0 %vm5764_vm2, %v5763_v51  ;;  %4733 = vmatprep.mubr.msk.bf16.mxu1 %vm5764_vm2, %v5763_v51  ;;  %s3464_s16 = scalar_lea.vmem %s6502_s30, %s5698_s1 [#allocation32]  ;;  %vm3467_vm0 = vmand %vm3465_vm3, %vm3466_vm7  ;;  %s3275_s1 = sadd.s32 1, %s5698_s1  }
 0xffa   : >> { %5083 = vset.pattern.permute.xlu0 %v5767_v57  ;;  %v3468_v24 = vld [vmem:[%s3464_s16] sm:$0x1]  ;;  %p3272_p5 = scmp.ge.s32.totalorder %s3275_s1, 6  }
 0xffb   : > { %s7483_s13 = sld [smem:[#allocation43_spill]] (%p3272_p5)  ;;  %p7485_p7 = scmp.ne.s32.totalorder (%p3272_p5), %s7464_s0, 0 }
 0xffd   : >> { %v3278_v52 = vld [vmem:[%s3277_s4] sm:$0xf]  ;;  %v4387_v53 = vld [vmem:[%s3277_s4 + $0x4] sm:$0xf]  ;;  %v4389_v54 = vld [vmem:[%s3277_s4 + $0x8] sm:$0xf] }
 0xffe   : >> { %3279 = vst.msk [vmem:[#allocation4] sm:$0xf] %vm2095_vm13, %v3278_v52  ;;  %3284 = vst.msk [vmem:[#allocation4 + $0x4] sm:$0xf] %vm2095_vm13, %v4387_v53  ;;  %s3521_s4 = sshll.u32 (%p3272_p5), %s6496_s17, 4  ;;  %s5768_s17 = smov (%p3272_p5), [#allocation27]   ;;  %s7171_s4 = int_to_ptr.vmem [resolvable:$true] %s3521_s4 }
 0xfff   : >> { %3289 = vst.msk [vmem:[#allocation4 + $0x8] sm:$0xf] %vm2095_vm13, %v4389_v54  ;;  %s5424_s22 = scalar_lea.vmem (%p3272_p5), %s7171_s4, 768  ;;  %s5428_s7 = sshll.u32 (%p3272_p5), %s5768_s17, 4  ;;  %s5429_s7 = int_to_ptr.vmem [resolvable:$false] %s5428_s7 }
0x1000   : > { %p5425_p2 = scmp.ne.s32.totalorder (%p3272_p5), %s7171_s4, %s5424_s22  ;;  %s5430_s8 = scalar_lea.vmem (%p3272_p5), %s5429_s7, 1536 }
0x1001   : > { %s7418_s5 = sand.u32 (%p3272_p5), 1, %s7483_s13   ;;  %s4752_s23 = smul.u32 (%p3272_p5), 768, %s7483_s13 }
0x1002   : > { %s7419_s1 = smul.u32 (%p3272_p5), 384, %s7483_s13  ;;  %s7181_s21 = scalar_lea.sflag (%p3272_p5), [#allocation28], %s7418_s5 }
0x1003   : > { %p5426_p10 = pnand (%p3272_p5), %p5425_p2, %p7485_p7  ;;  %p5431_p11 = scmp.lt.s32.totalorder (%p3272_p5), %s7171_s4, %s5429_s7 }
0x1004   : > { %p5432_p12 = scmp.lt.s32.totalorder (%p3272_p5), %s5430_s8, %s5424_s22 }
0x1005   : >> { %v5084_v7 = vld [vmem:[#allocation4] sm:$0xff]   ;;  %p5427_p1 = pneg (%p3272_p5), %p5426_p10 }
0x1006   : >> { %3301 = vrot.lane.b32.xlu0 %v5084_v7, %s5765_s2  ;;  %v5085_v55 = vld [vmem:[#allocation4 + $0x8] ss:$0 sps:$4 sm:$0xff]   ;;  %3401 = vrot.lane.b32.xlu1 %v5084_v7, %s5766_s29  ;;  %p5433_p13 = por (%p3272_p5), %p5432_p12, %p5431_p11 }
0x1007   : >> { %4730 = vmatpush3.bf16.msra.mxu1 %v5084_v7  ;;  %v3359_v56 = vsel %vm2558_vm6, %v5085_v55, 0 }
0x1008   : >> { %4731 = vmatprep.subr.bf16.mxu1 %v5763_v51  ;;  %p5434_p8 = pnand (%p3272_p5), %p5433_p13, %p5427_p1 }
0x100a   : >> { %3303 = vrot.lane.b32.xlu0 %v5085_v55, %s5765_s2  ;;  %3403 = vrot.lane.b32.xlu1 %v5085_v55, %s5766_s29 }
0x100b   : >> { %4732 = vmatpush3.bf16.msra.mxu1 %v3359_v56 }
0x100e   : >> { %4734 = vmatmul.mubr.msk.bf16.vlgmr.msra.gmra.mrb[0].mxu1 %vm3095_vm14, %v7132_v47  ;;  %3455 = vperm.xlu0 %5083, %v7138_v50  }
0x1078   : >> { %v3302_v58 = vpop.permute.xlu0 %3301  ;;  %v3402_v59 = vpop.permute.xlu1 %3401 }
0x1079   : >> { %4722 = vmatpush3.bf16.msra.mxu0 %v3302_v58 }
0x107a   : >> { %4723 = vmatprep.subr.bf16.mxu0 %v5763_v51 }
0x107c   : >> { %v3304_v60 = vpop.permute.xlu0 %3303  ;;  %v3404_v62 = vpop.permute.xlu1 %3403 }
0x107d   : >> { %v3312_v61 = vsel %vm2558_vm6, %v3304_v60, 0  ;;  %v3410_v63 = vsel %vm2558_vm6, %v3404_v62, 0 }
0x107e   : >> { %4724 = vmatpush3.bf16.msra.mxu0 %v3312_v61 }
0x107f   : >> { %4737 = vmatprep.subr.bf16.mxu0 %v5763_v51 }
0x1081   : >> { %4726 = vmatmul.mubr.msk.bf16.vlgmr.msra.gmra.mrb[0].mxu0 %vm3095_vm14, %v7134_v48 }
0x1082   : >> { %4738 = vmatpush3.bf16.msra.mxu0 %v3402_v59  ;;  %4741 = vmatprep.mubr.msk.bf16.mxu0 %vm5764_vm2, %v5763_v51 }
0x1083   : >> { %4739 = vmatprep.subr.bf16.mxu0 %v5763_v51 }
0x1086   : >> { %4740 = vmatpush3.bf16.msra.mxu0 %v3410_v63 }
0x1089   : >> { %4742 = vmatmul.mubr.msk.bf16.vlgmr.msra.gmra.mrb[4].mxu0 %vm3095_vm14, %v7136_v49 }
0x108d   : >> { %v3456_v17 = vpop.permute.xlu0 %3455 }
0x108e   : >> { %v3461_v18 = vrot.slane %v3456_v17, %v3460_v16 }
0x10e1   : >> { %v3395_v0 = vpop.f32.mrb[0].mxu1 }
0x10e2   : >> { %v4735_v1 = vpop.f32.mrb[1].mxu1 }
0x10e3   : >> { %v3398_v3 = vpop.f32.mrb[2].mxu1 }
0x10e4   : >> { %v4736_v4 = vpop.f32.mrb[3].mxu1 }
0x1154   : >> { %v3348_v6 = vpop.f32.mrb[0].mxu0 }
0x1155   : >> { %v4727_v12 = vpop.f32.mrb[1].mxu0  ;;  %v3396_v13 = vadd.f32 %v3395_v0, %v3348_v6 }
0x1156   : >> { %v3351_v14 = vpop.f32.mrb[2].mxu0 }
0x1157   : >> { %v4728_v15 = vpop.f32.mrb[3].mxu0 }
0x115c   : >> { %v3446_v19 = vpop.f32.mrb[4].mxu0 }
0x115d   : >> { %v3452_v20 = vadd.f32 %v3446_v19, %v3396_v13  ;;  %v4743_v2 = vpop.f32.mrb[5].mxu0 }
0x115e   : >> { %v3449_v21 = vpop.f32.mrb[6].mxu0  ;;  %3274 = sbr.rel (!%p3272_p5) target bundleno = 4087 (0xff7), region = 446 }
0x115f   : >> { %v3462_v22 = vadd.f32 %v3461_v18, %v3452_v20  ;;  %v4744_v23 = vpop.f32.mrb[7].mxu0 }
0x1161   : >> { %v3463_v25 = vpack.c.bf16 %v3462_v22, %v3462_v22 }
0x1163   : >> { %v3469_v26 = vsel %vm3467_vm0, %v3463_v25, %v3468_v24 }
0x1164   : >> { %3470 = vst [vmem:[%s3464_s16] sm:$0x1] %v3469_v26  ;;  %s7484_s16 = sld [smem:[#allocation58_spill]] (%p3272_p5) }
0x116a   : > { %s7176_s20 = scalar_lea.hbm %s7484_s16, %s4752_s23 }
0x116b   : > { %5437 = shalt.err (!%p5434_p8)
}
0x116c   : > { %s5438_s23 = scalar_lea.hbm %s7176_s20, 768  ;;  %s5442_s17 = scalar_lea.hbm %s7484_s16, 1536 }
0x116d   : > { %p5439_p6 = scmp.ne.s32.totalorder %s7176_s20, %s5438_s23  ;;  %p5443_p3 = scmp.lt.u32.totalorder %s7176_s20, %s7484_s16 }
0x116e   : > { %p5444_p0 = scmp.lt.u32.totalorder %s5442_s17, %s5438_s23  ;;  %p5446_p2 = scmp.lt.u32.totalorder %s5438_s23, %s7176_s20 }
0x116f   : > { %p5440_p9 = pnand %p5439_p6, %p7485_p7 }
0x1170   : > { %p5445_p5 = por %p5444_p0, %p5443_p3 }
0x1171   : > { %p5441_p4 = pneg %p5440_p9 }
0x1172   : > { %p5447_p10 = por %p5446_p2, %p5445_p5 }
0x1174   : > { %p5448_p1 = pnand %p5447_p10, %p5441_p4 }
0x1176   : > { %5451 = shalt.err (!%p5448_p1)
}
0x1177   : > { %s7424_s8 = smov 64   ;;  %s5770_s22 = smov 4  }
0x1178   : > { %4803 = dma.vmem_to_hbm [thread:$0]  (%p7485_p7), %s7171_s4, 768, %s7176_s20, %s7181_s21, %s7424_s8, %s7424_s8, %s5770_s22  }
0x1179   : > { %s7486_s2 = sld [smem:[#allocation60_spill]]  ;;  %s7487_s17 = scalar_lea.vmem [#allocation30], %s6245_s15 }
0x117a   : > { %s3553_s7 = sshll.u32 %s7487_s17, 4  ;;  %s7488_s9 = sand.u32 1, %s7483_s13   ;;  %s7217_s7 = int_to_ptr.vmem [resolvable:$true] %s3553_s7 }
0x117b   : > { %s7221_s10 = scalar_lea.sflag [#allocation31], %s7488_s9  ;;  %s5452_s11 = scalar_lea.vmem %s7217_s7, 384 }
0x117c   : > { %p5453_p11 = scmp.ne.s32.totalorder %s7217_s7, %s5452_s11  ;;  %s5771_s20 = smov [#allocation30]  }
0x117d   : > { %s5456_s4 = sshll.u32 %s5771_s20, 4  ;;  %s5457_s4 = int_to_ptr.vmem [resolvable:$false] %s5456_s4 }
0x117e   : > { %p5454_p12 = pnand %p5453_p11, %p7485_p7  ;;  %s5458_s5 = scalar_lea.vmem %s5457_s4, 768 }
0x117f   : > { %s7213_s29 = scalar_lea.hbm %s7486_s2, %s7419_s1  ;;  %p5459_p8 = scmp.lt.s32.totalorder %s7217_s7, %s5457_s4 }
0x1180   : > { %p5455_p13 = pneg %p5454_p12  ;;  %p5460_p6 = scmp.lt.s32.totalorder %s5458_s5, %s5452_s11 }
0x1182   : > { %p5461_p9 = por %p5460_p6, %p5459_p8 }
0x1184   : > { %p5462_p4 = pnand %p5461_p9, %p5455_p13 }
0x1186   : > { %5465 = shalt.err (!%p5462_p4)
}
0x1187   : > { %s5466_s9 = scalar_lea.hbm %s7213_s29, 384  ;;  %s5470_s20 = scalar_lea.hbm %s7486_s2, 768 }
0x1188   : > { %p5467_p3 = scmp.ne.s32.totalorder %s7213_s29, %s5466_s9  ;;  %p5471_p2 = scmp.lt.u32.totalorder %s7213_s29, %s7486_s2 }
0x1189   : > { %p5472_p10 = scmp.lt.u32.totalorder %s5470_s20, %s5466_s9  ;;  %p5474_p11 = scmp.lt.u32.totalorder %s5466_s9, %s7213_s29 }
0x118a   : > { %p5468_p0 = pnand %p5467_p3, %p7485_p7 }
0x118b   : > { %p5473_p1 = por %p5472_p10, %p5471_p2 }
0x118c   : > { %p5469_p5 = pneg %p5468_p0 }
0x118d   : > { %p5475_p12 = por %p5474_p11, %p5473_p1 }
0x118f   : > { %p5476_p13 = pnand %p5475_p12, %p5469_p5 }
0x1191   : > { %5479 = shalt.err (!%p5476_p13)
}
0x1192   : > { %4805 = dma.vmem_to_hbm [thread:$0]  (%p7485_p7), %s7217_s7, 384, %s7213_s29, %s7221_s10, %s7424_s8, %s7424_s8, %s5770_s22  }
0x1193   : > { %s4751_s11 = smul.u32 1536, %s7483_s13  ;;  %s3505_s1 = sshll.u32 %s6492_s3, 4  ;;  %s7250_s1 = int_to_ptr.vmem [resolvable:$true] %s3505_s1 }
0x1194   : > { %s7489_s5 = smul.u32 384, %s7483_s13  ;;  %s7490_s17 = sld [smem:[#allocation59_spill]] }
0x1195   : > { %s7491_s16 = sld [smem:[#allocation57_spill]]  ;;  %s7492_s25 = scalar_lea.vmem [#allocation29], %s6245_s15 }
0x1196   : > { %s7266_s29 = sshll.u32 %s7492_s25, 4  ;;  %s3472_s3 = scalar_lea.sflag [#allocation8], %s6242_s6  ;;  %s7296_s29 = int_to_ptr.vmem [resolvable:$true] %s7266_s29 }
0x1197   : > { %s5480_s7 = scalar_lea.vmem %s7250_s1, 1536  ;;  %s5772_s9 = smov [#allocation26]  }
0x1198   : > { %p5481_p8 = scmp.ne.s32.totalorder %s7250_s1, %s5480_s7  ;;  %s5484_s23 = sshll.u32 %s5772_s9, 4  ;;  %s5485_s23 = int_to_ptr.vmem [resolvable:$false] %s5484_s23 }
0x1199   : > { %s5486_s8 = scalar_lea.vmem %s5485_s23, 3072  ;;  %p5487_p4 = scmp.lt.s32.totalorder %s7250_s1, %s5485_s23 }
0x119a   : > { %s7257_s20 = scalar_lea.hbm %s7490_s17, %s7489_s5  ;;  %p5482_p6 = pnand %p5481_p8, %p7485_p7 }
0x119b   : > { %s7262_s19 = scalar_lea.hbm %s7491_s16, %s4751_s11  ;;  %p5488_p3 = scmp.lt.s32.totalorder %s5486_s8, %s5480_s7 }
0x119c   : > { %p5483_p9 = pneg %p5482_p6 }
0x119d   : > { %p5489_p0 = por %p5488_p3, %p5487_p4 }
0x119f   : > { %p5490_p5 = pnand %p5489_p0, %p5483_p9 }
0x11a1   : > { %5493 = shalt.err (!%p5490_p5)
}
0x11a2   : > { %s5494_s25 = scalar_lea.hbm %s7262_s19, 1536  ;;  %s5498_s11 = scalar_lea.hbm %s7491_s16, 3072 }
0x11a3   : > { %p5495_p2 = scmp.ne.s32.totalorder %s7262_s19, %s5494_s25  ;;  %p5499_p11 = scmp.lt.u32.totalorder %s7262_s19, %s7491_s16 }
0x11a4   : > { %p5500_p12 = scmp.lt.u32.totalorder %s5498_s11, %s5494_s25  ;;  %p5502_p8 = scmp.lt.u32.totalorder %s5494_s25, %s7262_s19 }
0x11a5   : > { %p5496_p10 = pnand %p5495_p2, %p7485_p7 }
0x11a6   : > { %p5501_p13 = por %p5500_p12, %p5499_p11 }
0x11a7   : > { %p5497_p1 = pneg %p5496_p10 }
0x11a8   : > { %p5503_p6 = por %p5502_p8, %p5501_p13 }
0x11aa   : > { %p5504_p9 = pnand %p5503_p6, %p5497_p1 }
0x11ac   : > { %5507 = shalt.err (!%p5504_p9)
}
0x11ad   : > { %s7493_s8 = smov 64   ;;  %s4755_s7 = smul.u32 96, %s7483_s13 }
0x11ae   : > { %4802 = dma.vmem_to_hbm [thread:$0]  (%p7485_p7), %s7250_s1, 1536, %s7262_s19, %s3472_s3, %s7493_s8, %s7493_s8, %s5770_s22  }
0x11af   : > { %s5508_s9 = scalar_lea.vmem %s7296_s29, 384  ;;  %s5773_s23 = smov [#allocation29]  }
0x11b0   : > { %p5509_p4 = scmp.ne.s32.totalorder %s7296_s29, %s5508_s9  ;;  %s5512_s25 = sshll.u32 %s5773_s23, 4  ;;  %s5513_s25 = int_to_ptr.vmem [resolvable:$false] %s5512_s25 }
0x11b1   : > { %s5514_s6 = scalar_lea.vmem %s5513_s25, 768  ;;  %p5515_p5 = scmp.lt.s32.totalorder %s7296_s29, %s5513_s25 }
0x11b2   : > { %p5510_p3 = pnand %p5509_p4, %p7485_p7  ;;  %p5516_p2 = scmp.lt.s32.totalorder %s5514_s6, %s5508_s9 }
0x11b4   : > { %p5511_p0 = pneg %p5510_p3  ;;  %p5517_p10 = por %p5516_p2, %p5515_p5 }
0x11b6   : > { %p5518_p1 = pnand %p5517_p10, %p5511_p0 }
0x11b8   : > { %5521 = shalt.err (!%p5518_p1)
}
0x11b9   : > { %s5522_s19 = scalar_lea.hbm %s7257_s20, 384  ;;  %s5526_s15 = scalar_lea.hbm %s7490_s17, 768 }
0x11ba   : > { %p5523_p11 = scmp.ne.s32.totalorder %s7257_s20, %s5522_s19  ;;  %p5527_p8 = scmp.lt.u32.totalorder %s7257_s20, %s7490_s17 }
0x11bb   : > { %p5528_p6 = scmp.lt.u32.totalorder %s5526_s15, %s5522_s19  ;;  %p5530_p4 = scmp.lt.u32.totalorder %s5522_s19, %s7257_s20 }
0x11bc   : > { %p5524_p12 = pnand %p5523_p11, %p7485_p7 }
0x11bd   : > { %p5529_p9 = por %p5528_p6, %p5527_p8 }
0x11be   : > { %p5525_p13 = pneg %p5524_p12 }
0x11bf   : > { %p5531_p3 = por %p5530_p4, %p5529_p9 }
0x11c1   : > { %p5532_p0 = pnand %p5531_p3, %p5525_p13 }
0x11c3   : > { %5535 = shalt.err (!%p5532_p0)
}
0x11c4   : > { %4804 = dma.vmem_to_hbm [thread:$0]  (%p7485_p7), %s7296_s29, 384, %s7257_s20, %s7181_s21, %s7493_s8, %s7493_s8, %s5770_s22  }
0x11c5   : > { %s7494_s9 = sld [smem:[#allocation61_spill]]  ;;  %s3569_s25 = sshll.u32 %s6502_s30, 4  ;;  %s7332_s25 = int_to_ptr.vmem [resolvable:$true] %s3569_s25 }
0x11c6   : > { %s5536_s6 = scalar_lea.vmem %s7332_s25, 96  ;;  %s5774_s19 = smov [#allocation32]  }
0x11c7   : > { %p5537_p5 = scmp.ne.s32.totalorder %s7332_s25, %s5536_s6  ;;  %s5540_s1 = sshll.u32 %s5774_s19, 4  ;;  %s5541_s1 = int_to_ptr.vmem [resolvable:$false] %s5540_s1 }
0x11c8   : > { %s5542_s21 = scalar_lea.vmem %s5541_s1, 192  ;;  %p5543_p1 = scmp.lt.s32.totalorder %s7332_s25, %s5541_s1 }
0x11c9   : > { %p5538_p2 = pnand %p5537_p5, %p7485_p7  ;;  %p5544_p11 = scmp.lt.s32.totalorder %s5542_s21, %s5536_s6 }
0x11cb   : > { %s7329_s23 = scalar_lea.hbm %s7494_s9, %s4755_s7  ;;  %p5539_p10 = pneg %p5538_p2 }
0x11cc   : > { %p5545_p12 = por %p5544_p11, %p5543_p1 }
0x11ce   : > { %p5546_p13 = pnand %p5545_p12, %p5539_p10 }
0x11d0   : > { %5549 = shalt.err (!%p5546_p13)
}
0x11d1   : > { %s5550_s30 = scalar_lea.hbm %s7329_s23, 96  ;;  %s5554_s20 = scalar_lea.hbm %s7494_s9, 192 }
0x11d2   : > { %p5551_p8 = scmp.ne.s32.totalorder %s7329_s23, %s5550_s30  ;;  %p5555_p4 = scmp.lt.u32.totalorder %s7329_s23, %s7494_s9 }
0x11d3   : > { %p5556_p3 = scmp.lt.u32.totalorder %s5554_s20, %s5550_s30  ;;  %p5558_p5 = scmp.lt.u32.totalorder %s5550_s30, %s7329_s23 }
0x11d4   : > { %p5552_p6 = pnand %p5551_p8, %p7485_p7 }
0x11d5   : > { %p5557_p0 = por %p5556_p3, %p5555_p4 }
0x11d6   : > { %p5553_p9 = pneg %p5552_p6 }
0x11d7   : > { %p5559_p2 = por %p5558_p5, %p5557_p0 }
0x11d9   : > { %p5560_p10 = pnand %p5559_p2, %p5553_p9 }
0x11db   : > { %5563 = shalt.err (!%p5560_p10)
}
0x11dc   : > { %s5775_s7 = smov 16   ;;  %s7495_s3 = smov 1  }
0x11dd   : > { %4806 = dma.vmem_to_hbm [thread:$0]  (%p7485_p7), %s7332_s25, 96, %s7329_s23, %s7221_s10, %s5775_s7, %s5775_s7, %s7495_s3  }
0x11de PF: > { %s3584_s15 = sand.u32 1, %s5654_s26   ;;  %p7496_p1 = scmp.ne.s32.totalorder %s7465_s24, 0 }
0x11df   : > { %p7497_p11 = scmp.ge.s32.totalorder %s5666_s28, 2  ;;  %s3585_s2 = scalar_lea.sflag [#allocation8], %s3584_s15 }
0x11e1   : > { %p4851_p12 = pnand %p7497_p11, %p7496_p1 }
0x11e3   : > { %5641 = dma.done.wait (!%p4851_p12), %s3585_s2, 1536  }
0x11e4   : > { %5643 = vsyncadd (!%p4851_p12), %s3585_s2, 4294965760  ;;  %s7498_s11 = sadd.s32 4294967294, %s5666_s28  }
0x11e5   : > { %s3593_s5 = sand.u32 1, %s7498_s11  }
0x11e6   : > { %s3594_s0 = scalar_lea.sflag [#allocation28], %s3593_s5 }
0x11e7   : > { %5645 = dma.done.wait (!%p4851_p12), %s3594_s0, 1152  }
0x11e8   : > { %5647 = vsyncadd (!%p4851_p12), %s3594_s0, 4294966144  ;;  %s3612_s4 = scalar_lea.sflag [#allocation31], %s3593_s5 }
0x11e9   : > { %5649 = dma.done.wait (!%p4851_p12), %s3612_s4, 480  }
0x11ea   : > { %5651 = vsyncadd (!%p4851_p12), %s3612_s4, 4294966816  ;;  %p45_p7 = scmp.ge.s32.totalorder %s6164_s18, 4   ;;  %s7499_s26 = smov %s5658_s27 }
0x11eb   : > { %s7500_s27 = smov %s5662_s12  ;;  %s7501_s12 = smov %s6176_s14 }
0x11ec   : > { %s7502_s28 = smov %s6164_s18  ;;  %47 = sbr.rel (!%p45_p7) target bundleno = 33 (0x21), region = 457 }
0x11f3   :  { %3626 = vsyncpa [#allocation7], 1 }
0x11f4   :  { %3628 = vsyncpa [#allocation7 + $0x1], 1 }
0x11f5   :  { %3629 = vsyncpa [#allocation10], 1 }
0x11f6   :  { %3630 = vsyncpa [#allocation13], 1 }
0x11f7   :  { %3631 = vsyncpa [#allocation16], 1 }
0x11f8   :  { %3632 = vsyncpa [#allocation19], 1 }
0x11f9   :  { %3633 = vsyncpa [#allocation22], 1 }
0x11fa   :  { %3634 = vsyncpa [#allocation25], 1 }
0x11fb   :  { %3635 = vsyncpa [#allocation8], 1 }
0x11fc   :  { %3637 = vsyncpa [#allocation8 + $0x1], 1 }
0x11fd   :  { %3638 = vsyncpa [#allocation28], 1 }
0x11fe   :  { %3640 = vsyncpa [#allocation28 + $0x1], 1 }
0x11ff   :  { %3641 = vsyncpa [#allocation31], 1 }
0x1200   :  { %3643 = vsyncpa [#allocation31 + $0x1], 1 }

</bundles_post_ra>
